<compile_context>
chip_gen: v7x
topology: tpu7x:2x2x1
jax: 0.10.0
libtpu: 0.0.40
codegen_flags: <defaults>
</compile_context>

<pallas_src>
import functools
import math

import jax
import jax.numpy as jnp
from jax import lax
from jax.experimental import pallas as pl
from jax.experimental.pallas import tpu as pltpu

_F32 = jnp.float32


# ----------------------------------------------------------------------------
# small helpers
# ----------------------------------------------------------------------------
def _full_spec(x):
    """Full-array single block; index_map ignores grid / prefetch args."""
    shape = tuple(int(d) for d in x.shape)
    return pl.BlockSpec(shape, lambda *_, _nd=len(shape): (0,) * _nd)


def _sigmoid(x):
    return 1.0 / (1.0 + jnp.exp(-x))


def _gelu(x):
    # exact (erf-based) GELU, matching nn.GELU() default (approximate='none')
    return 0.5 * x * (1.0 + lax.erf(x * 0.7071067811865476))


# ----------------------------------------------------------------------------
# kernel 1: deep branch
# ----------------------------------------------------------------------------
def _deep_kernel(fd_ref, wp_ref, bp_ref, wa_ref, ba_ref, wb_ref, bb_ref,
                 wc_ref, bc_ref, wcd_ref, bcd_ref,
                 a_out, bdeep_out, cdeep_out):
    fd = fd_ref[...]                                                 # (N, Dd)
    # projection_head_deep: Linear + ReLU
    v = jnp.maximum(
        jnp.dot(fd, wp_ref[...], preferred_element_type=_F32) + bp_ref[...], 0.0)
    # Attn_Net_Gated(L=Dd, D=256, n_classes=1)
    a = jnp.tanh(jnp.dot(v, wa_ref[...], preferred_element_type=_F32) + ba_ref[...])
    b = _sigmoid(jnp.dot(v, wb_ref[...], preferred_element_type=_F32) + bb_ref[...])
    # width-1 projection as VPU multiply + lane reduction (keeps MXU result path free)
    logits = jnp.sum((a * b) * wc_ref[...], axis=1, keepdims=True) + bc_ref[...]  # (N,1)
    # softmax over instances (dim 0); EUP reciprocal for the denominator
    m = jnp.max(logits, axis=0, keepdims=True)
    e = jnp.exp(logits - m)
    att = e * pl.reciprocal(jnp.sum(e, axis=0, keepdims=True), approx=True)
    a_out[...] = att                                                 # (N, 1)
    # classification_head_deep on A_deep * V_deep  (width-1 head as lane reduce)
    bdeep = jnp.sum((att * v) * wcd_ref[...], axis=1, keepdims=True) + bcd_ref[...]
    bdeep_out[...] = bdeep                                           # (N, 1)
    cdeep_out[...] = _sigmoid(jnp.sum(bdeep, axis=0, keepdims=True))  # (1, 1)


def _deep_call(params, feats_deep):
    n, dd = feats_deep.shape
    da = params["wa"].shape[1]
    inputs = [feats_deep, params["wp"], params["bp"], params["wa"], params["ba"],
              params["wb"], params["bb"], params["wc_r"], params["bc"],
              params["wcd_r"], params["bcd"]]
    out_shape = (jax.ShapeDtypeStruct((n, 1), _F32),
                 jax.ShapeDtypeStruct((n, 1), _F32),
                 jax.ShapeDtypeStruct((1, 1), _F32))
    flops = int(2 * n * dd * dd + 4 * n * dd * da + 6 * n * da + 4 * n * dd)
    trans = int(2 * n * da + n + 1)
    io_f32 = sum(int(x.size) for x in inputs) + 2 * n + 1
    byts = int(4 * io_f32)
    vmem_limit = int(min(32 * 2 ** 20, max(8 * 2 ** 20, 16 * byts)))
    return pl.pallas_call(
        _deep_kernel,
        grid=(1,),
        in_specs=[_full_spec(x) for x in inputs],
        out_specs=tuple(_full_spec(s) for s in out_shape),
        out_shape=out_shape,
        compiler_params=pltpu.CompilerParams(
            dimension_semantics=("arbitrary",),
            vmem_limit_bytes=vmem_limit),
        cost_estimate=pl.CostEstimate(flops=flops, transcendentals=trans,
                                      bytes_accessed=byts),
    )(*inputs)


# ----------------------------------------------------------------------------
# kernel 2 (fused): HBM row gather + MLP-Mixer + aux attention + quantile/std
#                   normalisation + sigmoid gating + classification head + bag score
# ----------------------------------------------------------------------------
def _make_fused_kernel(num_layers, top_k, temperature, percentile, df, pk_from_gather):
    apply_norm = percentile != 0.0
    if apply_norm:
        pos = float(percentile) * (df - 1)
        q_lo = int(math.floor(pos))
        q_hi = min(int(math.ceil(pos)), df - 1)
        q_frac = float(pos - q_lo)

    def kernel(sel_ref, feats_hbm,
               tw1, tb1, tw2, tb2, cw1t, cb1c, cw2t, cb2c,
               awat, abac, awbt, abbc, awct, abcc,
               wcls_r, bcls, *rest):
        if pk_from_gather:
            afin_out, b_out, c_out, gbuf, sems = rest
            pk_ref = None
        else:
            pk_ref, afin_out, b_out, c_out, gbuf, sems = rest

        # ---- gather the selected rows of `feats` straight from HBM into VMEM ----
        copies = []
        for i in range(top_k):
            cp = pltpu.make_async_copy(
                feats_hbm.at[pl.ds(sel_ref[i], 1)],
                gbuf.at[pl.ds(i, 1)],
                sems.at[i])
            cp.start()
            copies.append(cp)
        for cp in copies:
            cp.wait()

        topk_feats = gbuf[...]                         # (K, Df) pre-mixer rows
        xt = topk_feats

        # ---- MLP-Mixer kept in (K, Df) orientation: every matmul is standard ----
        # (channel-MLP weights are stored pre-transposed; no in-kernel .T)
        for l in range(num_layers):
            h = _gelu(jnp.dot(xt, tw1[l], preferred_element_type=_F32) + tb1[l])     # (K, H)
            xt = xt + jnp.dot(h, tw2[l], preferred_element_type=_F32) + tb2[l]       # (K, Df)
            h2t = _gelu(jnp.dot(cw1t[l], xt, preferred_element_type=_F32) + cb1c[l])  # (H, Df)
            xt = xt + jnp.dot(cw2t[l], h2t, preferred_element_type=_F32) + cb2c[l]    # (K, Df)

        # ---- aux gated attention, producing a lane-dense (1, Df) row directly ----
        at = jnp.tanh(jnp.dot(awat[...], xt, preferred_element_type=_F32) + abac[...])   # (D2, Df)
        bt = _sigmoid(jnp.dot(awbt[...], xt, preferred_element_type=_F32) + abbc[...])   # (D2, Df)
        a_row = jnp.dot(awct[...], at * bt, preferred_element_type=_F32) + abcc[...]     # (1, Df)

        if apply_norm:
            ii = lax.broadcasted_iota(jnp.int32, (df, df), 0)
            jj = lax.broadcasted_iota(jnp.int32, (df, df), 1)
            # bit-exact row -> column relayout (diagonal select + lane reduce)
            a_col = jnp.sum(jnp.where(ii == jj, a_row, 0.0), axis=1, keepdims=True)   # (Df, 1)
            # torch.quantile(..., interpolation='linear') via rank selection
            less = jnp.logical_or(a_row < a_col,
                                  jnp.logical_and(a_row == a_col, jj < ii))
            rank = jnp.sum(less.astype(_F32), axis=1, keepdims=True)                  # (Df, 1)
            v_lo = jnp.sum(jnp.where(rank == float(q_lo), a_col, 0.0),
                           axis=0, keepdims=True)                                     # (1, 1)
            v_hi = jnp.sum(jnp.where(rank == float(q_hi), a_col, 0.0),
                           axis=0, keepdims=True)                                     # (1, 1)
            q = v_lo + q_frac * (v_hi - v_lo)
            # torch.std (unbiased) of the raw attention row
            mean = jnp.sum(a_row, axis=1, keepdims=True) * (1.0 / df)
            var = jnp.sum((a_row - mean) ** 2, axis=1, keepdims=True) * (1.0 / (df - 1))
            a_row = (a_row - q) / (jnp.sqrt(var) + 1e-6)

        a_fin = _sigmoid(a_row * temperature)
        afin_out[...] = a_fin                                                          # (1, Df)

        pk = topk_feats if pk_from_gather else pk_ref[...]                             # (M, Df)
        gated = pk * a_fin
        # width-1 classification head as VPU multiply + lane reduction
        b = jnp.sum(gated * wcls_r[...], axis=1, keepdims=True) + bcls[...]            # (M, 1)
        b_out[...] = b
        c_out[...] = _sigmoid(jnp.sum(b, axis=0, keepdims=True))                       # (1, 1)

    return kernel


def _fused_call(params, feats, sel, *, top_k, temperature, percentile, mlp_layers,
                pk_from_gather, pk_array=None):
    n, df = feats.shape
    kern = _make_fused_kernel(mlp_layers, top_k, float(temperature),
                              float(percentile), df, pk_from_gather)
    wkeys = ("tw1", "tb1", "tw2", "tb2", "cw1t", "cb1c", "cw2t", "cb2c",
             "awat", "abac", "awbt", "abbc", "awct", "abc", "wcls_r", "bcls")
    weights = [params[k] for k in wkeys]
    inputs = [feats] + weights
    in_specs = [pl.BlockSpec(memory_space=pl.ANY)] + [_full_spec(w) for w in weights]
    if not pk_from_gather:
        inputs.append(pk_array)
        in_specs.append(_full_spec(pk_array))
    pk_rows = top_k if pk_from_gather else int(pk_array.shape[0])

    out_shape = (jax.ShapeDtypeStruct((1, df), _F32),          # A_aux (lane-dense)
                 jax.ShapeDtypeStruct((pk_rows, 1), _F32),     # B
                 jax.ShapeDtypeStruct((1, 1), _F32))           # C
    out_specs = [_full_spec(s) for s in out_shape]

    grid_spec = pltpu.PrefetchScalarGridSpec(
        num_scalar_prefetch=1,
        grid=(1,),
        in_specs=in_specs,
        out_specs=out_specs,
        scratch_shapes=[pltpu.VMEM((top_k, df), _F32),
                        pltpu.SemaphoreType.DMA((top_k,))],
    )

    h = int(params["tw1"].shape[-1])
    d2 = int(params["awat"].shape[0])
    flops = int(mlp_layers * 8 * top_k * df * h + 4 * d2 * top_k * df
                + 2 * d2 * df + 4 * df * df + 3 * pk_rows * df)
    trans = int(mlp_layers * (top_k * h + h * df) + 2 * d2 * df + df + pk_rows + 1)
    byts = int(4 * (sum(int(x.size) for x in weights) + top_k * df
                    + df + pk_rows + 1 + (0 if pk_from_gather else pk_rows * df)))
    vmem_limit = int(min(32 * 2 ** 20, max(8 * 2 ** 20, 16 * byts)))

    fn = pl.pallas_call(
        kern,
        grid_spec=grid_spec,
        out_shape=out_shape,
        compiler_params=pltpu.CompilerParams(
            dimension_semantics=("arbitrary",),
            vmem_limit_bytes=vmem_limit),
        cost_estimate=pl.CostEstimate(flops=flops, transcendentals=trans,
                                      bytes_accessed=byts),
    )
    return fn(sel, *inputs)


# ----------------------------------------------------------------------------
# parameters (deterministic, PyTorch-Linear-style uniform init, kernel layouts)
# ----------------------------------------------------------------------------
def init_params(key, input_size, input_size_deep, top_k, mlp_layers=4,
                attn_deep_hidden=256, aux_hidden=128, mixer_hidden=128):
    dd, df, k, h, d2, da = (input_size_deep, input_size, top_k,
                            mixer_hidden, aux_hidden, attn_deep_hidden)
    keys = iter(jax.random.split(key, 20 + 8 * mlp_layers))

    def u(shape, fan_in):
        bound = 1.0 / math.sqrt(fan_in)
        return jax.random.uniform(next(keys), shape, _F32, -bound, bound)

    p = {}
    # deep branch: weights (in, out); width-1 heads stored as (1, in) rows
    p["wp"], p["bp"] = u((dd, dd), dd), u((1, dd), dd)
    p["wa"], p["ba"] = u((dd, da), dd), u((1, da), dd)
    p["wb"], p["bb"] = u((dd, da), dd), u((1, da), dd)
    p["wc_r"], p["bc"] = u((1, da), da), u((1, 1), da)
    p["wcd_r"], p["bcd"] = u((1, dd), dd), u((1, 1), dd)
    p["wcls_r"], p["bcls"] = u((1, df), df), u((1, 1), df)
    # aux gated attention (L=top_k, D=128), stored transposed for (K, Df) orientation
    p["awat"], p["abac"] = u((d2, k), k), u((d2, 1), k)
    p["awbt"], p["abbc"] = u((d2, k), k), u((d2, 1), k)
    p["awct"], p["abc"] = u((1, d2), d2), u((1, 1), d2)
    # MLP-Mixer (num_tokens=input_size, dim=top_k, hidden=128); channel weights pre-transposed
    tw1, tb1, tw2, tb2 = [], [], [], []
    cw1t, cb1c, cw2t, cb2c = [], [], [], []
    for _ in range(mlp_layers):
        tw1.append(u((df, h), df)); tb1.append(u((1, h), df))
        tw2.append(u((h, df), h));  tb2.append(u((1, df), h))
        cw1t.append(u((h, k), k));  cb1c.append(u((h, 1), k))
        cw2t.append(u((k, h), h));  cb2c.append(u((k, 1), h))
    p["tw1"], p["tb1"] = jnp.stack(tw1), jnp.stack(tb1)
    p["tw2"], p["tb2"] = jnp.stack(tw2), jnp.stack(tb2)
    p["cw1t"], p["cb1c"] = jnp.stack(cw1t), jnp.stack(cb1c)
    p["cw2t"], p["cb2c"] = jnp.stack(cw2t), jnp.stack(cb2c)
    return p


# ----------------------------------------------------------------------------
# forward (training='no' path)
# ----------------------------------------------------------------------------
def bclassifier_forward(params, feats, feats_deep, *, top_k, temperature=3.0,
                        percentile=0.75, mlp_layers=4):
    n, df = feats.shape

    # ---- deep branch (Pallas kernel 1) ----
    a_deep, b_deep, c_deep = _deep_call(params, feats_deep)

    # ---- top-k selection (data-dependent; stays in JAX glue, via lax.top_k) ----
    kk = min(top_k, n)
    _, idx = lax.top_k(a_deep[:, 0], kk)             # descending attention scores
    if n < top_k:
        idx = jnp.tile(idx, (top_k // n + 1,))
    sel = idx[:top_k].astype(jnp.int32)

    # TODO(synk): PerturbedTopK (stop_gradient=='no' and training=='yes') has no
    # clean Pallas equivalent; only the inference path is implemented.

    # ---- fused mixer + aux attention + quantile/std + gating + head (kernel 2) ----
    if n > top_k:
        a_final, b, c = _fused_call(
            params, feats, sel, top_k=top_k, temperature=temperature,
            percentile=percentile, mlp_layers=mlp_layers, pk_from_gather=True)
    else:
        # small-bag path: mixer consumes the (tiled) top_k rows, the shallow
        # head consumes the full bag in original order (matches PyTorch).
        a_final, b, c = _fused_call(
            params, feats, sel, top_k=top_k, temperature=temperature,
            percentile=percentile, mlp_layers=mlp_layers, pk_from_gather=False,
            pk_array=feats)

    return (c.reshape(1), c_deep.reshape(1), a_deep, b, b_deep, a_final)


# ----------------------------------------------------------------------------
if __name__ == "__main__":
    # small shapes: bag of N=8 instances, shallow feats dim 32, deep feats dim 32,
    # top_k=4, MLP-Mixer hidden 128, 4 mixer layers.
    N, INPUT_SIZE, INPUT_SIZE_DEEP, TOP_K, MLP_LAYERS = 8, 32, 32, 4, 4

    key = jax.random.PRNGKey(0)
    k_feats, k_deep, k_params = jax.random.split(key, 3)
    feats = jax.random.normal(k_feats, (N, INPUT_SIZE), _F32)
    feats_deep = jax.random.normal(k_deep, (N, INPUT_SIZE_DEEP), _F32)

    params = init_params(k_params, INPUT_SIZE, INPUT_SIZE_DEEP, TOP_K,
                         mlp_layers=MLP_LAYERS)

    fwd = jax.jit(functools.partial(
        bclassifier_forward, top_k=TOP_K, temperature=3.0, percentile=0.75,
        mlp_layers=MLP_LAYERS))

    C, C_deep, A_deep, B, B_deep, A_aux = fwd(params, feats, feats_deep)
    jax.block_until_ready((C, C_deep, A_deep, B, B_deep, A_aux))

    assert C.shape == (1,) and C_deep.shape == (1,)
    assert A_deep.shape == (N, 1) and B_deep.shape == (N, 1)
    assert B.shape == (TOP_K, 1) and A_aux.shape == (1, INPUT_SIZE)
    print("KERNEL_OK")
</pallas_src>

<mosaic_0001>
module attributes {stable_mosaic.version = 11 : i64} {
  func.func @_deep_kernel(%arg0: i32, %arg1: memref<8x32xf32, #tpu.memory_space<vmem>>, %arg2: memref<32x32xf32, #tpu.memory_space<vmem>>, %arg3: memref<1x32xf32, #tpu.memory_space<vmem>>, %arg4: memref<32x256xf32, #tpu.memory_space<vmem>>, %arg5: memref<1x256xf32, #tpu.memory_space<vmem>>, %arg6: memref<32x256xf32, #tpu.memory_space<vmem>>, %arg7: memref<1x256xf32, #tpu.memory_space<vmem>>, %arg8: memref<1x256xf32, #tpu.memory_space<vmem>>, %arg9: memref<1x1xf32, #tpu.memory_space<vmem>>, %arg10: memref<1x32xf32, #tpu.memory_space<vmem>>, %arg11: memref<1x1xf32, #tpu.memory_space<vmem>>, %arg12: memref<8x1xf32, #tpu.memory_space<vmem>>, %arg13: memref<8x1xf32, #tpu.memory_space<vmem>>, %arg14: memref<1x1xf32, #tpu.memory_space<vmem>>) attributes {dimension_semantics = [#tpu.dimension_semantics<arbitrary>], iteration_bounds = array<i64: 1>, scalar_prefetch = 0 : i64, scratch_operands = 0 : i64, tpu.core_type = #tpu.core_type<tc>, window_params = [{pipeline_mode = #tpu.pipeline_mode<synchronous>, transform_indices = @transform_0, window_bounds = array<i64: 8, 32>}, {pipeline_mode = #tpu.pipeline_mode<synchronous>, transform_indices = @transform_1, window_bounds = array<i64: 32, 32>}, {pipeline_mode = #tpu.pipeline_mode<synchronous>, transform_indices = @transform_2, window_bounds = array<i64: 1, 32>}, {pipeline_mode = #tpu.pipeline_mode<synchronous>, transform_indices = @transform_3, window_bounds = array<i64: 32, 256>}, {pipeline_mode = #tpu.pipeline_mode<synchronous>, transform_indices = @transform_4, window_bounds = array<i64: 1, 256>}, {pipeline_mode = #tpu.pipeline_mode<synchronous>, transform_indices = @transform_5, window_bounds = array<i64: 32, 256>}, {pipeline_mode = #tpu.pipeline_mode<synchronous>, transform_indices = @transform_6, window_bounds = array<i64: 1, 256>}, {pipeline_mode = #tpu.pipeline_mode<synchronous>, transform_indices = @transform_7, window_bounds = array<i64: 1, 256>}, {pipeline_mode = #tpu.pipeline_mode<synchronous>, transform_indices = @transform_8, window_bounds = array<i64: 1, 1>}, {pipeline_mode = #tpu.pipeline_mode<synchronous>, transform_indices = @transform_9, window_bounds = array<i64: 1, 32>}, {pipeline_mode = #tpu.pipeline_mode<synchronous>, transform_indices = @transform_10, window_bounds = array<i64: 1, 1>}, {pipeline_mode = #tpu.pipeline_mode<synchronous>, transform_indices = @transform_11, window_bounds = array<i64: 8, 1>}, {pipeline_mode = #tpu.pipeline_mode<synchronous>, transform_indices = @transform_12, window_bounds = array<i64: 8, 1>}, {pipeline_mode = #tpu.pipeline_mode<synchronous>, transform_indices = @transform_13, window_bounds = array<i64: 1, 1>}]} {
    %c0 = arith.constant 0 : index
    %c0_0 = arith.constant 0 : index
    %0 = vector.load %arg1[%c0, %c0_0] : memref<8x32xf32, #tpu.memory_space<vmem>>, vector<8x32xf32>
    %c0_1 = arith.constant 0 : index
    %c0_2 = arith.constant 0 : index
    %1 = vector.load %arg2[%c0_1, %c0_2] : memref<32x32xf32, #tpu.memory_space<vmem>>, vector<32x32xf32>
    %cst = arith.constant dense<0.000000e+00> : vector<8x32xf32>
    %2 = tpu.matmul %0, %1, %cst {dimension_numbers = #tpu.dot_dimension_numbers<[1], [0], [0], [1], [0, 0, 1, 1], [], []>} : vector<8x32xf32>, vector<32x32xf32>, vector<8x32xf32> -> vector<8x32xf32>
    %c0_3 = arith.constant 0 : index
    %c0_4 = arith.constant 0 : index
    %3 = vector.load %arg3[%c0_3, %c0_4] : memref<1x32xf32, #tpu.memory_space<vmem>>, vector<1x32xf32>
    %4 = vector.broadcast %3 : vector<1x32xf32> to vector<8x32xf32>
    %5 = arith.addf %2, %4 : vector<8x32xf32>
    %cst_5 = arith.constant 0.000000e+00 : f32
    %6 = vector.broadcast %cst_5 : f32 to vector<8x32xf32>
    %7 = arith.maximumf %5, %6 : vector<8x32xf32>
    %c0_6 = arith.constant 0 : index
    %c0_7 = arith.constant 0 : index
    %8 = vector.load %arg4[%c0_6, %c0_7] : memref<32x256xf32, #tpu.memory_space<vmem>>, vector<32x256xf32>
    %cst_8 = arith.constant dense<0.000000e+00> : vector<8x256xf32>
    %9 = tpu.matmul %7, %8, %cst_8 {dimension_numbers = #tpu.dot_dimension_numbers<[1], [0], [0], [1], [0, 0, 1, 1], [], []>} : vector<8x32xf32>, vector<32x256xf32>, vector<8x256xf32> -> vector<8x256xf32>
    %c0_9 = arith.constant 0 : index
    %c0_10 = arith.constant 0 : index
    %10 = vector.load %arg5[%c0_9, %c0_10] : memref<1x256xf32, #tpu.memory_space<vmem>>, vector<1x256xf32>
    %11 = vector.broadcast %10 : vector<1x256xf32> to vector<8x256xf32>
    %12 = arith.addf %9, %11 : vector<8x256xf32>
    %13 = math.tanh %12 : vector<8x256xf32>
    %c0_11 = arith.constant 0 : index
    %c0_12 = arith.constant 0 : index
    %14 = vector.load %arg6[%c0_11, %c0_12] : memref<32x256xf32, #tpu.memory_space<vmem>>, vector<32x256xf32>
    %cst_13 = arith.constant dense<0.000000e+00> : vector<8x256xf32>
    %15 = tpu.matmul %7, %14, %cst_13 {dimension_numbers = #tpu.dot_dimension_numbers<[1], [0], [0], [1], [0, 0, 1, 1], [], []>} : vector<8x32xf32>, vector<32x256xf32>, vector<8x256xf32> -> vector<8x256xf32>
    %c0_14 = arith.constant 0 : index
    %c0_15 = arith.constant 0 : index
    %16 = vector.load %arg7[%c0_14, %c0_15] : memref<1x256xf32, #tpu.memory_space<vmem>>, vector<1x256xf32>
    %17 = vector.broadcast %16 : vector<1x256xf32> to vector<8x256xf32>
    %18 = arith.addf %15, %17 : vector<8x256xf32>
    %cst_16 = arith.constant 0.000000e+00 : f32
    %19 = vector.broadcast %cst_16 : f32 to vector<8x256xf32>
    %20 = arith.subf %19, %18 : vector<8x256xf32>
    %21 = math.exp %20 : vector<8x256xf32>
    %cst_17 = arith.constant 1.000000e+00 : f32
    %22 = vector.broadcast %cst_17 : f32 to vector<8x256xf32>
    %23 = arith.addf %22, %21 : vector<8x256xf32>
    %cst_18 = arith.constant 1.000000e+00 : f32
    %24 = vector.broadcast %cst_18 : f32 to vector<8x256xf32>
    %25 = arith.divf %24, %23 : vector<8x256xf32>
    %26 = arith.mulf %13, %25 : vector<8x256xf32>
    %c0_19 = arith.constant 0 : index
    %c0_20 = arith.constant 0 : index
    %27 = vector.load %arg8[%c0_19, %c0_20] : memref<1x256xf32, #tpu.memory_space<vmem>>, vector<1x256xf32>
    %28 = vector.broadcast %27 : vector<1x256xf32> to vector<8x256xf32>
    %29 = arith.mulf %26, %28 : vector<8x256xf32>
    %cst_21 = arith.constant dense<0.000000e+00> : vector<8xf32>
    %30 = vector.multi_reduction <add>, %29, %cst_21 [1] : vector<8x256xf32> to vector<8xf32>
    %31 = vector.shape_cast %30 : vector<8xf32> to vector<8x1xf32>
    %c0_22 = arith.constant 0 : index
    %c0_23 = arith.constant 0 : index
    %32 = vector.load %arg9[%c0_22, %c0_23] : memref<1x1xf32, #tpu.memory_space<vmem>>, vector<1x1xf32>
    %33 = vector.broadcast %32 : vector<1x1xf32> to vector<8x1xf32>
    %34 = arith.addf %31, %33 : vector<8x1xf32>
    %cst_24 = arith.constant dense<0xFF800000> : vector<1xf32>
    %35 = vector.multi_reduction <maximumf>, %34, %cst_24 [0] : vector<8x1xf32> to vector<1xf32>
    %36 = vector.shape_cast %35 : vector<1xf32> to vector<1x1xf32>
    %37 = vector.broadcast %36 : vector<1x1xf32> to vector<8x1xf32>
    %38 = arith.subf %34, %37 : vector<8x1xf32>
    %39 = math.exp %38 : vector<8x1xf32>
    %cst_25 = arith.constant dense<0.000000e+00> : vector<1xf32>
    %40 = vector.multi_reduction <add>, %39, %cst_25 [0] : vector<8x1xf32> to vector<1xf32>
    %41 = vector.shape_cast %40 : vector<1xf32> to vector<1x1xf32>
    %42 = tpu.reciprocal %41 {approx = true} : vector<1x1xf32> -> vector<1x1xf32>
    %43 = vector.broadcast %42 : vector<1x1xf32> to vector<8x1xf32>
    %44 = arith.mulf %39, %43 : vector<8x1xf32>
    %c0_26 = arith.constant 0 : index
    %c0_27 = arith.constant 0 : index
    %45 = vector.load %arg12[%c0_26, %c0_27] : memref<8x1xf32, #tpu.memory_space<vmem>>, vector<8x1xf32>
    tpu.vector_store %arg12[%c0_26, %c0_27], %44 {strides = array<i32>} : memref<8x1xf32, #tpu.memory_space<vmem>>, vector<8x1xf32>,
    %46 = vector.broadcast %44 : vector<8x1xf32> to vector<8x32xf32>
    %47 = arith.mulf %46, %7 : vector<8x32xf32>
    %c0_28 = arith.constant 0 : index
    %c0_29 = arith.constant 0 : index
    %48 = vector.load %arg10[%c0_28, %c0_29] : memref<1x32xf32, #tpu.memory_space<vmem>>, vector<1x32xf32>
    %49 = vector.broadcast %48 : vector<1x32xf32> to vector<8x32xf32>
    %50 = arith.mulf %47, %49 : vector<8x32xf32>
    %cst_30 = arith.constant dense<0.000000e+00> : vector<8xf32>
    %51 = vector.multi_reduction <add>, %50, %cst_30 [1] : vector<8x32xf32> to vector<8xf32>
    %52 = vector.shape_cast %51 : vector<8xf32> to vector<8x1xf32>
    %c0_31 = arith.constant 0 : index
    %c0_32 = arith.constant 0 : index
    %53 = vector.load %arg11[%c0_31, %c0_32] : memref<1x1xf32, #tpu.memory_space<vmem>>, vector<1x1xf32>
    %54 = vector.broadcast %53 : vector<1x1xf32> to vector<8x1xf32>
    %55 = arith.addf %52, %54 : vector<8x1xf32>
    %c0_33 = arith.constant 0 : index
    %c0_34 = arith.constant 0 : index
    %56 = vector.load %arg13[%c0_33, %c0_34] : memref<8x1xf32, #tpu.memory_space<vmem>>, vector<8x1xf32>
    tpu.vector_store %arg13[%c0_33, %c0_34], %55 {strides = array<i32>} : memref<8x1xf32, #tpu.memory_space<vmem>>, vector<8x1xf32>,
    %cst_35 = arith.constant dense<0.000000e+00> : vector<1xf32>
    %57 = vector.multi_reduction <add>, %55, %cst_35 [0] : vector<8x1xf32> to vector<1xf32>
    %58 = vector.shape_cast %57 : vector<1xf32> to vector<1x1xf32>
    %cst_36 = arith.constant 0.000000e+00 : f32
    %59 = vector.broadcast %cst_36 : f32 to vector<1x1xf32>
    %60 = arith.subf %59, %58 : vector<1x1xf32>
    %61 = math.exp %60 : vector<1x1xf32>
    %cst_37 = arith.constant 1.000000e+00 : f32
    %62 = vector.broadcast %cst_37 : f32 to vector<1x1xf32>
    %63 = arith.addf %62, %61 : vector<1x1xf32>
    %cst_38 = arith.constant 1.000000e+00 : f32
    %64 = vector.broadcast %cst_38 : f32 to vector<1x1xf32>
    %65 = arith.divf %64, %63 : vector<1x1xf32>
    %c0_39 = arith.constant 0 : index
    %c0_40 = arith.constant 0 : index
    %66 = vector.load %arg14[%c0_39, %c0_40] : memref<1x1xf32, #tpu.memory_space<vmem>>, vector<1x1xf32>
    tpu.vector_store %arg14[%c0_39, %c0_40], %65 {strides = array<i32>} : memref<1x1xf32, #tpu.memory_space<vmem>>, vector<1x1xf32>,
    return
  }
  func.func @transform_0(%arg0: i32) -> (i32, i32) {
    %c0_i32 = arith.constant 0 : i32
    %c0_i32_0 = arith.constant 0 : i32
    %c0_i32_1 = arith.constant 0 : i32
    return %c0_i32, %c0_i32_0 : i32, i32
  }
  func.func @transform_1(%arg0: i32) -> (i32, i32) {
    %c0_i32 = arith.constant 0 : i32
    %c0_i32_0 = arith.constant 0 : i32
    %c0_i32_1 = arith.constant 0 : i32
    return %c0_i32, %c0_i32_0 : i32, i32
  }
  func.func @transform_2(%arg0: i32) -> (i32, i32) {
    %c0_i32 = arith.constant 0 : i32
    %c0_i32_0 = arith.constant 0 : i32
    %c0_i32_1 = arith.constant 0 : i32
    return %c0_i32, %c0_i32_0 : i32, i32
  }
  func.func @transform_3(%arg0: i32) -> (i32, i32) {
    %c0_i32 = arith.constant 0 : i32
    %c0_i32_0 = arith.constant 0 : i32
    %c0_i32_1 = arith.constant 0 : i32
    return %c0_i32, %c0_i32_0 : i32, i32
  }
  func.func @transform_4(%arg0: i32) -> (i32, i32) {
    %c0_i32 = arith.constant 0 : i32
    %c0_i32_0 = arith.constant 0 : i32
    %c0_i32_1 = arith.constant 0 : i32
    return %c0_i32, %c0_i32_0 : i32, i32
  }
  func.func @transform_5(%arg0: i32) -> (i32, i32) {
    %c0_i32 = arith.constant 0 : i32
    %c0_i32_0 = arith.constant 0 : i32
    %c0_i32_1 = arith.constant 0 : i32
    return %c0_i32, %c0_i32_0 : i32, i32
  }
  func.func @transform_6(%arg0: i32) -> (i32, i32) {
    %c0_i32 = arith.constant 0 : i32
    %c0_i32_0 = arith.constant 0 : i32
    %c0_i32_1 = arith.constant 0 : i32
    return %c0_i32, %c0_i32_0 : i32, i32
  }
  func.func @transform_7(%arg0: i32) -> (i32, i32) {
    %c0_i32 = arith.constant 0 : i32
    %c0_i32_0 = arith.constant 0 : i32
    %c0_i32_1 = arith.constant 0 : i32
    return %c0_i32, %c0_i32_0 : i32, i32
  }
  func.func @transform_8(%arg0: i32) -> (i32, i32) {
    %c0_i32 = arith.constant 0 : i32
    %c0_i32_0 = arith.constant 0 : i32
    %c0_i32_1 = arith.constant 0 : i32
    return %c0_i32, %c0_i32_0 : i32, i32
  }
  func.func @transform_9(%arg0: i32) -> (i32, i32) {
    %c0_i32 = arith.constant 0 : i32
    %c0_i32_0 = arith.constant 0 : i32
    %c0_i32_1 = arith.constant 0 : i32
    return %c0_i32, %c0_i32_0 : i32, i32
  }
  func.func @transform_10(%arg0: i32) -> (i32, i32) {
    %c0_i32 = arith.constant 0 : i32
    %c0_i32_0 = arith.constant 0 : i32
    %c0_i32_1 = arith.constant 0 : i32
    return %c0_i32, %c0_i32_0 : i32, i32
  }
  func.func @transform_11(%arg0: i32) -> (i32, i32) {
    %c0_i32 = arith.constant 0 : i32
    %c0_i32_0 = arith.constant 0 : i32
    %c0_i32_1 = arith.constant 0 : i32
    return %c0_i32, %c0_i32_0 : i32, i32
  }
  func.func @transform_12(%arg0: i32) -> (i32, i32) {
    %c0_i32 = arith.constant 0 : i32
    %c0_i32_0 = arith.constant 0 : i32
    %c0_i32_1 = arith.constant 0 : i32
    return %c0_i32, %c0_i32_0 : i32, i32
  }
  func.func @transform_13(%arg0: i32) -> (i32, i32) {
    %c0_i32 = arith.constant 0 : i32
    %c0_i32_0 = arith.constant 0 : i32
    %c0_i32_1 = arith.constant 0 : i32
    return %c0_i32, %c0_i32_0 : i32, i32
  }
}

module attributes {stable_mosaic.version = 11 : i64} {
  func.func @kernel(%arg0: i32, %arg1: memref<4xi32, #tpu.memory_space<smem>>, %arg2: memref<8x32xf32, #tpu.memory_space<any>>, %arg3: memref<4x32x128xf32, #tpu.memory_space<vmem>>, %arg4: memref<4x1x128xf32, #tpu.memory_space<vmem>>, %arg5: memref<4x128x32xf32, #tpu.memory_space<vmem>>, %arg6: memref<4x1x32xf32, #tpu.memory_space<vmem>>, %arg7: memref<4x128x4xf32, #tpu.memory_space<vmem>>, %arg8: memref<4x128x1xf32, #tpu.memory_space<vmem>>, %arg9: memref<4x4x128xf32, #tpu.memory_space<vmem>>, %arg10: memref<4x4x1xf32, #tpu.memory_space<vmem>>, %arg11: memref<128x4xf32, #tpu.memory_space<vmem>>, %arg12: memref<128x1xf32, #tpu.memory_space<vmem>>, %arg13: memref<128x4xf32, #tpu.memory_space<vmem>>, %arg14: memref<128x1xf32, #tpu.memory_space<vmem>>, %arg15: memref<1x128xf32, #tpu.memory_space<vmem>>, %arg16: memref<1x1xf32, #tpu.memory_space<vmem>>, %arg17: memref<1x32xf32, #tpu.memory_space<vmem>>, %arg18: memref<1x1xf32, #tpu.memory_space<vmem>>, %arg19: memref<1x32xf32, #tpu.memory_space<vmem>>, %arg20: memref<4x1xf32, #tpu.memory_space<vmem>>, %arg21: memref<1x1xf32, #tpu.memory_space<vmem>>, %arg22: memref<4x32xf32, #tpu.memory_space<vmem>>, %arg23: memref<4x!tpu.dma_semaphore, #tpu.memory_space<semaphore_mem>>) attributes {dimension_semantics = [#tpu.dimension_semantics<arbitrary>], iteration_bounds = array<i64: 1>, scalar_prefetch = 1 : i64, scratch_operands = 2 : i64, tpu.core_type = #tpu.core_type<tc>, window_params = [{}, {pipeline_mode = #tpu.pipeline_mode<synchronous>, transform_indices = @transform_1, window_bounds = array<i64: 4, 32, 128>}, {pipeline_mode = #tpu.pipeline_mode<synchronous>, transform_indices = @transform_2, window_bounds = array<i64: 4, 1, 128>}, {pipeline_mode = #tpu.pipeline_mode<synchronous>, transform_indices = @transform_3, window_bounds = array<i64: 4, 128, 32>}, {pipeline_mode = #tpu.pipeline_mode<synchronous>, transform_indices = @transform_4, window_bounds = array<i64: 4, 1, 32>}, {pipeline_mode = #tpu.pipeline_mode<synchronous>, transform_indices = @transform_5, window_bounds = array<i64: 4, 128, 4>}, {pipeline_mode = #tpu.pipeline_mode<synchronous>, transform_indices = @transform_6, window_bounds = array<i64: 4, 128, 1>}, {pipeline_mode = #tpu.pipeline_mode<synchronous>, transform_indices = @transform_7, window_bounds = array<i64: 4, 4, 128>}, {pipeline_mode = #tpu.pipeline_mode<synchronous>, transform_indices = @transform_8, window_bounds = array<i64: 4, 4, 1>}, {pipeline_mode = #tpu.pipeline_mode<synchronous>, transform_indices = @transform_9, window_bounds = array<i64: 128, 4>}, {pipeline_mode = #tpu.pipeline_mode<synchronous>, transform_indices = @transform_10, window_bounds = array<i64: 128, 1>}, {pipeline_mode = #tpu.pipeline_mode<synchronous>, transform_indices = @transform_11, window_bounds = array<i64: 128, 4>}, {pipeline_mode = #tpu.pipeline_mode<synchronous>, transform_indices = @transform_12, window_bounds = array<i64: 128, 1>}, {pipeline_mode = #tpu.pipeline_mode<synchronous>, transform_indices = @transform_13, window_bounds = array<i64: 1, 128>}, {pipeline_mode = #tpu.pipeline_mode<synchronous>, transform_indices = @transform_14, window_bounds = array<i64: 1, 1>}, {pipeline_mode = #tpu.pipeline_mode<synchronous>, transform_indices = @transform_15, window_bounds = array<i64: 1, 32>}, {pipeline_mode = #tpu.pipeline_mode<synchronous>, transform_indices = @transform_16, window_bounds = array<i64: 1, 1>}, {pipeline_mode = #tpu.pipeline_mode<synchronous>, transform_indices = @transform_17, window_bounds = array<i64: 1, 32>}, {pipeline_mode = #tpu.pipeline_mode<synchronous>, transform_indices = @transform_18, window_bounds = array<i64: 4, 1>}, {pipeline_mode = #tpu.pipeline_mode<synchronous>, transform_indices = @transform_19, window_bounds = array<i64: 1, 1>}]} {
    %c0 = arith.constant 0 : index
    %0 = memref.load %arg1[%c0] : memref<4xi32, #tpu.memory_space<smem>>
    %c0_i32 = arith.constant 0 : i32
    %c0_i32_0 = arith.constant 0 : i32
    %1 = tpu.memref_slice %arg2[%0, %c0_i32_0] : memref<8x32xf32, #tpu.memory_space<any>> -> memref<1x32xf32, #tpu.memory_space<any>>
    %c0_i32_1 = arith.constant 0 : i32
    %c0_i32_2 = arith.constant 0 : i32
    %2 = tpu.memref_slice %arg22[%c0_i32_1, %c0_i32_2] : memref<4x32xf32, #tpu.memory_space<vmem>> -> memref<1x32xf32, #tpu.memory_space<vmem>>
    %3 = tpu.memref_slice %arg23[%c0_i32] : memref<4x!tpu.dma_semaphore, #tpu.memory_space<semaphore_mem>> -> memref<1x!tpu.dma_semaphore, #tpu.memory_space<semaphore_mem>>
    %4 = tpu.memref_squeeze %3 : memref<1x!tpu.dma_semaphore, #tpu.memory_space<semaphore_mem>> -> memref<!tpu.dma_semaphore, #tpu.memory_space<semaphore_mem>>
    tpu.enqueue_dma source(%1 : memref<1x32xf32, #tpu.memory_space<any>>) target(%2 : memref<1x32xf32, #tpu.memory_space<vmem>>) target_semaphore(%4 : memref<!tpu.dma_semaphore, #tpu.memory_space<semaphore_mem>>)
    %c1 = arith.constant 1 : index
    %5 = memref.load %arg1[%c1] : memref<4xi32, #tpu.memory_space<smem>>
    %c1_i32 = arith.constant 1 : i32
    %c0_i32_3 = arith.constant 0 : i32
    %6 = tpu.memref_slice %arg2[%5, %c0_i32_3] : memref<8x32xf32, #tpu.memory_space<any>> -> memref<1x32xf32, #tpu.memory_space<any>>
    %c1_i32_4 = arith.constant 1 : i32
    %c0_i32_5 = arith.constant 0 : i32
    %7 = tpu.memref_slice %arg22[%c1_i32_4, %c0_i32_5] : memref<4x32xf32, #tpu.memory_space<vmem>> -> memref<1x32xf32, #tpu.memory_space<vmem>>
    %8 = tpu.memref_slice %arg23[%c1_i32] : memref<4x!tpu.dma_semaphore, #tpu.memory_space<semaphore_mem>> -> memref<1x!tpu.dma_semaphore, #tpu.memory_space<semaphore_mem>>
    %9 = tpu.memref_squeeze %8 : memref<1x!tpu.dma_semaphore, #tpu.memory_space<semaphore_mem>> -> memref<!tpu.dma_semaphore, #tpu.memory_space<semaphore_mem>>
    tpu.enqueue_dma source(%6 : memref<1x32xf32, #tpu.memory_space<any>>) target(%7 : memref<1x32xf32, #tpu.memory_space<vmem>>) target_semaphore(%9 : memref<!tpu.dma_semaphore, #tpu.memory_space<semaphore_mem>>)
    %c2 = arith.constant 2 : index
    %10 = memref.load %arg1[%c2] : memref<4xi32, #tpu.memory_space<smem>>
    %c2_i32 = arith.constant 2 : i32
    %c0_i32_6 = arith.constant 0 : i32
    %11 = tpu.memref_slice %arg2[%10, %c0_i32_6] : memref<8x32xf32, #tpu.memory_space<any>> -> memref<1x32xf32, #tpu.memory_space<any>>
    %c2_i32_7 = arith.constant 2 : i32
    %c0_i32_8 = arith.constant 0 : i32
    %12 = tpu.memref_slice %arg22[%c2_i32_7, %c0_i32_8] : memref<4x32xf32, #tpu.memory_space<vmem>> -> memref<1x32xf32, #tpu.memory_space<vmem>>
    %13 = tpu.memref_slice %arg23[%c2_i32] : memref<4x!tpu.dma_semaphore, #tpu.memory_space<semaphore_mem>> -> memref<1x!tpu.dma_semaphore, #tpu.memory_space<semaphore_mem>>
    %14 = tpu.memref_squeeze %13 : memref<1x!tpu.dma_semaphore, #tpu.memory_space<semaphore_mem>> -> memref<!tpu.dma_semaphore, #tpu.memory_space<semaphore_mem>>
    tpu.enqueue_dma source(%11 : memref<1x32xf32, #tpu.memory_space<any>>) target(%12 : memref<1x32xf32, #tpu.memory_space<vmem>>) target_semaphore(%14 : memref<!tpu.dma_semaphore, #tpu.memory_space<semaphore_mem>>)
    %c3 = arith.constant 3 : index
    %15 = memref.load %arg1[%c3] : memref<4xi32, #tpu.memory_space<smem>>
    %c3_i32 = arith.constant 3 : i32
    %c0_i32_9 = arith.constant 0 : i32
    %16 = tpu.memref_slice %arg2[%15, %c0_i32_9] : memref<8x32xf32, #tpu.memory_space<any>> -> memref<1x32xf32, #tpu.memory_space<any>>
    %c3_i32_10 = arith.constant 3 : i32
    %c0_i32_11 = arith.constant 0 : i32
    %17 = tpu.memref_slice %arg22[%c3_i32_10, %c0_i32_11] : memref<4x32xf32, #tpu.memory_space<vmem>> -> memref<1x32xf32, #tpu.memory_space<vmem>>
    %18 = tpu.memref_slice %arg23[%c3_i32] : memref<4x!tpu.dma_semaphore, #tpu.memory_space<semaphore_mem>> -> memref<1x!tpu.dma_semaphore, #tpu.memory_space<semaphore_mem>>
    %19 = tpu.memref_squeeze %18 : memref<1x!tpu.dma_semaphore, #tpu.memory_space<semaphore_mem>> -> memref<!tpu.dma_semaphore, #tpu.memory_space<semaphore_mem>>
    tpu.enqueue_dma source(%16 : memref<1x32xf32, #tpu.memory_space<any>>) target(%17 : memref<1x32xf32, #tpu.memory_space<vmem>>) target_semaphore(%19 : memref<!tpu.dma_semaphore, #tpu.memory_space<semaphore_mem>>)
    %c0_i32_12 = arith.constant 0 : i32
    %c0_i32_13 = arith.constant 0 : i32
    %20 = tpu.memref_slice %arg2[%0, %c0_i32_13] : memref<8x32xf32, #tpu.memory_space<any>> -> memref<1x32xf32, #tpu.memory_space<any>>
    %c0_i32_14 = arith.constant 0 : i32
    %c0_i32_15 = arith.constant 0 : i32
    %21 = tpu.memref_slice %arg22[%c0_i32_14, %c0_i32_15] : memref<4x32xf32, #tpu.memory_space<vmem>> -> memref<1x32xf32, #tpu.memory_space<vmem>>
    %22 = tpu.memref_slice %arg23[%c0_i32_12] : memref<4x!tpu.dma_semaphore, #tpu.memory_space<semaphore_mem>> -> memref<1x!tpu.dma_semaphore, #tpu.memory_space<semaphore_mem>>
    %23 = tpu.memref_squeeze %22 : memref<1x!tpu.dma_semaphore, #tpu.memory_space<semaphore_mem>> -> memref<!tpu.dma_semaphore, #tpu.memory_space<semaphore_mem>>
    tpu.wait_dma2 semaphore(%23 : memref<!tpu.dma_semaphore, #tpu.memory_space<semaphore_mem>>) src(%20 : memref<1x32xf32, #tpu.memory_space<any>>) dst(%21 : memref<1x32xf32, #tpu.memory_space<vmem>>)
    %c1_i32_16 = arith.constant 1 : i32
    %c0_i32_17 = arith.constant 0 : i32
    %24 = tpu.memref_slice %arg2[%5, %c0_i32_17] : memref<8x32xf32, #tpu.memory_space<any>> -> memref<1x32xf32, #tpu.memory_space<any>>
    %c1_i32_18 = arith.constant 1 : i32
    %c0_i32_19 = arith.constant 0 : i32
    %25 = tpu.memref_slice %arg22[%c1_i32_18, %c0_i32_19] : memref<4x32xf32, #tpu.memory_space<vmem>> -> memref<1x32xf32, #tpu.memory_space<vmem>>
    %26 = tpu.memref_slice %arg23[%c1_i32_16] : memref<4x!tpu.dma_semaphore, #tpu.memory_space<semaphore_mem>> -> memref<1x!tpu.dma_semaphore, #tpu.memory_space<semaphore_mem>>
    %27 = tpu.memref_squeeze %26 : memref<1x!tpu.dma_semaphore, #tpu.memory_space<semaphore_mem>> -> memref<!tpu.dma_semaphore, #tpu.memory_space<semaphore_mem>>
    tpu.wait_dma2 semaphore(%27 : memref<!tpu.dma_semaphore, #tpu.memory_space<semaphore_mem>>) src(%24 : memref<1x32xf32, #tpu.memory_space<any>>) dst(%25 : memref<1x32xf32, #tpu.memory_space<vmem>>)
    %c2_i32_20 = arith.constant 2 : i32
    %c0_i32_21 = arith.constant 0 : i32
    %28 = tpu.memref_slice %arg2[%10, %c0_i32_21] : memref<8x32xf32, #tpu.memory_space<any>> -> memref<1x32xf32, #tpu.memory_space<any>>
    %c2_i32_22 = arith.constant 2 : i32
    %c0_i32_23 = arith.constant 0 : i32
    %29 = tpu.memref_slice %arg22[%c2_i32_22, %c0_i32_23] : memref<4x32xf32, #tpu.memory_space<vmem>> -> memref<1x32xf32, #tpu.memory_space<vmem>>
    %30 = tpu.memref_slice %arg23[%c2_i32_20] : memref<4x!tpu.dma_semaphore, #tpu.memory_space<semaphore_mem>> -> memref<1x!tpu.dma_semaphore, #tpu.memory_space<semaphore_mem>>
    %31 = tpu.memref_squeeze %30 : memref<1x!tpu.dma_semaphore, #tpu.memory_space<semaphore_mem>> -> memref<!tpu.dma_semaphore, #tpu.memory_space<semaphore_mem>>
    tpu.wait_dma2 semaphore(%31 : memref<!tpu.dma_semaphore, #tpu.memory_space<semaphore_mem>>) src(%28 : memref<1x32xf32, #tpu.memory_space<any>>) dst(%29 : memref<1x32xf32, #tpu.memory_space<vmem>>)
    %c3_i32_24 = arith.constant 3 : i32
    %c0_i32_25 = arith.constant 0 : i32
    %32 = tpu.memref_slice %arg2[%15, %c0_i32_25] : memref<8x32xf32, #tpu.memory_space<any>> -> memref<1x32xf32, #tpu.memory_space<any>>
    %c3_i32_26 = arith.constant 3 : i32
    %c0_i32_27 = arith.constant 0 : i32
    %33 = tpu.memref_slice %arg22[%c3_i32_26, %c0_i32_27] : memref<4x32xf32, #tpu.memory_space<vmem>> -> memref<1x32xf32, #tpu.memory_space<vmem>>
    %34 = tpu.memref_slice %arg23[%c3_i32_24] : memref<4x!tpu.dma_semaphore, #tpu.memory_space<semaphore_mem>> -> memref<1x!tpu.dma_semaphore, #tpu.memory_space<semaphore_mem>>
    %35 = tpu.memref_squeeze %34 : memref<1x!tpu.dma_semaphore, #tpu.memory_space<semaphore_mem>> -> memref<!tpu.dma_semaphore, #tpu.memory_space<semaphore_mem>>
    tpu.wait_dma2 semaphore(%35 : memref<!tpu.dma_semaphore, #tpu.memory_space<semaphore_mem>>) src(%32 : memref<1x32xf32, #tpu.memory_space<any>>) dst(%33 : memref<1x32xf32, #tpu.memory_space<vmem>>)
    %c0_28 = arith.constant 0 : index
    %c0_29 = arith.constant 0 : index
    %36 = vector.load %arg22[%c0_28, %c0_29] : memref<4x32xf32, #tpu.memory_space<vmem>>, vector<4x32xf32>
    %c0_30 = arith.constant 0 : index
    %c0_31 = arith.constant 0 : index
    %c0_32 = arith.constant 0 : index
    %37 = vector.load %arg3[%c0_30, %c0_31, %c0_32] : memref<4x32x128xf32, #tpu.memory_space<vmem>>, vector<1x32x128xf32>
    %38 = vector.shape_cast %37 : vector<1x32x128xf32> to vector<32x128xf32>
    %cst = arith.constant dense<0.000000e+00> : vector<4x128xf32>
    %39 = tpu.matmul %36, %38, %cst {dimension_numbers = #tpu.dot_dimension_numbers<[1], [0], [0], [1], [0, 0, 1, 1], [], []>} : vector<4x32xf32>, vector<32x128xf32>, vector<4x128xf32> -> vector<4x128xf32>
    %c0_33 = arith.constant 0 : index
    %c0_34 = arith.constant 0 : index
    %c0_35 = arith.constant 0 : index
    %40 = vector.load %arg4[%c0_33, %c0_34, %c0_35] : memref<4x1x128xf32, #tpu.memory_space<vmem>>, vector<1x1x128xf32>
    %41 = vector.shape_cast %40 : vector<1x1x128xf32> to vector<1x128xf32>
    %42 = vector.broadcast %41 : vector<1x128xf32> to vector<4x128xf32>
    %43 = arith.addf %39, %42 : vector<4x128xf32>
    %cst_36 = arith.constant 5.000000e-01 : f32
    %44 = vector.broadcast %cst_36 : f32 to vector<4x128xf32>
    %45 = arith.mulf %44, %43 : vector<4x128xf32>
    %cst_37 = arith.constant 0.707106769 : f32
    %46 = vector.broadcast %cst_37 : f32 to vector<4x128xf32>
    %47 = arith.mulf %43, %46 : vector<4x128xf32>
    %48 = math.erf %47 : vector<4x128xf32>
    %cst_38 = arith.constant 1.000000e+00 : f32
    %49 = vector.broadcast %cst_38 : f32 to vector<4x128xf32>
    %50 = arith.addf %49, %48 : vector<4x128xf32>
    %51 = arith.mulf %45, %50 : vector<4x128xf32>
    %c0_39 = arith.constant 0 : index
    %c0_40 = arith.constant 0 : index
    %c0_41 = arith.constant 0 : index
    %52 = vector.load %arg5[%c0_39, %c0_40, %c0_41] : memref<4x128x32xf32, #tpu.memory_space<vmem>>, vector<1x128x32xf32>
    %53 = vector.shape_cast %52 : vector<1x128x32xf32> to vector<128x32xf32>
    %cst_42 = arith.constant dense<0.000000e+00> : vector<4x32xf32>
    %54 = tpu.matmul %51, %53, %cst_42 {dimension_numbers = #tpu.dot_dimension_numbers<[1], [0], [0], [1], [0, 0, 1, 1], [], []>} : vector<4x128xf32>, vector<128x32xf32>, vector<4x32xf32> -> vector<4x32xf32>
    %55 = arith.addf %36, %54 : vector<4x32xf32>
    %c0_43 = arith.constant 0 : index
    %c0_44 = arith.constant 0 : index
    %c0_45 = arith.constant 0 : index
    %56 = vector.load %arg6[%c0_43, %c0_44, %c0_45] : memref<4x1x32xf32, #tpu.memory_space<vmem>>, vector<1x1x32xf32>
    %57 = vector.shape_cast %56 : vector<1x1x32xf32> to vector<1x32xf32>
    %58 = vector.broadcast %57 : vector<1x32xf32> to vector<4x32xf32>
    %59 = arith.addf %55, %58 : vector<4x32xf32>
    %c0_46 = arith.constant 0 : index
    %c0_47 = arith.constant 0 : index
    %c0_48 = arith.constant 0 : index
    %60 = vector.load %arg7[%c0_46, %c0_47, %c0_48] : memref<4x128x4xf32, #tpu.memory_space<vmem>>, vector<1x128x4xf32>
    %61 = vector.shape_cast %60 : vector<1x128x4xf32> to vector<128x4xf32>
    %cst_49 = arith.constant dense<0.000000e+00> : vector<128x32xf32>
    %62 = tpu.matmul %61, %59, %cst_49 {dimension_numbers = #tpu.dot_dimension_numbers<[1], [0], [0], [1], [0, 0, 1, 1], [], []>} : vector<128x4xf32>, vector<4x32xf32>, vector<128x32xf32> -> vector<128x32xf32>
    %c0_50 = arith.constant 0 : index
    %c0_51 = arith.constant 0 : index
    %c0_52 = arith.constant 0 : index
    %63 = vector.load %arg8[%c0_50, %c0_51, %c0_52] : memref<4x128x1xf32, #tpu.memory_space<vmem>>, vector<1x128x1xf32>
    %64 = vector.shape_cast %63 : vector<1x128x1xf32> to vector<128x1xf32>
    %65 = vector.broadcast %64 : vector<128x1xf32> to vector<128x32xf32>
    %66 = arith.addf %62, %65 : vector<128x32xf32>
    %cst_53 = arith.constant 5.000000e-01 : f32
    %67 = vector.broadcast %cst_53 : f32 to vector<128x32xf32>
    %68 = arith.mulf %67, %66 : vector<128x32xf32>
    %cst_54 = arith.constant 0.707106769 : f32
    %69 = vector.broadcast %cst_54 : f32 to vector<128x32xf32>
    %70 = arith.mulf %66, %69 : vector<128x32xf32>
    %71 = math.erf %70 : vector<128x32xf32>
    %cst_55 = arith.constant 1.000000e+00 : f32
    %72 = vector.broadcast %cst_55 : f32 to vector<128x32xf32>
    %73 = arith.addf %72, %71 : vector<128x32xf32>
    %74 = arith.mulf %68, %73 : vector<128x32xf32>
    %c0_56 = arith.constant 0 : index
    %c0_57 = arith.constant 0 : index
    %c0_58 = arith.constant 0 : index
    %75 = vector.load %arg9[%c0_56, %c0_57, %c0_58] : memref<4x4x128xf32, #tpu.memory_space<vmem>>, vector<1x4x128xf32>
    %76 = vector.shape_cast %75 : vector<1x4x128xf32> to vector<4x128xf32>
    %cst_59 = arith.constant dense<0.000000e+00> : vector<4x32xf32>
    %77 = tpu.matmul %76, %74, %cst_59 {dimension_numbers = #tpu.dot_dimension_numbers<[1], [0], [0], [1], [0, 0, 1, 1], [], []>} : vector<4x128xf32>, vector<128x32xf32>, vector<4x32xf32> -> vector<4x32xf32>
    %78 = arith.addf %59, %77 : vector<4x32xf32>
    %c0_60 = arith.constant 0 : index
    %c0_61 = arith.constant 0 : index
    %c0_62 = arith.constant 0 : index
    %79 = vector.load %arg10[%c0_60, %c0_61, %c0_62] : memref<4x4x1xf32, #tpu.memory_space<vmem>>, vector<1x4x1xf32>
    %80 = vector.shape_cast %79 : vector<1x4x1xf32> to vector<4x1xf32>
    %81 = vector.broadcast %80 : vector<4x1xf32> to vector<4x32xf32>
    %82 = arith.addf %78, %81 : vector<4x32xf32>
    %c1_63 = arith.constant 1 : index
    %c0_64 = arith.constant 0 : index
    %c0_65 = arith.constant 0 : index
    %83 = vector.load %arg3[%c1_63, %c0_64, %c0_65] : memref<4x32x128xf32, #tpu.memory_space<vmem>>, vector<1x32x128xf32>
    %84 = vector.shape_cast %83 : vector<1x32x128xf32> to vector<32x128xf32>
    %cst_66 = arith.constant dense<0.000000e+00> : vector<4x128xf32>
    %85 = tpu.matmul %82, %84, %cst_66 {dimension_numbers = #tpu.dot_dimension_numbers<[1], [0], [0], [1], [0, 0, 1, 1], [], []>} : vector<4x32xf32>, vector<32x128xf32>, vector<4x128xf32> -> vector<4x128xf32>
    %c1_67 = arith.constant 1 : index
    %c0_68 = arith.constant 0 : index
    %c0_69 = arith.constant 0 : index
    %86 = vector.load %arg4[%c1_67, %c0_68, %c0_69] : memref<4x1x128xf32, #tpu.memory_space<vmem>>, vector<1x1x128xf32>
    %87 = vector.shape_cast %86 : vector<1x1x128xf32> to vector<1x128xf32>
    %88 = vector.broadcast %87 : vector<1x128xf32> to vector<4x128xf32>
    %89 = arith.addf %85, %88 : vector<4x128xf32>
    %cst_70 = arith.constant 5.000000e-01 : f32
    %90 = vector.broadcast %cst_70 : f32 to vector<4x128xf32>
    %91 = arith.mulf %90, %89 : vector<4x128xf32>
    %cst_71 = arith.constant 0.707106769 : f32
    %92 = vector.broadcast %cst_71 : f32 to vector<4x128xf32>
    %93 = arith.mulf %89, %92 : vector<4x128xf32>
    %94 = math.erf %93 : vector<4x128xf32>
    %cst_72 = arith.constant 1.000000e+00 : f32
    %95 = vector.broadcast %cst_72 : f32 to vector<4x128xf32>
    %96 = arith.addf %95, %94 : vector<4x128xf32>
    %97 = arith.mulf %91, %96 : vector<4x128xf32>
    %c1_73 = arith.constant 1 : index
    %c0_74 = arith.constant 0 : index
    %c0_75 = arith.constant 0 : index
    %98 = vector.load %arg5[%c1_73, %c0_74, %c0_75] : memref<4x128x32xf32, #tpu.memory_space<vmem>>, vector<1x128x32xf32>
    %99 = vector.shape_cast %98 : vector<1x128x32xf32> to vector<128x32xf32>
    %cst_76 = arith.constant dense<0.000000e+00> : vector<4x32xf32>
    %100 = tpu.matmul %97, %99, %cst_76 {dimension_numbers = #tpu.dot_dimension_numbers<[1], [0], [0], [1], [0, 0, 1, 1], [], []>} : vector<4x128xf32>, vector<128x32xf32>, vector<4x32xf32> -> vector<4x32xf32>
    %101 = arith.addf %82, %100 : vector<4x32xf32>
    %c1_77 = arith.constant 1 : index
    %c0_78 = arith.constant 0 : index
    %c0_79 = arith.constant 0 : index
    %102 = vector.load %arg6[%c1_77, %c0_78, %c0_79] : memref<4x1x32xf32, #tpu.memory_space<vmem>>, vector<1x1x32xf32>
    %103 = vector.shape_cast %102 : vector<1x1x32xf32> to vector<1x32xf32>
    %104 = vector.broadcast %103 : vector<1x32xf32> to vector<4x32xf32>
    %105 = arith.addf %101, %104 : vector<4x32xf32>
    %c1_80 = arith.constant 1 : index
    %c0_81 = arith.constant 0 : index
    %c0_82 = arith.constant 0 : index
    %106 = vector.load %arg7[%c1_80, %c0_81, %c0_82] : memref<4x128x4xf32, #tpu.memory_space<vmem>>, vector<1x128x4xf32>
    %107 = vector.shape_cast %106 : vector<1x128x4xf32> to vector<128x4xf32>
    %cst_83 = arith.constant dense<0.000000e+00> : vector<128x32xf32>
    %108 = tpu.matmul %107, %105, %cst_83 {dimension_numbers = #tpu.dot_dimension_numbers<[1], [0], [0], [1], [0, 0, 1, 1], [], []>} : vector<128x4xf32>, vector<4x32xf32>, vector<128x32xf32> -> vector<128x32xf32>
    %c1_84 = arith.constant 1 : index
    %c0_85 = arith.constant 0 : index
    %c0_86 = arith.constant 0 : index
    %109 = vector.load %arg8[%c1_84, %c0_85, %c0_86] : memref<4x128x1xf32, #tpu.memory_space<vmem>>, vector<1x128x1xf32>
    %110 = vector.shape_cast %109 : vector<1x128x1xf32> to vector<128x1xf32>
    %111 = vector.broadcast %110 : vector<128x1xf32> to vector<128x32xf32>
    %112 = arith.addf %108, %111 : vector<128x32xf32>
    %cst_87 = arith.constant 5.000000e-01 : f32
    %113 = vector.broadcast %cst_87 : f32 to vector<128x32xf32>
    %114 = arith.mulf %113, %112 : vector<128x32xf32>
    %cst_88 = arith.constant 0.707106769 : f32
    %115 = vector.broadcast %cst_88 : f32 to vector<128x32xf32>
    %116 = arith.mulf %112, %115 : vector<128x32xf32>
    %117 = math.erf %116 : vector<128x32xf32>
    %cst_89 = arith.constant 1.000000e+00 : f32
    %118 = vector.broadcast %cst_89 : f32 to vector<128x32xf32>
    %119 = arith.addf %118, %117 : vector<128x32xf32>
    %120 = arith.mulf %114, %119 : vector<128x32xf32>
    %c1_90 = arith.constant 1 : index
    %c0_91 = arith.constant 0 : index
    %c0_92 = arith.constant 0 : index
    %121 = vector.load %arg9[%c1_90, %c0_91, %c0_92] : memref<4x4x128xf32, #tpu.memory_space<vmem>>, vector<1x4x128xf32>
    %122 = vector.shape_cast %121 : vector<1x4x128xf32> to vector<4x128xf32>
    %cst_93 = arith.constant dense<0.000000e+00> : vector<4x32xf32>
    %123 = tpu.matmul %122, %120, %cst_93 {dimension_numbers = #tpu.dot_dimension_numbers<[1], [0], [0], [1], [0, 0, 1, 1], [], []>} : vector<4x128xf32>, vector<128x32xf32>, vector<4x32xf32> -> vector<4x32xf32>
    %124 = arith.addf %105, %123 : vector<4x32xf32>
    %c1_94 = arith.constant 1 : index
    %c0_95 = arith.constant 0 : index
    %c0_96 = arith.constant 0 : index
    %125 = vector.load %arg10[%c1_94, %c0_95, %c0_96] : memref<4x4x1xf32, #tpu.memory_space<vmem>>, vector<1x4x1xf32>
    %126 = vector.shape_cast %125 : vector<1x4x1xf32> to vector<4x1xf32>
    %127 = vector.broadcast %126 : vector<4x1xf32> to vector<4x32xf32>
    %128 = arith.addf %124, %127 : vector<4x32xf32>
    %c2_97 = arith.constant 2 : index
    %c0_98 = arith.constant 0 : index
    %c0_99 = arith.constant 0 : index
    %129 = vector.load %arg3[%c2_97, %c0_98, %c0_99] : memref<4x32x128xf32, #tpu.memory_space<vmem>>, vector<1x32x128xf32>
    %130 = vector.shape_cast %129 : vector<1x32x128xf32> to vector<32x128xf32>
    %cst_100 = arith.constant dense<0.000000e+00> : vector<4x128xf32>
    %131 = tpu.matmul %128, %130, %cst_100 {dimension_numbers = #tpu.dot_dimension_numbers<[1], [0], [0], [1], [0, 0, 1, 1], [], []>} : vector<4x32xf32>, vector<32x128xf32>, vector<4x128xf32> -> vector<4x128xf32>
    %c2_101 = arith.constant 2 : index
    %c0_102 = arith.constant 0 : index
    %c0_103 = arith.constant 0 : index
    %132 = vector.load %arg4[%c2_101, %c0_102, %c0_103] : memref<4x1x128xf32, #tpu.memory_space<vmem>>, vector<1x1x128xf32>
    %133 = vector.shape_cast %132 : vector<1x1x128xf32> to vector<1x128xf32>
    %134 = vector.broadcast %133 : vector<1x128xf32> to vector<4x128xf32>
    %135 = arith.addf %131, %134 : vector<4x128xf32>
    %cst_104 = arith.constant 5.000000e-01 : f32
    %136 = vector.broadcast %cst_104 : f32 to vector<4x128xf32>
    %137 = arith.mulf %136, %135 : vector<4x128xf32>
    %cst_105 = arith.constant 0.707106769 : f32
    %138 = vector.broadcast %cst_105 : f32 to vector<4x128xf32>
    %139 = arith.mulf %135, %138 : vector<4x128xf32>
    %140 = math.erf %139 : vector<4x128xf32>
    %cst_106 = arith.constant 1.000000e+00 : f32
    %141 = vector.broadcast %cst_106 : f32 to vector<4x128xf32>
    %142 = arith.addf %141, %140 : vector<4x128xf32>
    %143 = arith.mulf %137, %142 : vector<4x128xf32>
    %c2_107 = arith.constant 2 : index
    %c0_108 = arith.constant 0 : index
    %c0_109 = arith.constant 0 : index
    %144 = vector.load %arg5[%c2_107, %c0_108, %c0_109] : memref<4x128x32xf32, #tpu.memory_space<vmem>>, vector<1x128x32xf32>
    %145 = vector.shape_cast %144 : vector<1x128x32xf32> to vector<128x32xf32>
    %cst_110 = arith.constant dense<0.000000e+00> : vector<4x32xf32>
    %146 = tpu.matmul %143, %145, %cst_110 {dimension_numbers = #tpu.dot_dimension_numbers<[1], [0], [0], [1], [0, 0, 1, 1], [], []>} : vector<4x128xf32>, vector<128x32xf32>, vector<4x32xf32> -> vector<4x32xf32>
    %147 = arith.addf %128, %146 : vector<4x32xf32>
    %c2_111 = arith.constant 2 : index
    %c0_112 = arith.constant 0 : index
    %c0_113 = arith.constant 0 : index
    %148 = vector.load %arg6[%c2_111, %c0_112, %c0_113] : memref<4x1x32xf32, #tpu.memory_space<vmem>>, vector<1x1x32xf32>
    %149 = vector.shape_cast %148 : vector<1x1x32xf32> to vector<1x32xf32>
    %150 = vector.broadcast %149 : vector<1x32xf32> to vector<4x32xf32>
    %151 = arith.addf %147, %150 : vector<4x32xf32>
    %c2_114 = arith.constant 2 : index
    %c0_115 = arith.constant 0 : index
    %c0_116 = arith.constant 0 : index
    %152 = vector.load %arg7[%c2_114, %c0_115, %c0_116] : memref<4x128x4xf32, #tpu.memory_space<vmem>>, vector<1x128x4xf32>
    %153 = vector.shape_cast %152 : vector<1x128x4xf32> to vector<128x4xf32>
    %cst_117 = arith.constant dense<0.000000e+00> : vector<128x32xf32>
    %154 = tpu.matmul %153, %151, %cst_117 {dimension_numbers = #tpu.dot_dimension_numbers<[1], [0], [0], [1], [0, 0, 1, 1], [], []>} : vector<128x4xf32>, vector<4x32xf32>, vector<128x32xf32> -> vector<128x32xf32>
    %c2_118 = arith.constant 2 : index
    %c0_119 = arith.constant 0 : index
    %c0_120 = arith.constant 0 : index
    %155 = vector.load %arg8[%c2_118, %c0_119, %c0_120] : memref<4x128x1xf32, #tpu.memory_space<vmem>>, vector<1x128x1xf32>
    %156 = vector.shape_cast %155 : vector<1x128x1xf32> to vector<128x1xf32>
    %157 = vector.broadcast %156 : vector<128x1xf32> to vector<128x32xf32>
    %158 = arith.addf %154, %157 : vector<128x32xf32>
    %cst_121 = arith.constant 5.000000e-01 : f32
    %159 = vector.broadcast %cst_121 : f32 to vector<128x32xf32>
    %160 = arith.mulf %159, %158 : vector<128x32xf32>
    %cst_122 = arith.constant 0.707106769 : f32
    %161 = vector.broadcast %cst_122 : f32 to vector<128x32xf32>
    %162 = arith.mulf %158, %161 : vector<128x32xf32>
    %163 = math.erf %162 : vector<128x32xf32>
    %cst_123 = arith.constant 1.000000e+00 : f32
    %164 = vector.broadcast %cst_123 : f32 to vector<128x32xf32>
    %165 = arith.addf %164, %163 : vector<128x32xf32>
    %166 = arith.mulf %160, %165 : vector<128x32xf32>
    %c2_124 = arith.constant 2 : index
    %c0_125 = arith.constant 0 : index
    %c0_126 = arith.constant 0 : index
    %167 = vector.load %arg9[%c2_124, %c0_125, %c0_126] : memref<4x4x128xf32, #tpu.memory_space<vmem>>, vector<1x4x128xf32>
    %168 = vector.shape_cast %167 : vector<1x4x128xf32> to vector<4x128xf32>
    %cst_127 = arith.constant dense<0.000000e+00> : vector<4x32xf32>
    %169 = tpu.matmul %168, %166, %cst_127 {dimension_numbers = #tpu.dot_dimension_numbers<[1], [0], [0], [1], [0, 0, 1, 1], [], []>} : vector<4x128xf32>, vector<128x32xf32>, vector<4x32xf32> -> vector<4x32xf32>
    %170 = arith.addf %151, %169 : vector<4x32xf32>
    %c2_128 = arith.constant 2 : index
    %c0_129 = arith.constant 0 : index
    %c0_130 = arith.constant 0 : index
    %171 = vector.load %arg10[%c2_128, %c0_129, %c0_130] : memref<4x4x1xf32, #tpu.memory_space<vmem>>, vector<1x4x1xf32>
    %172 = vector.shape_cast %171 : vector<1x4x1xf32> to vector<4x1xf32>
    %173 = vector.broadcast %172 : vector<4x1xf32> to vector<4x32xf32>
    %174 = arith.addf %170, %173 : vector<4x32xf32>
    %c3_131 = arith.constant 3 : index
    %c0_132 = arith.constant 0 : index
    %c0_133 = arith.constant 0 : index
    %175 = vector.load %arg3[%c3_131, %c0_132, %c0_133] : memref<4x32x128xf32, #tpu.memory_space<vmem>>, vector<1x32x128xf32>
    %176 = vector.shape_cast %175 : vector<1x32x128xf32> to vector<32x128xf32>
    %cst_134 = arith.constant dense<0.000000e+00> : vector<4x128xf32>
    %177 = tpu.matmul %174, %176, %cst_134 {dimension_numbers = #tpu.dot_dimension_numbers<[1], [0], [0], [1], [0, 0, 1, 1], [], []>} : vector<4x32xf32>, vector<32x128xf32>, vector<4x128xf32> -> vector<4x128xf32>
    %c3_135 = arith.constant 3 : index
    %c0_136 = arith.constant 0 : index
    %c0_137 = arith.constant 0 : index
    %178 = vector.load %arg4[%c3_135, %c0_136, %c0_137] : memref<4x1x128xf32, #tpu.memory_space<vmem>>, vector<1x1x128xf32>
    %179 = vector.shape_cast %178 : vector<1x1x128xf32> to vector<1x128xf32>
    %180 = vector.broadcast %179 : vector<1x128xf32> to vector<4x128xf32>
    %181 = arith.addf %177, %180 : vector<4x128xf32>
    %cst_138 = arith.constant 5.000000e-01 : f32
    %182 = vector.broadcast %cst_138 : f32 to vector<4x128xf32>
    %183 = arith.mulf %182, %181 : vector<4x128xf32>
    %cst_139 = arith.constant 0.707106769 : f32
    %184 = vector.broadcast %cst_139 : f32 to vector<4x128xf32>
    %185 = arith.mulf %181, %184 : vector<4x128xf32>
    %186 = math.erf %185 : vector<4x128xf32>
    %cst_140 = arith.constant 1.000000e+00 : f32
    %187 = vector.broadcast %cst_140 : f32 to vector<4x128xf32>
    %188 = arith.addf %187, %186 : vector<4x128xf32>
    %189 = arith.mulf %183, %188 : vector<4x128xf32>
    %c3_141 = arith.constant 3 : index
    %c0_142 = arith.constant 0 : index
    %c0_143 = arith.constant 0 : index
    %190 = vector.load %arg5[%c3_141, %c0_142, %c0_143] : memref<4x128x32xf32, #tpu.memory_space<vmem>>, vector<1x128x32xf32>
    %191 = vector.shape_cast %190 : vector<1x128x32xf32> to vector<128x32xf32>
    %cst_144 = arith.constant dense<0.000000e+00> : vector<4x32xf32>
    %192 = tpu.matmul %189, %191, %cst_144 {dimension_numbers = #tpu.dot_dimension_numbers<[1], [0], [0], [1], [0, 0, 1, 1], [], []>} : vector<4x128xf32>, vector<128x32xf32>, vector<4x32xf32> -> vector<4x32xf32>
    %193 = arith.addf %174, %192 : vector<4x32xf32>
    %c3_145 = arith.constant 3 : index
    %c0_146 = arith.constant 0 : index
    %c0_147 = arith.constant 0 : index
    %194 = vector.load %arg6[%c3_145, %c0_146, %c0_147] : memref<4x1x32xf32, #tpu.memory_space<vmem>>, vector<1x1x32xf32>
    %195 = vector.shape_cast %194 : vector<1x1x32xf32> to vector<1x32xf32>
    %196 = vector.broadcast %195 : vector<1x32xf32> to vector<4x32xf32>
    %197 = arith.addf %193, %196 : vector<4x32xf32>
    %c3_148 = arith.constant 3 : index
    %c0_149 = arith.constant 0 : index
    %c0_150 = arith.constant 0 : index
    %198 = vector.load %arg7[%c3_148, %c0_149, %c0_150] : memref<4x128x4xf32, #tpu.memory_space<vmem>>, vector<1x128x4xf32>
    %199 = vector.shape_cast %198 : vector<1x128x4xf32> to vector<128x4xf32>
    %cst_151 = arith.constant dense<0.000000e+00> : vector<128x32xf32>
    %200 = tpu.matmul %199, %197, %cst_151 {dimension_numbers = #tpu.dot_dimension_numbers<[1], [0], [0], [1], [0, 0, 1, 1], [], []>} : vector<128x4xf32>, vector<4x32xf32>, vector<128x32xf32> -> vector<128x32xf32>
    %c3_152 = arith.constant 3 : index
    %c0_153 = arith.constant 0 : index
    %c0_154 = arith.constant 0 : index
    %201 = vector.load %arg8[%c3_152, %c0_153, %c0_154] : memref<4x128x1xf32, #tpu.memory_space<vmem>>, vector<1x128x1xf32>
    %202 = vector.shape_cast %201 : vector<1x128x1xf32> to vector<128x1xf32>
    %203 = vector.broadcast %202 : vector<128x1xf32> to vector<128x32xf32>
    %204 = arith.addf %200, %203 : vector<128x32xf32>
    %cst_155 = arith.constant 5.000000e-01 : f32
    %205 = vector.broadcast %cst_155 : f32 to vector<128x32xf32>
    %206 = arith.mulf %205, %204 : vector<128x32xf32>
    %cst_156 = arith.constant 0.707106769 : f32
    %207 = vector.broadcast %cst_156 : f32 to vector<128x32xf32>
    %208 = arith.mulf %204, %207 : vector<128x32xf32>
    %209 = math.erf %208 : vector<128x32xf32>
    %cst_157 = arith.constant 1.000000e+00 : f32
    %210 = vector.broadcast %cst_157 : f32 to vector<128x32xf32>
    %211 = arith.addf %210, %209 : vector<128x32xf32>
    %212 = arith.mulf %206, %211 : vector<128x32xf32>
    %c3_158 = arith.constant 3 : index
    %c0_159 = arith.constant 0 : index
    %c0_160 = arith.constant 0 : index
    %213 = vector.load %arg9[%c3_158, %c0_159, %c0_160] : memref<4x4x128xf32, #tpu.memory_space<vmem>>, vector<1x4x128xf32>
    %214 = vector.shape_cast %213 : vector<1x4x128xf32> to vector<4x128xf32>
    %cst_161 = arith.constant dense<0.000000e+00> : vector<4x32xf32>
    %215 = tpu.matmul %214, %212, %cst_161 {dimension_numbers = #tpu.dot_dimension_numbers<[1], [0], [0], [1], [0, 0, 1, 1], [], []>} : vector<4x128xf32>, vector<128x32xf32>, vector<4x32xf32> -> vector<4x32xf32>
    %216 = arith.addf %197, %215 : vector<4x32xf32>
    %c3_162 = arith.constant 3 : index
    %c0_163 = arith.constant 0 : index
    %c0_164 = arith.constant 0 : index
    %217 = vector.load %arg10[%c3_162, %c0_163, %c0_164] : memref<4x4x1xf32, #tpu.memory_space<vmem>>, vector<1x4x1xf32>
    %218 = vector.shape_cast %217 : vector<1x4x1xf32> to vector<4x1xf32>
    %219 = vector.broadcast %218 : vector<4x1xf32> to vector<4x32xf32>
    %220 = arith.addf %216, %219 : vector<4x32xf32>
    %c0_165 = arith.constant 0 : index
    %c0_166 = arith.constant 0 : index
    %221 = vector.load %arg11[%c0_165, %c0_166] : memref<128x4xf32, #tpu.memory_space<vmem>>, vector<128x4xf32>
    %cst_167 = arith.constant dense<0.000000e+00> : vector<128x32xf32>
    %222 = tpu.matmul %221, %220, %cst_167 {dimension_numbers = #tpu.dot_dimension_numbers<[1], [0], [0], [1], [0, 0, 1, 1], [], []>} : vector<128x4xf32>, vector<4x32xf32>, vector<128x32xf32> -> vector<128x32xf32>
    %c0_168 = arith.constant 0 : index
    %c0_169 = arith.constant 0 : index
    %223 = vector.load %arg12[%c0_168, %c0_169] : memref<128x1xf32, #tpu.memory_space<vmem>>, vector<128x1xf32>
    %224 = vector.broadcast %223 : vector<128x1xf32> to vector<128x32xf32>
    %225 = arith.addf %222, %224 : vector<128x32xf32>
    %226 = math.tanh %225 : vector<128x32xf32>
    %c0_170 = arith.constant 0 : index
    %c0_171 = arith.constant 0 : index
    %227 = vector.load %arg13[%c0_170, %c0_171] : memref<128x4xf32, #tpu.memory_space<vmem>>, vector<128x4xf32>
    %cst_172 = arith.constant dense<0.000000e+00> : vector<128x32xf32>
    %228 = tpu.matmul %227, %220, %cst_172 {dimension_numbers = #tpu.dot_dimension_numbers<[1], [0], [0], [1], [0, 0, 1, 1], [], []>} : vector<128x4xf32>, vector<4x32xf32>, vector<128x32xf32> -> vector<128x32xf32>
    %c0_173 = arith.constant 0 : index
    %c0_174 = arith.constant 0 : index
    %229 = vector.load %arg14[%c0_173, %c0_174] : memref<128x1xf32, #tpu.memory_space<vmem>>, vector<128x1xf32>
    %230 = vector.broadcast %229 : vector<128x1xf32> to vector<128x32xf32>
    %231 = arith.addf %228, %230 : vector<128x32xf32>
    %cst_175 = arith.constant 0.000000e+00 : f32
    %232 = vector.broadcast %cst_175 : f32 to vector<128x32xf32>
    %233 = arith.subf %232, %231 : vector<128x32xf32>
    %234 = math.exp %233 : vector<128x32xf32>
    %cst_176 = arith.constant 1.000000e+00 : f32
    %235 = vector.broadcast %cst_176 : f32 to vector<128x32xf32>
    %236 = arith.addf %235, %234 : vector<128x32xf32>
    %cst_177 = arith.constant 1.000000e+00 : f32
    %237 = vector.broadcast %cst_177 : f32 to vector<128x32xf32>
    %238 = arith.divf %237, %236 : vector<128x32xf32>
    %c0_178 = arith.constant 0 : index
    %c0_179 = arith.constant 0 : index
    %239 = vector.load %arg15[%c0_178, %c0_179] : memref<1x128xf32, #tpu.memory_space<vmem>>, vector<1x128xf32>
    %240 = arith.mulf %226, %238 : vector<128x32xf32>
    %cst_180 = arith.constant dense<0.000000e+00> : vector<1x32xf32>
    %241 = tpu.matmul %239, %240, %cst_180 {dimension_numbers = #tpu.dot_dimension_numbers<[1], [0], [0], [1], [0, 0, 1, 1], [], []>} : vector<1x128xf32>, vector<128x32xf32>, vector<1x32xf32> -> vector<1x32xf32>
    %c0_181 = arith.constant 0 : index
    %c0_182 = arith.constant 0 : index
    %242 = vector.load %arg16[%c0_181, %c0_182] : memref<1x1xf32, #tpu.memory_space<vmem>>, vector<1x1xf32>
    %243 = vector.broadcast %242 : vector<1x1xf32> to vector<1x32xf32>
    %244 = arith.addf %241, %243 : vector<1x32xf32>
    %245 = tpu.iota {dimensions = array<i32: 0>} : vector<32x32xi32>
    %246 = tpu.iota {dimensions = array<i32: 1>} : vector<32x32xi32>
    %247 = arith.cmpi eq, %245, %246 : vector<32x32xi32>
    %cst_183 = arith.constant 0.000000e+00 : f32
    %248 = vector.shape_cast %244 : vector<1x32xf32> to vector<1x32xf32>
    %249 = vector.broadcast %248 : vector<1x32xf32> to vector<32x32xf32>
    %250 = vector.broadcast %cst_183 : f32 to vector<32x32xf32>
    %251 = arith.select %247, %249, %250 : vector<32x32xi1>, vector<32x32xf32>
    %cst_184 = arith.constant dense<0.000000e+00> : vector<32xf32>
    %252 = vector.multi_reduction <add>, %251, %cst_184 [1] : vector<32x32xf32> to vector<32xf32>
    %253 = vector.shape_cast %252 : vector<32xf32> to vector<32x1xf32>
    %254 = vector.broadcast %244 : vector<1x32xf32> to vector<32x32xf32>
    %255 = vector.broadcast %253 : vector<32x1xf32> to vector<32x32xf32>
    %256 = arith.cmpf olt, %254, %255 : vector<32x32xf32>
    %257 = vector.broadcast %244 : vector<1x32xf32> to vector<32x32xf32>
    %258 = vector.broadcast %253 : vector<32x1xf32> to vector<32x32xf32>
    %259 = arith.cmpf oeq, %257, %258 : vector<32x32xf32>
    %260 = arith.cmpi slt, %246, %245 : vector<32x32xi32>
    %261 = arith.andi %259, %260 : vector<32x32xi1>
    %262 = arith.ori %256, %261 : vector<32x32xi1>
    %263 = arith.extui %262 : vector<32x32xi1> to vector<32x32xi32>
    %264 = arith.sitofp %263 : vector<32x32xi32> to vector<32x32xf32>
    %cst_185 = arith.constant dense<0.000000e+00> : vector<32xf32>
    %265 = vector.multi_reduction <add>, %264, %cst_185 [1] : vector<32x32xf32> to vector<32xf32>
    %266 = vector.shape_cast %265 : vector<32xf32> to vector<32x1xf32>
    %cst_186 = arith.constant 2.300000e+01 : f32
    %267 = vector.broadcast %cst_186 : f32 to vector<32x1xf32>
    %268 = arith.cmpf oeq, %266, %267 : vector<32x1xf32>
    %cst_187 = arith.constant 0.000000e+00 : f32
    %269 = vector.broadcast %cst_187 : f32 to vector<32x1xf32>
    %270 = arith.select %268, %253, %269 : vector<32x1xi1>, vector<32x1xf32>
    %cst_188 = arith.constant dense<0.000000e+00> : vector<1xf32>
    %271 = vector.multi_reduction <add>, %270, %cst_188 [0] : vector<32x1xf32> to vector<1xf32>
    %272 = vector.shape_cast %271 : vector<1xf32> to vector<1x1xf32>
    %cst_189 = arith.constant 2.400000e+01 : f32
    %273 = vector.broadcast %cst_189 : f32 to vector<32x1xf32>
    %274 = arith.cmpf oeq, %266, %273 : vector<32x1xf32>
    %cst_190 = arith.constant 0.000000e+00 : f32
    %275 = vector.broadcast %cst_190 : f32 to vector<32x1xf32>
    %276 = arith.select %274, %253, %275 : vector<32x1xi1>, vector<32x1xf32>
    %cst_191 = arith.constant dense<0.000000e+00> : vector<1xf32>
    %277 = vector.multi_reduction <add>, %276, %cst_191 [0] : vector<32x1xf32> to vector<1xf32>
    %278 = vector.shape_cast %277 : vector<1xf32> to vector<1x1xf32>
    %279 = arith.subf %278, %272 : vector<1x1xf32>
    %cst_192 = arith.constant 2.500000e-01 : f32
    %280 = vector.broadcast %cst_192 : f32 to vector<1x1xf32>
    %281 = arith.mulf %280, %279 : vector<1x1xf32>
    %282 = arith.addf %272, %281 : vector<1x1xf32>
    %cst_193 = arith.constant dense<0.000000e+00> : vector<1xf32>
    %283 = vector.multi_reduction <add>, %244, %cst_193 [1] : vector<1x32xf32> to vector<1xf32>
    %284 = vector.shape_cast %283 : vector<1xf32> to vector<1x1xf32>
    %cst_194 = arith.constant 3.125000e-02 : f32
    %285 = vector.broadcast %cst_194 : f32 to vector<1x1xf32>
    %286 = arith.mulf %284, %285 : vector<1x1xf32>
    %287 = vector.broadcast %286 : vector<1x1xf32> to vector<1x32xf32>
    %288 = arith.subf %244, %287 : vector<1x32xf32>
    %289 = arith.mulf %288, %288 : vector<1x32xf32>
    %cst_195 = arith.constant dense<0.000000e+00> : vector<1xf32>
    %290 = vector.multi_reduction <add>, %289, %cst_195 [1] : vector<1x32xf32> to vector<1xf32>
    %291 = vector.shape_cast %290 : vector<1xf32> to vector<1x1xf32>
    %cst_196 = arith.constant 0.0322580636 : f32
    %292 = vector.broadcast %cst_196 : f32 to vector<1x1xf32>
    %293 = arith.mulf %291, %292 : vector<1x1xf32>
    %294 = vector.broadcast %282 : vector<1x1xf32> to vector<1x32xf32>
    %295 = arith.subf %244, %294 : vector<1x32xf32>
    %296 = math.sqrt %293 : vector<1x1xf32>
    %cst_197 = arith.constant 9.99999997E-7 : f32
    %297 = vector.broadcast %cst_197 : f32 to vector<1x1xf32>
    %298 = arith.addf %296, %297 : vector<1x1xf32>
    %299 = vector.broadcast %298 : vector<1x1xf32> to vector<1x32xf32>
    %300 = arith.divf %295, %299 : vector<1x32xf32>
    %cst_198 = arith.constant 3.000000e+00 : f32
    %301 = vector.broadcast %cst_198 : f32 to vector<1x32xf32>
    %302 = arith.mulf %300, %301 : vector<1x32xf32>
    %cst_199 = arith.constant 0.000000e+00 : f32
    %303 = vector.broadcast %cst_199 : f32 to vector<1x32xf32>
    %304 = arith.subf %303, %302 : vector<1x32xf32>
    %305 = math.exp %304 : vector<1x32xf32>
    %cst_200 = arith.constant 1.000000e+00 : f32
    %306 = vector.broadcast %cst_200 : f32 to vector<1x32xf32>
    %307 = arith.addf %306, %305 : vector<1x32xf32>
    %cst_201 = arith.constant 1.000000e+00 : f32
    %308 = vector.broadcast %cst_201 : f32 to vector<1x32xf32>
    %309 = arith.divf %308, %307 : vector<1x32xf32>
    %c0_202 = arith.constant 0 : index
    %c0_203 = arith.constant 0 : index
    %310 = vector.load %arg19[%c0_202, %c0_203] : memref<1x32xf32, #tpu.memory_space<vmem>>, vector<1x32xf32>
    tpu.vector_store %arg19[%c0_202, %c0_203], %309 {strides = array<i32>} : memref<1x32xf32, #tpu.memory_space<vmem>>, vector<1x32xf32>,
    %311 = vector.broadcast %309 : vector<1x32xf32> to vector<4x32xf32>
    %312 = arith.mulf %36, %311 : vector<4x32xf32>
    %c0_204 = arith.constant 0 : index
    %c0_205 = arith.constant 0 : index
    %313 = vector.load %arg17[%c0_204, %c0_205] : memref<1x32xf32, #tpu.memory_space<vmem>>, vector<1x32xf32>
    %314 = vector.broadcast %313 : vector<1x32xf32> to vector<4x32xf32>
    %315 = arith.mulf %312, %314 : vector<4x32xf32>
    %cst_206 = arith.constant dense<0.000000e+00> : vector<4xf32>
    %316 = vector.multi_reduction <add>, %315, %cst_206 [1] : vector<4x32xf32> to vector<4xf32>
    %317 = vector.shape_cast %316 : vector<4xf32> to vector<4x1xf32>
    %c0_207 = arith.constant 0 : index
    %c0_208 = arith.constant 0 : index
    %318 = vector.load %arg18[%c0_207, %c0_208] : memref<1x1xf32, #tpu.memory_space<vmem>>, vector<1x1xf32>
    %319 = vector.broadcast %318 : vector<1x1xf32> to vector<4x1xf32>
    %320 = arith.addf %317, %319 : vector<4x1xf32>
    %c0_209 = arith.constant 0 : index
    %c0_210 = arith.constant 0 : index
    %321 = vector.load %arg20[%c0_209, %c0_210] : memref<4x1xf32, #tpu.memory_space<vmem>>, vector<4x1xf32>
    tpu.vector_store %arg20[%c0_209, %c0_210], %320 {strides = array<i32>} : memref<4x1xf32, #tpu.memory_space<vmem>>, vector<4x1xf32>,
    %cst_211 = arith.constant dense<0.000000e+00> : vector<1xf32>
    %322 = vector.multi_reduction <add>, %320, %cst_211 [0] : vector<4x1xf32> to vector<1xf32>
    %323 = vector.shape_cast %322 : vector<1xf32> to vector<1x1xf32>
    %cst_212 = arith.constant 0.000000e+00 : f32
    %324 = vector.broadcast %cst_212 : f32 to vector<1x1xf32>
    %325 = arith.subf %324, %323 : vector<1x1xf32>
    %326 = math.exp %325 : vector<1x1xf32>
    %cst_213 = arith.constant 1.000000e+00 : f32
    %327 = vector.broadcast %cst_213 : f32 to vector<1x1xf32>
    %328 = arith.addf %327, %326 : vector<1x1xf32>
    %cst_214 = arith.constant 1.000000e+00 : f32
    %329 = vector.broadcast %cst_214 : f32 to vector<1x1xf32>
    %330 = arith.divf %329, %328 : vector<1x1xf32>
    %c0_215 = arith.constant 0 : index
    %c0_216 = arith.constant 0 : index
    %331 = vector.load %arg21[%c0_215, %c0_216] : memref<1x1xf32, #tpu.memory_space<vmem>>, vector<1x1xf32>
    tpu.vector_store %arg21[%c0_215, %c0_216], %330 {strides = array<i32>} : memref<1x1xf32, #tpu.memory_space<vmem>>, vector<1x1xf32>,
    return
  }
  func.func @transform_1(%arg0: i32, %arg1: memref<4xi32, #tpu.memory_space<smem>>) -> (i32, i32, i32) {
    %c0_i32 = arith.constant 0 : i32
    %c0_i32_0 = arith.constant 0 : i32
    %c0_i32_1 = arith.constant 0 : i32
    %c0_i32_2 = arith.constant 0 : i32
    return %c0_i32, %c0_i32_0, %c0_i32_1 : i32, i32, i32
  }
  func.func @transform_2(%arg0: i32, %arg1: memref<4xi32, #tpu.memory_space<smem>>) -> (i32, i32, i32) {
    %c0_i32 = arith.constant 0 : i32
    %c0_i32_0 = arith.constant 0 : i32
    %c0_i32_1 = arith.constant 0 : i32
    %c0_i32_2 = arith.constant 0 : i32
    return %c0_i32, %c0_i32_0, %c0_i32_1 : i32, i32, i32
  }
  func.func @transform_3(%arg0: i32, %arg1: memref<4xi32, #tpu.memory_space<smem>>) -> (i32, i32, i32) {
    %c0_i32 = arith.constant 0 : i32
    %c0_i32_0 = arith.constant 0 : i32
    %c0_i32_1 = arith.constant 0 : i32
    %c0_i32_2 = arith.constant 0 : i32
    return %c0_i32, %c0_i32_0, %c0_i32_1 : i32, i32, i32
  }
  func.func @transform_4(%arg0: i32, %arg1: memref<4xi32, #tpu.memory_space<smem>>) -> (i32, i32, i32) {
    %c0_i32 = arith.constant 0 : i32
    %c0_i32_0 = arith.constant 0 : i32
    %c0_i32_1 = arith.constant 0 : i32
    %c0_i32_2 = arith.constant 0 : i32
    return %c0_i32, %c0_i32_0, %c0_i32_1 : i32, i32, i32
  }
  func.func @transform_5(%arg0: i32, %arg1: memref<4xi32, #tpu.memory_space<smem>>) -> (i32, i32, i32) {
    %c0_i32 = arith.constant 0 : i32
    %c0_i32_0 = arith.constant 0 : i32
    %c0_i32_1 = arith.constant 0 : i32
    %c0_i32_2 = arith.constant 0 : i32
    return %c0_i32, %c0_i32_0, %c0_i32_1 : i32, i32, i32
  }
  func.func @transform_6(%arg0: i32, %arg1: memref<4xi32, #tpu.memory_space<smem>>) -> (i32, i32, i32) {
    %c0_i32 = arith.constant 0 : i32
    %c0_i32_0 = arith.constant 0 : i32
    %c0_i32_1 = arith.constant 0 : i32
    %c0_i32_2 = arith.constant 0 : i32
    return %c0_i32, %c0_i32_0, %c0_i32_1 : i32, i32, i32
  }
  func.func @transform_7(%arg0: i32, %arg1: memref<4xi32, #tpu.memory_space<smem>>) -> (i32, i32, i32) {
    %c0_i32 = arith.constant 0 : i32
    %c0_i32_0 = arith.constant 0 : i32
    %c0_i32_1 = arith.constant 0 : i32
    %c0_i32_2 = arith.constant 0 : i32
    return %c0_i32, %c0_i32_0, %c0_i32_1 : i32, i32, i32
  }
  func.func @transform_8(%arg0: i32, %arg1: memref<4xi32, #tpu.memory_space<smem>>) -> (i32, i32, i32) {
    %c0_i32 = arith.constant 0 : i32
    %c0_i32_0 = arith.constant 0 : i32
    %c0_i32_1 = arith.constant 0 : i32
    %c0_i32_2 = arith.constant 0 : i32
    return %c0_i32, %c0_i32_0, %c0_i32_1 : i32, i32, i32
  }
  func.func @transform_9(%arg0: i32, %arg1: memref<4xi32, #tpu.memory_space<smem>>) -> (i32, i32) {
    %c0_i32 = arith.constant 0 : i32
    %c0_i32_0 = arith.constant 0 : i32
    %c0_i32_1 = arith.constant 0 : i32
    return %c0_i32, %c0_i32_0 : i32, i32
  }
  func.func @transform_10(%arg0: i32, %arg1: memref<4xi32, #tpu.memory_space<smem>>) -> (i32, i32) {
    %c0_i32 = arith.constant 0 : i32
    %c0_i32_0 = arith.constant 0 : i32
    %c0_i32_1 = arith.constant 0 : i32
    return %c0_i32, %c0_i32_0 : i32, i32
  }
  func.func @transform_11(%arg0: i32, %arg1: memref<4xi32, #tpu.memory_space<smem>>) -> (i32, i32) {
    %c0_i32 = arith.constant 0 : i32
    %c0_i32_0 = arith.constant 0 : i32
    %c0_i32_1 = arith.constant 0 : i32
    return %c0_i32, %c0_i32_0 : i32, i32
  }
  func.func @transform_12(%arg0: i32, %arg1: memref<4xi32, #tpu.memory_space<smem>>) -> (i32, i32) {
    %c0_i32 = arith.constant 0 : i32
    %c0_i32_0 = arith.constant 0 : i32
    %c0_i32_1 = arith.constant 0 : i32
    return %c0_i32, %c0_i32_0 : i32, i32
  }
  func.func @transform_13(%arg0: i32, %arg1: memref<4xi32, #tpu.memory_space<smem>>) -> (i32, i32) {
    %c0_i32 = arith.constant 0 : i32
    %c0_i32_0 = arith.constant 0 : i32
    %c0_i32_1 = arith.constant 0 : i32
    return %c0_i32, %c0_i32_0 : i32, i32
  }
  func.func @transform_14(%arg0: i32, %arg1: memref<4xi32, #tpu.memory_space<smem>>) -> (i32, i32) {
    %c0_i32 = arith.constant 0 : i32
    %c0_i32_0 = arith.constant 0 : i32
    %c0_i32_1 = arith.constant 0 : i32
    return %c0_i32, %c0_i32_0 : i32, i32
  }
  func.func @transform_15(%arg0: i32, %arg1: memref<4xi32, #tpu.memory_space<smem>>) -> (i32, i32) {
    %c0_i32 = arith.constant 0 : i32
    %c0_i32_0 = arith.constant 0 : i32
    %c0_i32_1 = arith.constant 0 : i32
    return %c0_i32, %c0_i32_0 : i32, i32
  }
  func.func @transform_16(%arg0: i32, %arg1: memref<4xi32, #tpu.memory_space<smem>>) -> (i32, i32) {
    %c0_i32 = arith.constant 0 : i32
    %c0_i32_0 = arith.constant 0 : i32
    %c0_i32_1 = arith.constant 0 : i32
    return %c0_i32, %c0_i32_0 : i32, i32
  }
  func.func @transform_17(%arg0: i32, %arg1: memref<4xi32, #tpu.memory_space<smem>>) -> (i32, i32) {
    %c0_i32 = arith.constant 0 : i32
    %c0_i32_0 = arith.constant 0 : i32
    %c0_i32_1 = arith.constant 0 : i32
    return %c0_i32, %c0_i32_0 : i32, i32
  }
  func.func @transform_18(%arg0: i32, %arg1: memref<4xi32, #tpu.memory_space<smem>>) -> (i32, i32) {
    %c0_i32 = arith.constant 0 : i32
    %c0_i32_0 = arith.constant 0 : i32
    %c0_i32_1 = arith.constant 0 : i32
    return %c0_i32, %c0_i32_0 : i32, i32
  }
  func.func @transform_19(%arg0: i32, %arg1: memref<4xi32, #tpu.memory_space<smem>>) -> (i32, i32) {
    %c0_i32 = arith.constant 0 : i32
    %c0_i32_0 = arith.constant 0 : i32
    %c0_i32_1 = arith.constant 0 : i32
    return %c0_i32, %c0_i32_0 : i32, i32
  }
}

</mosaic_0001>

<bundles_post_ra>
// kernel: bclassifier_forward.2
= control target key start
LH: loop header
LB: loop body
LE: loop exit
PB: predicated region body
PF: predicated region fallthrough
CT: control target
= control target key end

     0   :  { %s946_s0 = inlined_call_operand.vmem [shape: f32[8,32], index: 0, kind: input, shape index: {}]   ;;  %s947_s1 = inlined_call_operand.vmem [shape: f32[32,32], index: 1, kind: input, shape index: {}]   ;;  %s948_s2 = inlined_call_operand.vmem [shape: f32[1,32], index: 2, kind: input, shape index: {}]   ;;  %s949_s3 = inlined_call_operand.vmem [shape: f32[32,256], index: 3, kind: input, shape index: {}]   ;;  %s950_s4 = inlined_call_operand.hbm [shape: f32[1,256], index: 4, kind: input, shape index: {}]   ;;  %s951_s5 = inlined_call_operand.hbm [shape: f32[32,256], index: 5, kind: input, shape index: {}]   ;;  %s952_s6 = inlined_call_operand.hbm [shape: f32[1,256], index: 6, kind: input, shape index: {}]   ;;  %s953_s7 = inlined_call_operand.hbm [shape: f32[1,256], index: 7, kind: input, shape index: {}]   ;;  %s954_s8 = inlined_call_operand.<no memory space> [shape: f32[1,1], index: 8, kind: input, shape index: {}]   ;;  %s955_s9 = inlined_call_operand.hbm [shape: f32[1,32], index: 9, kind: input, shape index: {}]   ;;  %s956_s11 = inlined_call_operand.vmem [shape: f32[8,1], index: 11, kind: output, shape index: {0}]   ;;  %s957_s12 = inlined_call_operand.vmem [shape: f32[8,1], index: 12, kind: output, shape index: {1}]   ;;  %s958_s13 = inlined_call_operand.hbm [shape: f32[1,1], index: 13, kind: output, shape index: {2}]   ;;  %s959_s10 = inlined_call_operand.<no memory space> [shape: f32[1,1], index: 10, kind: input, shape index: {}]  }
   0x1   :  { %v19_v0 = vstv %s954_s8  ;;  %v21_v1 = vstv %s959_s10 }
   0x2   :  { %20 = vst [vmem:[#allocation2] sm:$0x1] %v19_v0  ;;  %22 = vst [vmem:[#allocation3] sm:$0x1] %v21_v1 }
   0x3   :  { %23 = vsyncpa [#allocation5], 0 }
   0x4   :  { %24 = vsyncpa [#allocation8], 0 }
   0x5   :  { %25 = vsyncpa [#allocation11], 0 }
   0x6   :  { %26 = vsyncpa [#allocation6], 0  ;;  %s724_s29 = smov [#allocation7]   ;;  %s584_s16 = scalar_lea.hbm %s951_s5, 1024 }
   0x7   :  { %s50_s30 = sshll.u32 %s724_s29, 4  ;;  %p585_p0 = scmp.ne.s32.totalorder %s951_s5, %s584_s16  ;;  %s51_s30 = int_to_ptr.vmem [resolvable:$true] %s50_s30 }
   0x8   :  { %p588_p1 = scmp.lt.u32.totalorder %s584_s16, %s951_s5 }
   0xa   :  { %p590_p2 = pnand %p588_p1, %p585_p0 }
   0xc   :  { %593 = shalt.err (!%p590_p2)
}
   0xd   :  { %s594_s10 = scalar_lea.vmem %s51_s30, 1024  ;;  %p599_p4 = scmp.lt.s32.totalorder %s51_s30, %s51_s30 }
   0xe   :  { %p595_p3 = scmp.ne.s32.totalorder %s51_s30, %s594_s10  ;;  %p600_p5 = scmp.lt.s32.totalorder %s594_s10, %s594_s10 }
  0x10   :  { %p601_p6 = por %p600_p5, %p599_p4 }
  0x12   :  { %p602_p7 = pnand %p601_p6, %p595_p3 }
  0x14   :  { %605 = shalt.err (!%p602_p7)
}
  0x15   :  { %s725_s20 = smov 256   ;;  %s726_s21 = smov 16  }
  0x16   :  { %56 = dma.hbm_to_vmem [thread:$0]  %s951_s5, 1024, %s51_s30, [#allocation8], %s725_s20, %s725_s20, %s726_s21  }
  0x17   :  { %s727_s24 = smov [#allocation10]   ;;  %s728_s26 = smov [#allocation4]  }
  0x18   :  { %s73_s25 = sshll.u32 %s727_s24, 4  ;;  %s41_s27 = sshll.u32 %s728_s26, 4  ;;  %s74_s25 = int_to_ptr.vmem [resolvable:$true] %s73_s25  ;;  %s42_s27 = int_to_ptr.vmem [resolvable:$true] %s41_s27 }
  0x19   :  { %s606_s14 = scalar_lea.hbm %s953_s7, 32 }
  0x1a   :  { %p607_p8 = scmp.ne.s32.totalorder %s953_s7, %s606_s14  ;;  %p610_p9 = scmp.lt.u32.totalorder %s606_s14, %s953_s7 }
  0x1c   :  { %p612_p10 = pnand %p610_p9, %p607_p8 }
  0x1e   :  { %615 = shalt.err (!%p612_p10)
}
  0x1f   :  { %s616_s5 = scalar_lea.vmem %s74_s25, 32  ;;  %p621_p12 = scmp.lt.s32.totalorder %s74_s25, %s74_s25 }
  0x20   :  { %p617_p11 = scmp.ne.s32.totalorder %s74_s25, %s616_s5  ;;  %p622_p13 = scmp.lt.s32.totalorder %s616_s5, %s616_s5 }
  0x22   :  { %p623_p0 = por %p622_p13, %p621_p12 }
  0x24   :  { %p624_p1 = pnand %p623_p0, %p617_p11 }
  0x26   :  { %627 = shalt.err (!%p624_p1)
}
  0x27   :  { %76 = dma.hbm_to_vmem [thread:$0]  %s953_s7, 32, %s74_s25, [#allocation11]  }
  0x28   :  { %s628_s20 = scalar_lea.hbm %s950_s4, 32 }
  0x29   :  { %p629_p2 = scmp.ne.s32.totalorder %s950_s4, %s628_s20  ;;  %p632_p3 = scmp.lt.u32.totalorder %s628_s20, %s950_s4 }
  0x2b   :  { %p634_p4 = pnand %p632_p3, %p629_p2 }
  0x2d   :  { %637 = shalt.err (!%p634_p4)
}
  0x2e   :  { %s638_s26 = scalar_lea.vmem %s42_s27, 32  ;;  %p643_p6 = scmp.lt.s32.totalorder %s42_s27, %s42_s27 }
  0x2f   :  { %p639_p5 = scmp.ne.s32.totalorder %s42_s27, %s638_s26  ;;  %p644_p7 = scmp.lt.s32.totalorder %s638_s26, %s638_s26 }
  0x31   :  { %p645_p8 = por %p644_p7, %p643_p6 }
  0x33   :  { %p646_p9 = pnand %p645_p8, %p639_p5 }
  0x35   :  { %649 = shalt.err (!%p646_p9)
}
  0x36   :  { %44 = dma.hbm_to_vmem [thread:$0]  %s950_s4, 32, %s42_s27, [#allocation5]  }
  0x37   :  { %s729_s28 = smov [#allocation9]   ;;  %s730_s14 = smov [#allocation12]  }
  0x38   :  { %s63_s29 = sshll.u32 %s729_s28, 4  ;;  %s85_s15 = sshll.u32 %s730_s14, 4  ;;  %s64_s29 = int_to_ptr.vmem [resolvable:$true] %s63_s29  ;;  %s86_s15 = int_to_ptr.vmem [resolvable:$true] %s85_s15 }
  0x39   :  { %s650_s18 = scalar_lea.hbm %s952_s6, 32 }
  0x3a   :  { %p651_p10 = scmp.ne.s32.totalorder %s952_s6, %s650_s18  ;;  %p654_p11 = scmp.lt.u32.totalorder %s650_s18, %s952_s6 }
  0x3c   :  { %p656_p12 = pnand %p654_p11, %p651_p10 }
  0x3e   :  { %659 = shalt.err (!%p656_p12)
}
  0x3f   :  { %s660_s4 = scalar_lea.vmem %s64_s29, 32  ;;  %p665_p0 = scmp.lt.s32.totalorder %s64_s29, %s64_s29 }
  0x40   :  { %p661_p13 = scmp.ne.s32.totalorder %s64_s29, %s660_s4  ;;  %p666_p1 = scmp.lt.s32.totalorder %s660_s4, %s660_s4 }
  0x42   :  { %p667_p2 = por %p666_p1, %p665_p0 }
  0x44   :  { %p668_p3 = pnand %p667_p2, %p661_p13 }
  0x46   :  { %671 = shalt.err (!%p668_p3)
}
  0x47   :  { %66 = dma.hbm_to_vmem [thread:$0]  %s952_s6, 32, %s64_s29, [#allocation8]  }
  0x48   :  { %s672_s22 = scalar_lea.hbm %s955_s9, 16 }
  0x49   :  { %p673_p4 = scmp.ne.s32.totalorder %s955_s9, %s672_s22  ;;  %p676_p5 = scmp.lt.u32.totalorder %s672_s22, %s955_s9 }
  0x4b   :  { %p678_p6 = pnand %p676_p5, %p673_p4 }
  0x4d   :  { %681 = shalt.err (!%p678_p6)
}
  0x4e   :  { %s682_s25 = scalar_lea.vmem %s86_s15, 16  ;;  %s686_s28 = scalar_lea.vmem %s86_s15, 32 }
  0x4f   :  { %p683_p7 = scmp.ne.s32.totalorder %s86_s15, %s682_s25  ;;  %p687_p8 = scmp.lt.s32.totalorder %s86_s15, %s86_s15 }
  0x50   :  { %p688_p9 = scmp.lt.s32.totalorder %s686_s28, %s682_s25 }
  0x52   :  { %p689_p10 = por %p688_p9, %p687_p8 }
  0x54   :  { %p690_p11 = pnand %p689_p10, %p683_p7 }
  0x56   :  { %693 = shalt.err (!%p690_p11)
}
  0x57   :  { %88 = dma.hbm_to_vmem [thread:$0]  %s955_s9, 16, %s86_s15, [#allocation11]  }
  0x58   :  { %716 = dma.done.wait [#allocation5], 32  }
  0x59   :  { %717 = vsyncadd [#allocation5], 4294967264 }
  0x5a   :  { %718 = dma.done.wait [#allocation8], 1056  }
  0x5b   :  { %719 = vsyncadd [#allocation8], 4294966240 }
  0x5c   :  { %720 = dma.done.wait [#allocation11], 48  }
  0x5d   :  { %721 = vsyncadd [#allocation11], 4294967248  ;;  %v731_v2 = vmov 0.0|0.0   ;;  %vm732_vm0 = vmmov 0   ;;  %v733_v3 = vmov 0.0   ;;  %v107_v4 = vld [vmem:[%s947_s1] sm:$0xff]  ;;  %v203_v40 = vlaneseq }
  0x5e   :  { %529 = vmatprep.subr.bf16.mxu0 %v731_v2  ;;  %526 = vmatprep.mubr.msk.f32.mxu0 %vm732_vm0, %v733_v3  ;;  %v108_v5 = vld [vmem:[%s947_s1 + $0x8] sm:$0xff]  ;;  %v109_v6 = vld [vmem:[%s947_s1 + $0x10] sm:$0xff]  ;;  %v110_v8 = vld [vmem:[%s947_s1 + $0x18] sm:$0xff]  ;;  %vm118_vm1 = vcmask 261120   ;;  %vm419_vm2 = vcmask 7168   ;;  %vm479_vm3 = vcmask 0  }
  0x5f   :  { %280 = vmatprep.mubr.f32.mxu1 %v733_v3  ;;  %v530_v7 = vpack.c.bf16 %v108_v5, %v107_v4  ;;  %v194_v9 = vld [vmem:[%s949_s3 + $0x8] sm:$0xff]  ;;  %v196_v10 = vld [vmem:[%s949_s3 + $0x18] sm:$0xff]  ;;  %v533_v13 = vpack.c.bf16 %v110_v8, %v109_v6  ;;  %v193_v15 = vld [vmem:[%s949_s3] sm:$0xff]  ;;  %v204_v41 = vshrl.u32 %v203_v40, 7 }
  0x60   :  { %v290_v11 = vld [vmem:[#allocation7 + $0x8] sm:$0xff]  ;;  %v292_v12 = vld [vmem:[#allocation7 + $0x18] sm:$0xff]  ;;  %v535_v14 = vpack.c.bf16 %v196_v10, %v194_v9  ;;  %v289_v19 = vld [vmem:[#allocation7] sm:$0xff] }
  0x61   :  { %531 = vmatpush3.bf16.msra.mxu0 %v530_v7  ;;  %v195_v16 = vld [vmem:[%s949_s3 + $0x10] sm:$0xff]  ;;  %v543_v17 = vpack.c.bf16 %v292_v12, %v290_v11  ;;  %v106_v21 = vld [vmem:[%s946_s0] sm:$0xff]  ;;  %v198_v23 = vld [vmem:[%s949_s3 + $0x28] sm:$0xff]  ;;  %v205_v42 = vsub.s32 0, %v204_v41  ;;  %v209_v44 = vsub.s32 1, %v204_v41 }
  0x62   :  { %532 = vmatprep.subr.bf16.mxu0 %v731_v2  ;;  %v537_v18 = vpack.c.bf16 %v195_v16, %v193_v15  ;;  %v291_v20 = vld [vmem:[#allocation7 + $0x10] sm:$0xff]  ;;  %536 = vmatprep.subr.bf16.mxu1 %v535_v14  ;;  %v294_v25 = vld [vmem:[#allocation7 + $0x28] sm:$0xff]  ;;  %v296_v27 = vld [vmem:[#allocation7 + $0x38] sm:$0xff]  ;;  %v734_v14 = vmov 0  }
  0x63   :  { %v545_v22 = vpack.c.bf16 %v291_v20, %v289_v19  ;;  %v200_v24 = vld [vmem:[%s949_s3 + $0x38] sm:$0xff]  ;;  %v197_v28 = vld [vmem:[%s949_s3 + $0x20] sm:$0xff]  ;;  %v199_v29 = vld [vmem:[%s949_s3 + $0x30] sm:$0xff]  ;;  %v547_v30 = vpack.c.bf16 %v296_v27, %v294_v25  ;;  %563 = vset.pattern.permute.xlu0 %v734_v14 }
  0x64   :  { %538 = vmatpush1.bf16.msra.mxu1 %v537_v18  ;;  %v539_v26 = vpack.c.bf16 %v200_v24, %v198_v23  ;;  %v541_v31 = vpack.c.bf16 %v199_v29, %v197_v28  ;;  %v293_v32 = vld [vmem:[#allocation7 + $0x20] sm:$0xff]  ;;  %v295_v33 = vld [vmem:[#allocation7 + $0x30] sm:$0xff]  ;;  %v506_v35 = vld [vmem:[%s948_s2] ss:$0 sm:$0xff] }
  0x65   :  { %534 = vmatpush3.bf16.msra.mxu0 %v533_v13  ;;  %v549_v34 = vpack.c.bf16 %v295_v33, %v293_v32  ;;  %v297_v43 = vld [vmem:[#allocation9] sm:$0x3]  ;;  %v201_v57 = vld [vmem:[#allocation4] sm:$0x3]  ;;  %v394_v2 = vld [vmem:[#allocation10] sm:$0x3] }
  0x66   :  { %544 = vmatprep.subr.bf16.mxu0 %v543_v17  ;;  %540 = vmatprep.subr.bf16.mxu1 %v539_v26  ;;  %v302_v45 = vrot.slane %v297_v43, %v205_v42  ;;  %v306_v46 = vrot.slane %v297_v43, %v209_v44  ;;  %v206_v58 = vrot.slane %v201_v57, %v205_v42  ;;  %v510_v15 = vld [vmem:[#allocation2] ss:$0 sm:$0xff]  ;;  %v512_v43 = vld [vmem:[#allocation3] ss:$0 sm:$0xff] }
  0x67   :  { %v210_v59 = vrot.slane %v201_v57, %v209_v44  ;;  %v399_v5 = vrot.slane %v394_v2, %v205_v42  ;;  %v403_v7 = vrot.slane %v394_v2, %v209_v44 }
  0x68   :  { %527 = vmatmul.mubr.msk.f32.vlgmr.msra.gmra.mrb[0].mxu0 %vm118_vm1, %v106_v21  ;;  %542 = vmatpush1.bf16.msra.mxu1 %v541_v31 }
  0x69   :  { %546 = vmatpush1.bf16.msra.mxu0 %v545_v22  ;;  %373 = vmatprep.mubr.f32.mxu0 %v733_v3 }
  0x6a   :  { %548 = vmatprep.subr.bf16.mxu0 %v547_v30 }
  0x6d   :  { %550 = vmatpush1.bf16.msra.mxu0 %v549_v34 }
 0x13b   :  { %v188_v36 = vpop.f32.mrb[0].mxu0 }
 0x13c   :  { %v189_v37 = vadd.f32 %v506_v35, %v188_v36  ;;  %v528_v38 = vpop.f32.mrb[1].mxu0 }
 0x13d   :  { %v511_v38 = vld [vmem:[#allocation12] ss:$0 sm:$0xff] }
 0x13e   :  { %v915_v39 = vmax.f32 %v189_v37, 0.0 }
 0x140   :  { %508 = vmatmul.mubr.msk.f32.vlgmr.msra.gmra.mrb[0].mxu1 %vm118_vm1, %v915_v39  ;;  %509 = vmatmul.mubr.msk.f32.vlgmr.msra.gmra.mrb[2].mxu0 %vm118_vm1, %v915_v39 }
 0x213   :  { %v282_v47 = vpop.f32.mrb[0].mxu1  ;;  %v375_v48 = vpop.f32.mrb[2].mxu0 }
 0x214   :  { %v376_v49 = vadd.f32 %v375_v48, %v302_v45  ;;  %v284_v50 = vpop.f32.mrb[1].mxu1  ;;  %v377_v51 = vpop.f32.mrb[3].mxu0  ;;  %v283_v60 = vadd.f32 %v282_v47, %v206_v58 }
 0x215   :  { %v378_v52 = vadd.f32 %v377_v51, %v306_v46  ;;  %v285_v61 = vadd.f32 %v284_v50, %v210_v59 }
 0x216   :  { %v380_v53 = vsub.f32 0.0, %v376_v49 }
 0x217   :  { %v381_v54 = vsub.f32 0.0, %v378_v52 }
 0x218   :  { %v382_v55 = vmul.f32 1.442695, %v380_v53 }
 0x219   :  { %v384_v56 = vmul.f32 1.442695, %v381_v54 }
 0x21a   :  { %564 = vpow2.f32 %v382_v55 }
 0x21b   :  { %566 = vpow2.f32 %v384_v56 }
 0x21c   :  { %568 = vtanh.f32 %v283_v60 }
 0x21d   :  { %570 = vtanh.f32 %v285_v61 }
 0x224   :  { %v565_v62 = vpop.eup %564 }
 0x225   :  { %v567_v63 = vpop.eup %566  ;;  %v386_v0 = vadd.f32 1.0, %v565_v62 }
 0x226   :  { %v387_v1 = vadd.f32 1.0, %v567_v63  ;;  %v569_v3 = vpop.eup %568 }
 0x227   :  { %572 = vrcp.f32 %v386_v0  ;;  %v571_v4 = vpop.eup %570 }
 0x228   :  { %574 = vrcp.f32 %v387_v1 }
 0x231   :  { %v573_v6 = vpop.eup %572 }
 0x232   :  { %v575_v8 = vpop.eup %574  ;;  %v392_v9 = vmul.f32 %v573_v6, %v569_v3 }
 0x233   :  { %v393_v10 = vmul.f32 %v575_v8, %v571_v4 }
 0x234   :  { %v406_v11 = vmul.f32 %v399_v5, %v392_v9 }
 0x235   :  { %v407_v12 = vmul.f32 %v403_v7, %v393_v10 }
 0x237   :  { %v408_v13 = vadd.f32 %v407_v12, %v406_v11 }
 0x239   :  { %409 = vadd.xlane.f32.xlu0 %v408_v13 }
 0x2c6   :  { %v410_v16 = vpop.xlane.xlu0 %409 }
 0x2c7   :  { %v418_v17 = vadd.f32 %v510_v15, %v410_v16 }
 0x2c9   :  { %v420_v18 = vsel %vm419_vm2, %v418_v17, -inf }
 0x2ca   :  { %v421_v19 = vrot.slane %v420_v18, 4 }
 0x2cc   :  { %v422_v20 = vmax.f32 %v420_v18, %v421_v19 }
 0x2ce   :  { %v423_v21 = vrot.slane %v422_v20, 2 }
 0x2d0   :  { %v424_v22 = vmax.f32 %v422_v20, %v423_v21 }
 0x2d2   :  { %v425_v23 = vrot.slane %v424_v22, 1 }
 0x2d4   :  { %v426_v24 = vmax.f32 %v424_v22, %v425_v23 }
 0x2d6   :  { %v427_v25 = vsub.f32 %v418_v17, %v426_v24 }
 0x2d8   :  { %v428_v26 = vmul.f32 1.442695, %v427_v25 }
 0x2da   :  { %576 = vpow2.f32 %v428_v26 }
 0x2e4   :  { %v577_v27 = vpop.eup %576 }
 0x2e5   :  { %v430_v28 = vsel %vm419_vm2, %v577_v27, 0.0 }
 0x2e6   :  { %v431_v29 = vrot.slane %v430_v28, 4 }
 0x2e8   :  { %v432_v30 = vadd.f32 %v431_v29, %v430_v28 }
 0x2ea   :  { %v433_v31 = vrot.slane %v432_v30, 2 }
 0x2ec   :  { %v434_v32 = vadd.f32 %v433_v31, %v432_v30 }
 0x2ee   :  { %v435_v33 = vrot.slane %v434_v32, 1 }
 0x2f0   :  { %v436_v34 = vadd.f32 %v435_v33, %v434_v32 }
 0x2f2   :  { %578 = vrcp.f32 %v436_v34 }
 0x2fc   :  { %v579_v35 = vpop.eup %578 }
 0x2fd   :  { %v438_v36 = vmul.f32 %v579_v35, %v577_v27 }
 0x2ff   :  { %442 = vperm.xlu0 %563, %v438_v36   ;;  %439 = vst.msk [vmem:[%s956_s11] sm:$0xff] %vm419_vm2, %v438_v36  ;;  %s735_s11 = smov [#allocation13]  }
 0x300   :  { %s491_s9 = sshll.u32 %s735_s11, 4  ;;  %s492_s9 = int_to_ptr.vmem [resolvable:$true] %s491_s9 }
 0x301   :  { %s698_s15 = scalar_lea.vmem %s492_s9, 32  ;;  %p699_p13 = scmp.lt.s32.totalorder %s492_s9, %s492_s9 }
 0x37e   :  { %v443_v37 = vpop.permute.xlu0 %442 }
 0x37f   :  { %v445_v40 = vmul.f32 %v443_v37, %v915_v39 }
 0x381   :  { %v453_v41 = vmul.f32 %v511_v38, %v445_v40 }
 0x383   :  { %v454_v42 = vsel %vm118_vm1, %v453_v41, 0.0 }
 0x384   :  { %455 = vadd.xlane.f32.xlu1 %v454_v42 }
 0x411   :  { %v456_v44 = vpop.xlane.xlu1 %455 }
 0x412   :  { %v464_v45 = vadd.f32 %v512_v43, %v456_v44 }
 0x414   :  { %465 = vst.msk [vmem:[%s957_s12] sm:$0xff] %vm419_vm2, %v464_v45  ;;  %v466_v46 = vsel %vm419_vm2, %v464_v45, 0.0  ;;  %s694_s12 = scalar_lea.vmem %s492_s9, 16 }
 0x415   :  { %v467_v47 = vrot.slane %v466_v46, 4  ;;  %p695_p12 = scmp.ne.s32.totalorder %s492_s9, %s694_s12  ;;  %p700_p0 = scmp.lt.s32.totalorder %s698_s15, %s694_s12 }
 0x417   :  { %v468_v48 = vadd.f32 %v467_v47, %v466_v46  ;;  %p701_p1 = por %p700_p0, %p699_p13 }
 0x419   :  { %v469_v49 = vrot.slane %v468_v48, 2  ;;  %p702_p2 = pnand %p701_p1, %p695_p12 }
 0x41b   :  { %v470_v50 = vadd.f32 %v469_v49, %v468_v48 }
 0x41d   :  { %v471_v51 = vrot.slane %v470_v50, 1 }
 0x41f   :  { %v472_v39 = vadd.f32 %v471_v51, %v470_v50 }
 0x421   :  { %v473_v52 = vsub.f32 0.0, %v472_v39 }
 0x423   :  { %v474_v53 = vmul.f32 1.442695, %v473_v52 }
 0x425   :  { %580 = vpow2.f32 %v474_v53 }
 0x42f   :  { %v581_v54 = vpop.eup %580 }
 0x430   :  { %v476_v55 = vadd.f32 1.0, %v581_v54 }
 0x432   :  { %582 = vrcp.f32 %v476_v55 }
 0x43c   :  { %v583_v56 = vpop.eup %582 }
 0x43d   :  { %480 = vst.msk [vmem:[#allocation13] sm:$0x1] %vm479_vm3, %v583_v56 }
 0x43e   :  { %705 = shalt.err (!%p702_p2)
}
 0x43f   :  { %s706_s8 = scalar_lea.hbm %s958_s13, 16 }
 0x440   :  { %p707_p3 = scmp.ne.s32.totalorder %s958_s13, %s706_s8  ;;  %p710_p4 = scmp.lt.u32.totalorder %s706_s8, %s958_s13 }
 0x442   :  { %p712_p5 = pnand %p710_p4, %p707_p3 }
 0x444   :  { %715 = shalt.err (!%p712_p5)
}
 0x445   :  { %494 = dma.vmem_to_hbm [thread:$0]  %s492_s9, 16, %s958_s13, [#allocation6]  }
 0x446   :  { %722 = dma.done.wait [#allocation6], 16  }
 0x447   :  { %723 = vsyncadd [#allocation6], 4294967280 }
 0x448   :  { %502 = vsyncpa [#allocation5], 1 }
 0x449   :  { %503 = vsyncpa [#allocation8], 1 }
 0x44a   :  { %504 = vsyncpa [#allocation11], 1 }
 0x44b   :  { %505 = vsyncpa [#allocation6], 1 }

// kernel: bclassifier_forward.3
= control target key start
LH: loop header
LB: loop body
LE: loop exit
PB: predicated region body
PF: predicated region fallthrough
CT: control target
= control target key end

     0   :  { %s7119_s0 = inlined_call_operand.vmem [shape: s32[4], index: 0, kind: input, shape index: {}]   ;;  %s7120_s1 = inlined_call_operand.vmem [shape: f32[8,32], index: 1, kind: input, shape index: {}]   ;;  %s7121_s2 = inlined_call_operand.vmem [shape: f32[4,32,128], index: 2, kind: input, shape index: {}]   ;;  %s7122_s3 = inlined_call_operand.vmem [shape: f32[4,1,128], index: 3, kind: input, shape index: {}]   ;;  %s7123_s4 = inlined_call_operand.vmem [shape: f32[4,128,32], index: 4, kind: input, shape index: {}]   ;;  %s7124_s5 = inlined_call_operand.vmem [shape: f32[4,1,32], index: 5, kind: input, shape index: {}]   ;;  %s7125_s6 = inlined_call_operand.vmem [shape: f32[4,128,4], index: 6, kind: input, shape index: {}]   ;;  %s7126_s7 = inlined_call_operand.vmem [shape: f32[4,128,1], index: 7, kind: input, shape index: {}]   ;;  %s7127_s8 = inlined_call_operand.vmem [shape: f32[4,4,128], index: 8, kind: input, shape index: {}]   ;;  %s7128_s9 = inlined_call_operand.vmem [shape: f32[4,4,1], index: 9, kind: input, shape index: {}]   ;;  %s7129_s10 = inlined_call_operand.vmem [shape: f32[128,4], index: 10, kind: input, shape index: {}]   ;;  %s7130_s11 = inlined_call_operand.vmem [shape: f32[128,1], index: 11, kind: input, shape index: {}]   ;;  %s7131_s12 = inlined_call_operand.vmem [shape: f32[128,4], index: 12, kind: input, shape index: {}]   ;;  %s7132_s13 = inlined_call_operand.vmem [shape: f32[128,1], index: 13, kind: input, shape index: {}]   ;;  %s7133_s14 = inlined_call_operand.vmem [shape: f32[1,128], index: 14, kind: input, shape index: {}]   ;;  %s7134_s16 = inlined_call_operand.vmem [shape: f32[1,32], index: 16, kind: input, shape index: {}]   ;;  %s7135_s18 = inlined_call_operand.hbm [shape: f32[1,32], index: 18, kind: output, shape index: {0}]   ;;  %s7136_s19 = inlined_call_operand.vmem [shape: f32[4,1], index: 19, kind: output, shape index: {1}]   ;;  %s7137_s20 = inlined_call_operand.hbm [shape: f32[1,1], index: 20, kind: output, shape index: {2}]   ;;  %s7138_s15 = inlined_call_operand.<no memory space> [shape: f32[1,1], index: 15, kind: input, shape index: {}]   ;;  %s7139_s17 = inlined_call_operand.<no memory space> [shape: f32[1,1], index: 17, kind: input, shape index: {}]  }
   0x1   :  { %7144 = sst [smem:[#allocation23_spill]] %s7119_s0  ;;  %v30_v0 = vstv %s7138_s15  ;;  %v32_v1 = vstv %s7139_s17 }
   0x2   :  { %7145 = sst [smem:[#allocation24_spill]] %s7120_s1  ;;  %s7150_s23 = sld [smem:[#allocation23_spill]]  ;;  %31 = vst [vmem:[#allocation6] sm:$0x1] %v30_v0  ;;  %33 = vst [vmem:[#allocation7] sm:$0x1] %v32_v1 }
   0x3   :  { %7146 = sst [smem:[#allocation25_spill]] %s7121_s2 }
   0x4   :  { %7147 = sst [smem:[#allocation26_spill]] %s7122_s3 }
   0x5   :  { %7148 = sst [smem:[#allocation27_spill]] %s7123_s4 }
   0x6   :  { %7149 = sst [smem:[#allocation28_spill]] %s7133_s14 }
   0x8   :  { %s26_s14 = sshll.u32 %s7150_s23, 4  ;;  %s27_s14 = int_to_ptr.vmem [resolvable:$true] %s26_s14 }
   0x9   :  { %s5588_s26 = scalar_lea.vmem %s27_s14, 16  ;;  %p5593_p1 = scmp.lt.s32.totalorder %s27_s14, %s27_s14 }
   0xa   :  { %p5589_p0 = scmp.ne.s32.totalorder %s27_s14, %s5588_s26  ;;  %p5594_p2 = scmp.lt.s32.totalorder %s5588_s26, %s5588_s26 }
   0xc   :  { %p5595_p3 = por %p5594_p2, %p5593_p1 }
   0xe   :  { %p5596_p4 = pnand %p5595_p3, %p5589_p0 }
  0x10   :  { %5599 = shalt.err (!%p5596_p4)  }
  0x11   :  { %s5658_s27 = smov [#allocation5]  }
  0x12   :  { %29 = dma.vmem_to_smem %s27_s14, 16, %s5658_s27, [#allocation4] }
  0x13   :  { %5644 = dma.done.wait [#allocation4], 16 }
  0x14   :  { %5645 = vsyncadd [#allocation4], 4294967280 }
  0x15   :  { %35 = sfence }
  0x16   :  { %36 = vsyncpa [#allocation9], 0 }
  0x17   :  { %37 = vsyncpa [#allocation11], 0  ;;  %s70_s15 = sld [smem:[#allocation5]]  ;;  %s7151_s4 = sld [smem:[#allocation24_spill]] }
  0x1d   :  { %s71_s29 = scalar_lea.vmem %s7151_s4, %s70_s15 }
  0x1e   :  { %v89_v2 = vld [vmem:[%s71_s29] sm:$0x1] }
  0x1f   :  { %90 = vst [vmem:[#allocation2] sm:$0x1] %v89_v2 }
  0x20   :  { %115 = vsyncadd [#allocation3], 16  ;;  %s4009_s30 = sld [smem:[#allocation5 + $0x1]] }
  0x26   :  { %s117_s1 = scalar_lea.vmem %s7151_s4, %s4009_s30 }
  0x27   :  { %v137_v3 = vld [vmem:[%s117_s1] sm:$0x1] }
  0x28   :  { %138 = vst [vmem:[#allocation2 + $0x1] sm:$0x1] %v137_v3 }
  0x29   :  { %163 = vsyncadd [#allocation3 + $0x1], 16  ;;  %s4010_s14 = sld [smem:[#allocation5 + $0x2]] }
  0x2f   :  { %s165_s24 = scalar_lea.vmem %s7151_s4, %s4010_s14 }
  0x30   :  { %v185_v4 = vld [vmem:[%s165_s24] sm:$0x1] }
  0x31   :  { %186 = vst [vmem:[#allocation2 + $0x2] sm:$0x1] %v185_v4 }
  0x32   :  { %211 = vsyncadd [#allocation3 + $0x2], 16  ;;  %s4011_s2 = sld [smem:[#allocation5 + $0x3]] }
  0x38   :  { %s213_s26 = scalar_lea.vmem %s7151_s4, %s4011_s2 }
  0x39   :  { %v233_v5 = vld [vmem:[%s213_s26] sm:$0x1] }
  0x3a   :  { %234 = vst [vmem:[#allocation2 + $0x3] sm:$0x1] %v233_v5 }
  0x3b   :  { %259 = vsyncadd [#allocation3 + $0x3], 16 }
  0x3c   :  { %5646 = dma.done.wait [#allocation3], 16 }
  0x3d   :  { %5647 = vsyncadd [#allocation3], 4294967280 }
  0x3e   :  { %5648 = dma.done.wait [#allocation3 + $0x1], 16 }
  0x3f   :  { %5649 = vsyncadd [#allocation3 + $0x1], 4294967280 }
  0x40   :  { %5650 = dma.done.wait [#allocation3 + $0x2], 16 }
  0x41   :  { %5651 = vsyncadd [#allocation3 + $0x2], 4294967280 }
  0x42   :  { %5652 = dma.done.wait [#allocation3 + $0x3], 16 }
  0x43   :  { %5653 = vsyncadd [#allocation3 + $0x3], 4294967280  ;;  %v5659_v6 = vmov 0.0|0.0   ;;  %vm5660_vm0 = vmmov 0   ;;  %v5661_v7 = vmov 0.0   ;;  %s7152_s28 = sld [smem:[#allocation25_spill]] }
  0x44   :  { %5094 = vmatprep.subr.bf16.mxu0 %v5659_v6  ;;  %4587 = vmatprep.mubr.msk.f32.mxu0 %vm5660_vm0, %v5661_v7  ;;  %s7153_s22 = sld [smem:[#allocation27_spill]]  ;;  %v5829_v22 = vld [vmem:[#allocation2] sm:$0xf]  ;;  %vm281_vm1 = vcmask 261120   ;;  %v473_v40 = vld [vmem:[%s7126_s7 + $0x10] sm:$0xff]  ;;  %v5662_v41 = vmov 0  }
  0x45   :  { %5100 = vmatprep.subr.bf16.mxu1 %v5659_v6  ;;  %4622 = vmatprep.mubr.msk.f32.mxu1 %vm5660_vm0, %v5661_v7  ;;  %v471_v39 = vld [vmem:[%s7126_s7] sm:$0xff]  ;;  %v472_v42 = vld [vmem:[%s7126_s7 + $0x8] sm:$0xff]  ;;  %v474_v43 = vld [vmem:[%s7126_s7 + $0x18] sm:$0xff]  ;;  %s7154_s0 = sld [smem:[#allocation26_spill]]  ;;  %vm567_vm2 = vcmask 31744   ;;  %vm616_vm3 = vcmask 1043456  }
  0x46   :  { %5341 = vset.pattern.permute.xlu0 %v5662_v41  ;;  %5342 = vset.pattern.permute.xlu1 %v5662_v41  ;;  %v475_v44 = vld [vmem:[%s7126_s7 + $0x20] sm:$0xff]  ;;  %v476_v45 = vld [vmem:[%s7126_s7 + $0x28] sm:$0xff]  ;;  %v477_v46 = vld [vmem:[%s7126_s7 + $0x30] sm:$0xff]  ;;  %vm3831_vm4 = vcmask 253952   ;;  %s5663_s30 = smov [#allocation8]  }
  0x47   :  { %489 = vperm.xlu0 %5341, %v471_v39   ;;  %499 = vperm.xlu1 %5342, %v473_v40   ;;  %v478_v47 = vld [vmem:[%s7126_s7 + $0x38] sm:$0xff]  ;;  %v479_v48 = vld [vmem:[%s7126_s7 + $0x40] sm:$0xff]  ;;  %v480_v49 = vld [vmem:[%s7126_s7 + $0x48] sm:$0xff]  ;;  %s3909_s21 = sshll.u32 %s5663_s30, 4  ;;  %s3910_s21 = int_to_ptr.vmem [resolvable:$true] %s3909_s21 }
  0x48   :  { %v481_v50 = vld [vmem:[%s7126_s7 + $0x50] sm:$0xff]  ;;  %v482_v51 = vld [vmem:[%s7126_s7 + $0x58] sm:$0xff]  ;;  %v483_v52 = vld [vmem:[%s7126_s7 + $0x60] sm:$0xff]  ;;  %s5600_s1 = scalar_lea.vmem %s3910_s21, 16  ;;  %p5605_p6 = scmp.lt.s32.totalorder %s3910_s21, %s3910_s21 }
  0x49   :  { %v270_v8 = vld [vmem:[%s7152_s28] sm:$0xff]  ;;  %v271_v9 = vld [vmem:[%s7152_s28 + $0x8] sm:$0xff]  ;;  %v272_v10 = vld [vmem:[%s7152_s28 + $0x10] sm:$0xff]  ;;  %p5601_p5 = scmp.ne.s32.totalorder %s3910_s21, %s5600_s1 }
  0x4a   :  { %v5095_v11 = vpack.c.bf16 %v271_v9, %v270_v8  ;;  %v273_v12 = vld [vmem:[%s7152_s28 + $0x18] sm:$0xff]  ;;  %v360_v13 = vld [vmem:[%s7153_s22] sm:$0xff]  ;;  %v361_v14 = vld [vmem:[%s7153_s22 + $0x8] sm:$0xff] }
  0x4b   :  { %v362_v15 = vld [vmem:[%s7153_s22 + $0x10] sm:$0xff]  ;;  %v363_v16 = vld [vmem:[%s7153_s22 + $0x18] sm:$0xff]  ;;  %v5098_v17 = vpack.c.bf16 %v273_v12, %v272_v10  ;;  %v5101_v18 = vpack.c.bf16 %v361_v14, %v360_v13  ;;  %v364_v20 = vld [vmem:[%s7153_s22 + $0x20] sm:$0xff]  ;;  %494 = vperm.xlu0 %5341, %v472_v42   ;;  %504 = vperm.xlu1 %5342, %v474_v43  }
  0x4c   :  { %5096 = vmatpush3.bf16.msra.mxu0 %v5095_v11  ;;  %v5104_v19 = vpack.c.bf16 %v363_v16, %v362_v15  ;;  %v365_v21 = vld [vmem:[%s7153_s22 + $0x28] sm:$0xff]  ;;  %v366_v24 = vld [vmem:[%s7153_s22 + $0x30] sm:$0xff]  ;;  %v367_v25 = vld [vmem:[%s7153_s22 + $0x38] sm:$0xff] }
  0x4d   :  { %5097 = vmatprep.subr.bf16.mxu0 %v5659_v6  ;;  %5102 = vmatpush3.bf16.msra.mxu1 %v5101_v18  ;;  %v5107_v23 = vpack.c.bf16 %v365_v21, %v364_v20  ;;  %v5110_v26 = vpack.c.bf16 %v367_v25, %v366_v24  ;;  %v368_v27 = vld [vmem:[%s7153_s22 + $0x40] sm:$0xff]  ;;  %v369_v28 = vld [vmem:[%s7153_s22 + $0x48] sm:$0xff]  ;;  %v370_v30 = vld [vmem:[%s7153_s22 + $0x50] sm:$0xff] }
  0x4e   :  { %5103 = vmatprep.subr.bf16.mxu1 %v5659_v6  ;;  %v5113_v29 = vpack.c.bf16 %v369_v28, %v368_v27  ;;  %v371_v31 = vld [vmem:[%s7153_s22 + $0x58] sm:$0xff]  ;;  %v372_v33 = vld [vmem:[%s7153_s22 + $0x60] sm:$0xff]  ;;  %v373_v34 = vld [vmem:[%s7153_s22 + $0x68] sm:$0xff] }
  0x4f   :  { %v5116_v32 = vpack.c.bf16 %v371_v31, %v370_v30  ;;  %v5119_v35 = vpack.c.bf16 %v373_v34, %v372_v33  ;;  %v374_v36 = vld [vmem:[%s7153_s22 + $0x70] sm:$0xff]  ;;  %v375_v37 = vld [vmem:[%s7153_s22 + $0x78] sm:$0xff]  ;;  %509 = vperm.xlu0 %5341, %v475_v44   ;;  %514 = vperm.xlu1 %5342, %v476_v45   ;;  %v484_v53 = vld [vmem:[%s7126_s7 + $0x68] sm:$0xff] }
  0x50   :  { %5099 = vmatpush3.bf16.msra.mxu0 %v5098_v17  ;;  %v5122_v38 = vpack.c.bf16 %v375_v37, %v374_v36  ;;  %v485_v54 = vld [vmem:[%s7126_s7 + $0x70] sm:$0xff]  ;;  %v486_v55 = vld [vmem:[%s7126_s7 + $0x78] sm:$0xff]  ;;  %v917_v56 = vld [vmem:[%s7128_s9] sm:$0xf] }
  0x51   :  { %5105 = vmatpush3.bf16.msra.mxu1 %v5104_v19  ;;  %v4073_v57 = vld [vmem:[%s7126_s7 + $0x80] sm:$0xff]  ;;  %v4074_v58 = vld [vmem:[%s7126_s7 + $0x88] sm:$0xff]  ;;  %v4075_v59 = vld [vmem:[%s7126_s7 + $0x90] sm:$0xff] }
  0x52   :  { %5106 = vmatprep.subr.bf16.mxu1 %v5659_v6  ;;  %v4076_v60 = vld [vmem:[%s7126_s7 + $0x98] sm:$0xff]  ;;  %v4077_v61 = vld [vmem:[%s7126_s7 + $0xa0] sm:$0xff]  ;;  %v4078_v62 = vld [vmem:[%s7126_s7 + $0xa8] sm:$0xff] }
  0x53   :  { %4588 = vmatmul.mubr.msk.f32.vlgmr.msra.gmra.mrb[0].mxu0 %vm281_vm1, %v5829_v22  ;;  %519 = vperm.xlu0 %5341, %v477_v46   ;;  %v4079_v63 = vld [vmem:[%s7126_s7 + $0xb0] sm:$0xff]  ;;  %v4080_v0 = vld [vmem:[%s7126_s7 + $0xb8] sm:$0xff]  ;;  %v4081_v1 = vld [vmem:[%s7126_s7 + $0xc0] sm:$0xff] }
  0x54   :  { %524 = vperm.xlu1 %5342, %v478_v47   ;;  %v4082_v2 = vld [vmem:[%s7126_s7 + $0xc8] sm:$0xff]  ;;  %v4083_v3 = vld [vmem:[%s7126_s7 + $0xd0] sm:$0xff]  ;;  %v4084_v4 = vld [vmem:[%s7126_s7 + $0xd8] sm:$0xff] }
  0x55   :  { %5108 = vmatpush3.bf16.msra.mxu1 %v5107_v23  ;;  %v4085_v5 = vld [vmem:[%s7126_s7 + $0xe0] sm:$0xff]  ;;  %v4086_v8 = vld [vmem:[%s7126_s7 + $0xe8] sm:$0xff]  ;;  %v4087_v9 = vld [vmem:[%s7126_s7 + $0xf0] sm:$0xff] }
  0x56   :  { %5109 = vmatprep.subr.bf16.mxu1 %v5659_v6  ;;  %v4088_v10 = vld [vmem:[%s7126_s7 + $0xf8] sm:$0xff]  ;;  %v4107_v11 = vld [vmem:[%s7128_s9 + $0x4] sm:$0xf]  ;;  %v4150_v13 = vld [vmem:[%s7126_s7 + $0x108] sm:$0xff] }
  0x57   :  { %529 = vperm.xlu0 %5341, %v479_v48   ;;  %v4149_v12 = vld [vmem:[%s7126_s7 + $0x100] sm:$0xff]  ;;  %v4151_v14 = vld [vmem:[%s7126_s7 + $0x110] sm:$0xff]  ;;  %v4152_v15 = vld [vmem:[%s7126_s7 + $0x118] sm:$0xff] }
  0x58   :  { %534 = vperm.xlu1 %5342, %v480_v49   ;;  %v4153_v16 = vld [vmem:[%s7126_s7 + $0x120] sm:$0xff]  ;;  %v4154_v17 = vld [vmem:[%s7126_s7 + $0x128] sm:$0xff]  ;;  %v4155_v18 = vld [vmem:[%s7126_s7 + $0x130] sm:$0xff] }
  0x59   :  { %5111 = vmatpush3.bf16.msra.mxu1 %v5110_v26  ;;  %v4156_v19 = vld [vmem:[%s7126_s7 + $0x138] sm:$0xff]  ;;  %v4157_v20 = vld [vmem:[%s7126_s7 + $0x140] sm:$0xff]  ;;  %v4158_v21 = vld [vmem:[%s7126_s7 + $0x148] sm:$0xff] }
  0x5a   :  { %5112 = vmatprep.subr.bf16.mxu1 %v5659_v6  ;;  %v4159_v23 = vld [vmem:[%s7126_s7 + $0x150] sm:$0xff]  ;;  %v4160_v24 = vld [vmem:[%s7126_s7 + $0x158] sm:$0xff]  ;;  %v4161_v25 = vld [vmem:[%s7126_s7 + $0x160] sm:$0xff] }
  0x5b   :  { %539 = vperm.xlu0 %5341, %v481_v50   ;;  %v4162_v26 = vld [vmem:[%s7126_s7 + $0x168] sm:$0xff]  ;;  %v4163_v27 = vld [vmem:[%s7126_s7 + $0x170] sm:$0xff]  ;;  %v4164_v28 = vld [vmem:[%s7126_s7 + $0x178] sm:$0xff] }
  0x5c   :  { %544 = vperm.xlu1 %5342, %v482_v51   ;;  %v4225_v30 = vld [vmem:[%s7126_s7 + $0x180] sm:$0xff]  ;;  %v4226_v31 = vld [vmem:[%s7126_s7 + $0x188] sm:$0xff]  ;;  %v4228_v34 = vld [vmem:[%s7126_s7 + $0x198] sm:$0xff] }
  0x5d   :  { %5114 = vmatpush3.bf16.msra.mxu1 %v5113_v29  ;;  %v4183_v29 = vld [vmem:[%s7128_s9 + $0x8] sm:$0xf]  ;;  %v4012_v33 = vld [vmem:[%s7154_s0] ss:$0 sm:$0xff]  ;;  %v4232_v45 = vld [vmem:[%s7126_s7 + $0x1b8] sm:$0xff] }
  0x5e   :  { %5115 = vmatprep.subr.bf16.mxu1 %v5659_v6  ;;  %v4230_v39 = vld [vmem:[%s7126_s7 + $0x1a8] sm:$0xff]  ;;  %v4229_v44 = vld [vmem:[%s7126_s7 + $0x1a0] sm:$0xff]  ;;  %v4231_v47 = vld [vmem:[%s7126_s7 + $0x1b0] sm:$0xff] }
  0x5f   :  { %549 = vperm.xlu0 %5341, %v483_v52   ;;  %v455_v46 = vld [vmem:[%s7125_s6] sm:$0xff]  ;;  %v4234_v48 = vld [vmem:[%s7126_s7 + $0x1c8] sm:$0xff]  ;;  %v4236_v50 = vld [vmem:[%s7126_s7 + $0x1d8] sm:$0xff] }
  0x60   :  { %554 = vperm.xlu1 %5342, %v484_v53   ;;  %4627 = vmatprep.mubr.msk.f32.mxu0 %vm567_vm2, %v455_v46  ;;  %v4233_v49 = vld [vmem:[%s7126_s7 + $0x1c0] sm:$0xff]  ;;  %v4235_v51 = vld [vmem:[%s7126_s7 + $0x1d0] sm:$0xff]  ;;  %v4238_v52 = vld [vmem:[%s7126_s7 + $0x1e8] sm:$0xff] }
  0x61   :  { %5117 = vmatpush3.bf16.msra.mxu1 %v5116_v32  ;;  %v4227_v32 = vld [vmem:[%s7126_s7 + $0x190] sm:$0xff]  ;;  %v4237_v53 = vld [vmem:[%s7126_s7 + $0x1e0] sm:$0xff]  ;;  %v466_v46 = vld [vmem:[%s7125_s6 + $0x58] sm:$0xff] }
  0x62   :  { %5118 = vmatprep.subr.bf16.mxu1 %v5659_v6 }
  0x63   :  { %559 = vperm.xlu0 %5341, %v485_v54   ;;  %v4240_v54 = vld [vmem:[%s7126_s7 + $0x1f8] sm:$0xff] }
  0x64   :  { %564 = vperm.xlu1 %5342, %v486_v55   ;;  %v4239_v55 = vld [vmem:[%s7126_s7 + $0x1f0] sm:$0xff] }
  0x65   :  { %5120 = vmatpush3.bf16.msra.mxu1 %v5119_v35 }
  0x66   :  { %5121 = vmatprep.subr.bf16.mxu1 %v5659_v6 }
  0x67   :  { %920 = vperm.xlu0 %5341, %v917_v56   ;;  %v3241_v56 = vld [vmem:[%s7132_s13] sm:$0xff] }
  0x68   :  { %1148 = vperm.xlu1 %5342, %v4073_v57   ;;  %v4259_v57 = vld [vmem:[%s7128_s9 + $0xc] sm:$0xf] }
  0x69   :  { %5123 = vmatpush3.bf16.msra.mxu1 %v5122_v38 }
  0x6a   :  { %5148 = vmatprep.subr.bf16.mxu1 %v5659_v6 }
  0x6b   :  { %1153 = vperm.xlu0 %5341, %v4074_v58   ;;  %v3243_v58 = vld [vmem:[%s7132_s13 + $0x10] sm:$0xff] }
  0x6c   :  { %1158 = vperm.xlu1 %5342, %v4075_v59   ;;  %v3242_v59 = vld [vmem:[%s7132_s13 + $0x8] sm:$0xff] }
  0x6f   :  { %1163 = vperm.xlu0 %5341, %v4076_v60   ;;  %v3245_v60 = vld [vmem:[%s7132_s13 + $0x20] sm:$0xff] }
  0x70   :  { %1168 = vperm.xlu1 %5342, %v4077_v61   ;;  %v3244_v61 = vld [vmem:[%s7132_s13 + $0x18] sm:$0xff] }
  0x73   :  { %1173 = vperm.xlu0 %5341, %v4078_v62   ;;  %v3247_v62 = vld [vmem:[%s7132_s13 + $0x30] sm:$0xff] }
  0x74   :  { %1178 = vperm.xlu1 %5342, %v4079_v63   ;;  %v3246_v63 = vld [vmem:[%s7132_s13 + $0x28] sm:$0xff] }
  0x77   :  { %1183 = vperm.xlu0 %5341, %v4080_v0   ;;  %v3249_v0 = vld [vmem:[%s7132_s13 + $0x40] sm:$0xff] }
  0x78   :  { %1188 = vperm.xlu1 %5342, %v4081_v1   ;;  %v3248_v1 = vld [vmem:[%s7132_s13 + $0x38] sm:$0xff] }
  0x7b   :  { %1193 = vperm.xlu0 %5341, %v4082_v2   ;;  %v2917_v2 = vld [vmem:[%s7130_s11] sm:$0xff] }
  0x7c   :  { %1198 = vperm.xlu1 %5342, %v4083_v3   ;;  %v3250_v3 = vld [vmem:[%s7132_s13 + $0x48] sm:$0xff] }
  0x7f   :  { %1203 = vperm.xlu0 %5341, %v4084_v4   ;;  %v3251_v4 = vld [vmem:[%s7132_s13 + $0x50] sm:$0xff] }
  0x80   :  { %1208 = vperm.xlu1 %5342, %v4085_v5   ;;  %v2918_v5 = vld [vmem:[%s7130_s11 + $0x8] sm:$0xff] }
  0x83   :  { %1213 = vperm.xlu0 %5341, %v4086_v8   ;;  %v2919_v8 = vld [vmem:[%s7130_s11 + $0x10] sm:$0xff] }
  0x84   :  { %1218 = vperm.xlu1 %5342, %v4087_v9   ;;  %v3252_v9 = vld [vmem:[%s7132_s13 + $0x58] sm:$0xff] }
  0x87   :  { %1223 = vperm.xlu0 %5341, %v4088_v10   ;;  %v3253_v10 = vld [vmem:[%s7132_s13 + $0x60] sm:$0xff] }
  0x88   :  { %1579 = vperm.xlu1 %5342, %v4107_v11   ;;  %v2920_v11 = vld [vmem:[%s7130_s11 + $0x18] sm:$0xff] }
  0x8b   :  { %1807 = vperm.xlu0 %5341, %v4149_v12   ;;  %v2921_v12 = vld [vmem:[%s7130_s11 + $0x20] sm:$0xff] }
  0x8c   :  { %1812 = vperm.xlu1 %5342, %v4150_v13   ;;  %v3254_v13 = vld [vmem:[%s7132_s13 + $0x68] sm:$0xff] }
  0x8f   :  { %1817 = vperm.xlu0 %5341, %v4151_v14   ;;  %v3255_v14 = vld [vmem:[%s7132_s13 + $0x70] sm:$0xff] }
  0x90   :  { %1822 = vperm.xlu1 %5342, %v4152_v15   ;;  %v2922_v15 = vld [vmem:[%s7130_s11 + $0x28] sm:$0xff] }
  0x93   :  { %1827 = vperm.xlu0 %5341, %v4153_v16   ;;  %v2923_v16 = vld [vmem:[%s7130_s11 + $0x30] sm:$0xff] }
  0x94   :  { %1832 = vperm.xlu1 %5342, %v4154_v17   ;;  %v3256_v17 = vld [vmem:[%s7132_s13 + $0x78] sm:$0xff] }
  0x97   :  { %1837 = vperm.xlu0 %5341, %v4155_v18   ;;  %v2925_v18 = vld [vmem:[%s7130_s11 + $0x40] sm:$0xff] }
  0x98   :  { %1842 = vperm.xlu1 %5342, %v4156_v19   ;;  %v2924_v19 = vld [vmem:[%s7130_s11 + $0x38] sm:$0xff] }
  0x9b   :  { %1847 = vperm.xlu0 %5341, %v4157_v20   ;;  %v2927_v20 = vld [vmem:[%s7130_s11 + $0x50] sm:$0xff] }
  0x9c   :  { %1852 = vperm.xlu1 %5342, %v4158_v21   ;;  %v2926_v21 = vld [vmem:[%s7130_s11 + $0x48] sm:$0xff] }
  0x9f   :  { %1857 = vperm.xlu0 %5341, %v4159_v23   ;;  %v2929_v23 = vld [vmem:[%s7130_s11 + $0x60] sm:$0xff] }
  0xa0   :  { %1862 = vperm.xlu1 %5342, %v4160_v24   ;;  %v2928_v24 = vld [vmem:[%s7130_s11 + $0x58] sm:$0xff] }
  0xa3   :  { %1867 = vperm.xlu0 %5341, %v4161_v25   ;;  %v2931_v25 = vld [vmem:[%s7130_s11 + $0x70] sm:$0xff] }
  0xa4   :  { %1872 = vperm.xlu1 %5342, %v4162_v26  }
  0xa7   :  { %1877 = vperm.xlu0 %5341, %v4163_v27   ;;  %v2930_v27 = vld [vmem:[%s7130_s11 + $0x68] sm:$0xff] }
  0xa8   :  { %1882 = vperm.xlu1 %5342, %v4164_v28   ;;  %v3643_v28 = vld [vmem:[#allocation6] sm:$0x1] }
  0xab   :  { %2238 = vperm.xlu0 %5341, %v4183_v29  }
  0xac   :  { %2466 = vperm.xlu1 %5342, %v4225_v30   ;;  %v2932_v30 = vld [vmem:[%s7130_s11 + $0x78] sm:$0xff] }
  0xaf   :  { %2471 = vperm.xlu0 %5341, %v4226_v31  }
  0xb0   :  { %2476 = vperm.xlu1 %5342, %v4227_v32  }
  0xb3   :  { %2481 = vperm.xlu0 %5341, %v4228_v34  }
  0xb4   :  { %2486 = vperm.xlu1 %5342, %v4229_v44   ;;  %v464_v44 = vld [vmem:[%s7125_s6 + $0x48] sm:$0xff] }
  0xb7   :  { %2491 = vperm.xlu0 %5341, %v4230_v39   ;;  %v459_v39 = vld [vmem:[%s7125_s6 + $0x20] sm:$0xff] }
  0xb8   :  { %2496 = vperm.xlu1 %5342, %v4231_v47   ;;  %v467_v47 = vld [vmem:[%s7125_s6 + $0x60] sm:$0xff] }
  0xbb   :  { %2501 = vperm.xlu0 %5341, %v4232_v45   ;;  %v465_v45 = vld [vmem:[%s7125_s6 + $0x50] sm:$0xff] }
  0xbc   :  { %2506 = vperm.xlu1 %5342, %v4233_v49   ;;  %v469_v49 = vld [vmem:[%s7125_s6 + $0x70] sm:$0xff] }
  0xbf   :  { %2511 = vperm.xlu0 %5341, %v4234_v48   ;;  %v468_v48 = vld [vmem:[%s7125_s6 + $0x68] sm:$0xff] }
  0xc0   :  { %2516 = vperm.xlu1 %5342, %v4235_v51   ;;  %v4032_v51 = vld [vmem:[%s7152_s28 + $0x20] sm:$0xff] }
  0xc3   :  { %2521 = vperm.xlu0 %5341, %v4236_v50   ;;  %v470_v50 = vld [vmem:[%s7125_s6 + $0x78] sm:$0xff] }
  0xc4   :  { %2526 = vperm.xlu1 %5342, %v4237_v53  }
  0xc6   :  { %v490_v26 = vpop.permute.xlu0 %489  ;;  %v6179_v31 = vpop.permute.xlu1 %499 }
  0xc7   :  { %2531 = vperm.xlu0 %5341, %v4238_v52   ;;  %v4033_v52 = vld [vmem:[%s7152_s28 + $0x28] sm:$0xff] }
  0xc8   :  { %2536 = vperm.xlu1 %5342, %v4239_v55   ;;  %v5149_v53 = vpack.c.bf16 %v4033_v52, %v4032_v51 }
  0xca   :  { %v495_v29 = vpop.permute.xlu0 %494 }
  0xcb   :  { %2541 = vperm.xlu0 %5341, %v4240_v54   ;;  %v505_v54 = vpop.permute.xlu1 %504 }
  0xcc   :  { %2897 = vperm.xlu1 %5342, %v4259_v57  }
  0xcf   :  { %3259 = vperm.xlu0 %5341, %v3241_v56   ;;  %v515_v55 = vpop.permute.xlu1 %514  ;;  %v510_v56 = vpop.permute.xlu0 %509 }
  0xd0   :  { %3264 = vperm.xlu1 %5342, %v3242_v59  }
  0xd3   :  { %3269 = vperm.xlu0 %5341, %v3243_v58  }
  0xd4   :  { %3274 = vperm.xlu1 %5342, %v3244_v61  }
  0xd7   :  { %3279 = vperm.xlu0 %5341, %v3245_v60  }
  0xd8   :  { %3284 = vperm.xlu1 %5342, %v3246_v63  }
  0xdb   :  { %3289 = vperm.xlu0 %5341, %v3247_v62   ;;  %v525_v62 = vpop.permute.xlu1 %524 }
  0xdc   :  { %3294 = vperm.xlu1 %5342, %v3248_v1   ;;  %v520_v1 = vpop.permute.xlu0 %519 }
  0xdf   :  { %3299 = vperm.xlu0 %5341, %v3249_v0  }
  0xe0   :  { %3304 = vperm.xlu1 %5342, %v3250_v3  }
  0xe3   :  { %2935 = vperm.xlu0 %5341, %v2917_v2  }
  0xe4   :  { %2940 = vperm.xlu1 %5342, %v2918_v5  }
  0xe7   :  { %3309 = vperm.xlu0 %5341, %v3251_v4  }
  0xe8   :  { %3314 = vperm.xlu1 %5342, %v3252_v9  }
  0xeb   :  { %2945 = vperm.xlu0 %5341, %v2919_v8  }
  0xec   :  { %2950 = vperm.xlu1 %5342, %v2920_v11  }
  0xef   :  { %3319 = vperm.xlu0 %5341, %v3253_v10  }
  0xf0   :  { %3324 = vperm.xlu1 %5342, %v3254_v13  }
  0xf3   :  { %2955 = vperm.xlu0 %5341, %v2921_v12   ;;  %v535_v12 = vpop.permute.xlu1 %534 }
  0xf4   :  { %2960 = vperm.xlu1 %5342, %v2922_v15  }
  0xf7   :  { %3329 = vperm.xlu0 %5341, %v3255_v14   ;;  %v530_v14 = vpop.permute.xlu0 %529 }
  0xf8   :  { %3334 = vperm.xlu1 %5342, %v3256_v17  }
  0xfb   :  { %2965 = vperm.xlu0 %5341, %v2923_v16  }
  0xfc   :  { %2970 = vperm.xlu1 %5342, %v2924_v19  }
  0xff   :  { %2975 = vperm.xlu0 %5341, %v2925_v18  }
 0x100   :  { %2980 = vperm.xlu1 %5342, %v2926_v21  }
 0x103   :  { %2985 = vperm.xlu0 %5341, %v2927_v20  }
 0x104   :  { %2990 = vperm.xlu1 %5342, %v2928_v24  }
 0x107   :  { %2995 = vperm.xlu0 %5341, %v2929_v23  }
 0x108   :  { %3000 = vperm.xlu1 %5342, %v2930_v27  }
 0x10b   :  { %3005 = vperm.xlu0 %5341, %v2931_v25   ;;  %v545_v25 = vpop.permute.xlu1 %544 }
 0x10c   :  { %3010 = vperm.xlu1 %5342, %v2932_v30   ;;  %v540_v30 = vpop.permute.xlu0 %539 }
 0x10f   :  { %3646 = vperm.xlu0 %5341, %v3643_v28  }
 0x126   :  { %v351_v35 = vpop.f32.mrb[0].mxu0 }
 0x127   :  { %v352_v36 = vadd.f32 %v4012_v33, %v351_v35  ;;  %v4589_v37 = vpop.f32.mrb[1].mxu0  ;;  %v4014_v33 = vld [vmem:[%s7124_s5] ss:$0 sm:$0xff] }
 0x128   :  { %v456_v37 = vld [vmem:[%s7125_s6 + $0x8] sm:$0xff] }
 0x129   :  { %v356_v38 = vmul.f32 0.70710677, %v352_v36  ;;  %v355_v41 = vmul.f32 0.5, %v352_v36 }
 0x12b   :  { %5343 = verf.f32 %v356_v38  ;;  %v457_v38 = vld [vmem:[%s7125_s6 + $0x10] sm:$0xff] }
 0x135   :  { %v5344_v40 = vpop.eup %5343 }
 0x136   :  { %v358_v42 = vadd.f32 1.0, %v5344_v40  ;;  %v460_v40 = vld [vmem:[%s7125_s6 + $0x28] sm:$0xff] }
 0x138   :  { %v359_v43 = vmul.f32 %v358_v42, %v355_v41  ;;  %v461_v41 = vld [vmem:[%s7125_s6 + $0x30] sm:$0xff]  ;;  %v462_v42 = vld [vmem:[%s7125_s6 + $0x38] sm:$0xff] }
 0x13a   :  { %4623 = vmatmul.mubr.f32.vlgmr.msra.gmra.mrb[0].mxu1 %v359_v43  ;;  %v463_v43 = vld [vmem:[%s7125_s6 + $0x40] sm:$0xff] }
 0x13b   :  { %4694 = vmatprep.mubr.msk.f32.mxu1 %vm5660_vm0, %v5661_v7  ;;  %5150 = vmatpush3.bf16.msra.mxu1 %v5149_v53 }
 0x13c   :  { %5151 = vmatprep.subr.bf16.mxu1 %v5659_v6 }
 0x20d   :  { %v442_v32 = vpop.f32.mrb[0].mxu1 }
 0x20e   :  { %v446_v34 = vadd.f32 %v442_v32, %v5829_v22  ;;  %v4624_v35 = vpop.f32.mrb[1].mxu1  ;;  %v458_v22 = vld [vmem:[%s7125_s6 + $0x18] sm:$0xff] }
 0x210   :  { %v6185_v36 = vadd.f32 %v4014_v33, %v446_v34 }
 0x212   :  { %4625 = vmatprep.subr.msk.mxu0 %vm616_vm3, %v6185_v36 }
 0x213   :  { %4626 = vmatpush3.msk.msra.mxu0 %vm616_vm3, %v6185_v36 }
 0x214   :  { %4628 = vmatmul.mubr.msk.f32.vlgmr.msra.gmra.mrb[2].mxu0 %vm567_vm2, %v456_v37  ;;  %5124 = vmatprep.subr.bf16.mxu0 %v5659_v6 }
 0x215   :  { %4630 = vmatprep.mubr.msk.f32.mxu0 %vm567_vm2, %v457_v38 }
 0x218   :  { %4631 = vmatmul.mubr.msk.f32.gmra.mrb[4].mxu0 %vm567_vm2, %v458_v22 }
 0x219   :  { %4633 = vmatprep.mubr.msk.f32.mxu0 %vm567_vm2, %v459_v39 }
 0x21c   :  { %4634 = vmatmul.mubr.msk.f32.gmra.mrb[6].mxu0 %vm567_vm2, %v460_v40 }
 0x21d   :  { %4636 = vmatprep.mubr.msk.f32.mxu0 %vm567_vm2, %v461_v41 }
 0x220   :  { %4637 = vmatmul.mubr.msk.f32.gmra.mrb[8].mxu0 %vm567_vm2, %v462_v42 }
 0x221   :  { %4639 = vmatprep.mubr.msk.f32.mxu0 %vm567_vm2, %v463_v43 }
 0x224   :  { %4640 = vmatmul.mubr.msk.f32.gmra.mrb[10].mxu0 %vm567_vm2, %v464_v44 }
 0x225   :  { %4642 = vmatprep.mubr.msk.f32.mxu0 %vm567_vm2, %v465_v45 }
 0x228   :  { %4643 = vmatmul.mubr.msk.f32.gmra.mrb[12].mxu0 %vm567_vm2, %v466_v46 }
 0x229   :  { %4645 = vmatprep.mubr.msk.f32.mxu0 %vm567_vm2, %v467_v47 }
 0x22c   :  { %4646 = vmatmul.mubr.msk.f32.gmra.mrb[14].mxu0 %vm567_vm2, %v468_v48 }
 0x22d   :  { %4648 = vmatprep.mubr.msk.f32.mxu0 %vm567_vm2, %v469_v49 }
 0x230   :  { %4649 = vmatmul.mubr.msk.f32.gmra.mrb[16].mxu0 %vm567_vm2, %v470_v50  ;;  %v555_v50 = vpop.permute.xlu1 %554 }
 0x231   :  { %4683 = vmatprep.mubr.msk.f32.mxu0 %vm5660_vm0, %v5661_v7 }
 0x2e7   :  { %v4629_v57 = vpop.f32.mrb[2].mxu0 }
 0x2e8   :  { %v692_v58 = vadd.f32 %v4629_v57, %v495_v29  ;;  %v686_v59 = vpop.f32.mrb[3].mxu0 }
 0x2e9   :  { %v687_v60 = vadd.f32 %v686_v59, %v490_v26 }
 0x2ea   :  { %v782_v61 = vmul.f32 0.70710677, %v692_v58  ;;  %v766_v26 = vmul.f32 0.5, %v692_v58 }
 0x2eb   :  { %v781_v63 = vmul.f32 0.70710677, %v687_v60  ;;  %v4632_v0 = vpop.f32.mrb[4].mxu0 }
 0x2ec   :  { %5345 = verf.f32 %v782_v61  ;;  %v702_v2 = vadd.f32 %v4632_v0, %v505_v54  ;;  %v696_v3 = vpop.f32.mrb[5].mxu0  ;;  %v550_v54 = vpop.permute.xlu0 %549 }
 0x2ed   :  { %5347 = verf.f32 %v781_v63  ;;  %v697_v4 = vadd.f32 %v696_v3, %v6179_v31  ;;  %v765_v31 = vmul.f32 0.5, %v687_v60 }
 0x2ee   :  { %v784_v5 = vmul.f32 0.70710677, %v702_v2  ;;  %v768_v41 = vmul.f32 0.5, %v702_v2 }
 0x2ef   :  { %v783_v8 = vmul.f32 0.70710677, %v697_v4  ;;  %v4635_v9 = vpop.f32.mrb[6].mxu0  ;;  %v767_v43 = vmul.f32 0.5, %v697_v4 }
 0x2f0   :  { %5349 = verf.f32 %v784_v5  ;;  %v712_v10 = vadd.f32 %v4635_v9, %v515_v55  ;;  %v706_v11 = vpop.f32.mrb[7].mxu0 }
 0x2f1   :  { %5351 = verf.f32 %v783_v8  ;;  %v707_v13 = vadd.f32 %v706_v11, %v510_v56  ;;  %v565_v11 = vpop.permute.xlu1 %564 }
 0x2f2   :  { %v786_v15 = vmul.f32 0.70710677, %v712_v10  ;;  %v770_v58 = vmul.f32 0.5, %v712_v10 }
 0x2f3   :  { %v785_v16 = vmul.f32 0.70710677, %v707_v13  ;;  %v4638_v17 = vpop.f32.mrb[8].mxu0  ;;  %v769_v60 = vmul.f32 0.5, %v707_v13 }
 0x2f4   :  { %5353 = verf.f32 %v786_v15  ;;  %v6262_v18 = vadd.f32 %v4638_v17, %v525_v62  ;;  %v716_v19 = vpop.f32.mrb[9].mxu0  ;;  %v560_v17 = vpop.permute.xlu0 %559 }
 0x2f5   :  { %5355 = verf.f32 %v785_v16  ;;  %v6264_v20 = vadd.f32 %v716_v19, %v520_v1 }
 0x2f6   :  { %v5346_v21 = vpop.eup %5345  ;;  %v788_v23 = vmul.f32 0.70710677, %v6262_v18 }
 0x2f7   :  { %v5348_v24 = vpop.eup %5347  ;;  %v814_v27 = vadd.f32 1.0, %v5346_v21  ;;  %v787_v28 = vmul.f32 0.70710677, %v6264_v20  ;;  %v4641_v29 = vpop.f32.mrb[10].mxu0 }
 0x2f8   :  { %v813_v32 = vadd.f32 1.0, %v5348_v24  ;;  %5357 = verf.f32 %v788_v23  ;;  %v6268_v33 = vadd.f32 %v4641_v29, %v535_v12  ;;  %v726_v34 = vpop.f32.mrb[11].mxu0  ;;  %v772_v12 = vmul.f32 0.5, %v6262_v18 }
 0x2f9   :  { %v830_v35 = vmul.f32 %v814_v27, %v766_v26  ;;  %5359 = verf.f32 %v787_v28  ;;  %v6270_v37 = vadd.f32 %v726_v34, %v530_v14  ;;  %v771_v14 = vmul.f32 0.5, %v6264_v20 }
 0x2fa   :  { %v5350_v38 = vpop.eup %5349  ;;  %v829_v22 = vmul.f32 %v813_v32, %v765_v31  ;;  %v790_v39 = vmul.f32 0.70710677, %v6268_v33  ;;  %v774_v20 = vmul.f32 0.5, %v6268_v33 }
 0x2fb   :  { %v5352_v40 = vpop.eup %5351  ;;  %v816_v42 = vadd.f32 1.0, %v5350_v38  ;;  %v789_v44 = vmul.f32 0.70710677, %v6270_v37  ;;  %v4644_v45 = vpop.f32.mrb[12].mxu0  ;;  %v773_v34 = vmul.f32 0.5, %v6270_v37 }
 0x2fc   :  { %v5125_v46 = vpack.c.bf16 %v830_v35, %v829_v22  ;;  %v815_v47 = vadd.f32 1.0, %v5352_v40  ;;  %5361 = verf.f32 %v790_v39  ;;  %v6274_v48 = vadd.f32 %v4644_v45, %v545_v25  ;;  %v736_v49 = vpop.f32.mrb[13].mxu0 }
 0x2fd   :  { %v832_v51 = vmul.f32 %v816_v42, %v768_v41  ;;  %5363 = verf.f32 %v789_v44  ;;  %v6276_v52 = vadd.f32 %v736_v49, %v540_v30 }
 0x2fe   :  { %v5354_v53 = vpop.eup %5353  ;;  %v831_v55 = vmul.f32 %v815_v47, %v767_v43  ;;  %v792_v56 = vmul.f32 0.70710677, %v6274_v48  ;;  %5126 = vmatpush3.bf16.msra.mxu0 %v5125_v46  ;;  %v776_v41 = vmul.f32 0.5, %v6274_v48 }
 0x2ff   :  { %v5356_v57 = vpop.eup %5355  ;;  %v818_v59 = vadd.f32 1.0, %v5354_v53  ;;  %v791_v61 = vmul.f32 0.70710677, %v6276_v52  ;;  %v4647_v62 = vpop.f32.mrb[14].mxu0  ;;  %5127 = vmatprep.subr.bf16.mxu0 %v5659_v6  ;;  %v775_v43 = vmul.f32 0.5, %v6276_v52 }
 0x300   :  { %v5128_v63 = vpack.c.bf16 %v832_v51, %v831_v55  ;;  %v817_v0 = vadd.f32 1.0, %v5356_v57  ;;  %5365 = verf.f32 %v792_v56  ;;  %v752_v1 = vadd.f32 %v4647_v62, %v555_v50  ;;  %v746_v2 = vpop.f32.mrb[15].mxu0 }
 0x301   :  { %v834_v3 = vmul.f32 %v818_v59, %v770_v58  ;;  %5367 = verf.f32 %v791_v61  ;;  %v747_v4 = vadd.f32 %v746_v2, %v550_v54  ;;  %v4034_v2 = vld [vmem:[%s7152_s28 + $0x30] sm:$0xff] }
 0x302   :  { %v5358_v5 = vpop.eup %5357  ;;  %v833_v8 = vmul.f32 %v817_v0, %v769_v60  ;;  %v794_v9 = vmul.f32 0.70710677, %v752_v1  ;;  %5129 = vmatpush3.bf16.msra.mxu0 %v5128_v63  ;;  %v778_v49 = vmul.f32 0.5, %v752_v1  ;;  %v845_v1 = vld [vmem:[%s7127_s8] sm:$0xf] }
 0x303   :  { %v5360_v10 = vpop.eup %5359  ;;  %v820_v13 = vadd.f32 1.0, %v5358_v5  ;;  %v793_v15 = vmul.f32 0.70710677, %v747_v4  ;;  %v4650_v16 = vpop.f32.mrb[16].mxu0  ;;  %5130 = vmatprep.subr.bf16.mxu0 %v5659_v6  ;;  %v777_v53 = vmul.f32 0.5, %v747_v4  ;;  %v4039_v5 = vld [vmem:[%s7153_s22 + $0x80] sm:$0xff] }
 0x304   :  { %v5131_v19 = vpack.c.bf16 %v834_v3, %v833_v8  ;;  %v819_v21 = vadd.f32 1.0, %v5360_v10  ;;  %5369 = verf.f32 %v794_v9  ;;  %v762_v23 = vadd.f32 %v4650_v16, %v565_v11  ;;  %v756_v24 = vpop.f32.mrb[17].mxu0  ;;  %v4035_v3 = vld [vmem:[%s7152_s28 + $0x38] sm:$0xff]  ;;  %v4040_v8 = vld [vmem:[%s7153_s22 + $0x88] sm:$0xff] }
 0x305   :  { %v836_v25 = vmul.f32 %v820_v13, %v772_v12  ;;  %5371 = verf.f32 %v793_v15  ;;  %v757_v26 = vadd.f32 %v756_v24, %v560_v17  ;;  %v5152_v4 = vpack.c.bf16 %v4035_v3, %v4034_v2  ;;  %v921_v12 = vpop.permute.xlu0 %920  ;;  %v4041_v15 = vld [vmem:[%s7153_s22 + $0x90] sm:$0xff]  ;;  %v4042_v16 = vld [vmem:[%s7153_s22 + $0x98] sm:$0xff]  ;;  %v4108_v2 = vld [vmem:[%s7152_s28 + $0x40] sm:$0xff] }
 0x306   :  { %v5362_v27 = vpop.eup %5361  ;;  %v835_v28 = vmul.f32 %v819_v21, %v771_v14  ;;  %v796_v29 = vmul.f32 0.70710677, %v762_v23  ;;  %5132 = vmatpush3.bf16.msra.mxu0 %v5131_v19  ;;  %v780_v58 = vmul.f32 0.5, %v762_v23  ;;  %v5155_v13 = vpack.c.bf16 %v4040_v8, %v4039_v5  ;;  %v4044_v19 = vld [vmem:[%s7153_s22 + $0xa8] sm:$0xff]  ;;  %v4045_v23 = vld [vmem:[%s7153_s22 + $0xb0] sm:$0xff]  ;;  %v4046_v24 = vld [vmem:[%s7153_s22 + $0xb8] sm:$0xff]  ;;  %v1149_v8 = vpop.permute.xlu1 %1148 }
 0x307   :  { %v5364_v18 = vpop.eup %5363  ;;  %v822_v30 = vadd.f32 1.0, %v5362_v27  ;;  %v795_v31 = vmul.f32 0.70710677, %v757_v26  ;;  %5133 = vmatprep.subr.bf16.mxu0 %v5659_v6  ;;  %v779_v60 = vmul.f32 0.5, %v757_v26  ;;  %5153 = vmatpush3.bf16.msra.mxu1 %v5152_v4  ;;  %v5158_v17 = vpack.c.bf16 %v4042_v16, %v4041_v15  ;;  %v4047_v26 = vld [vmem:[%s7153_s22 + $0xc0] sm:$0xff]  ;;  %v4048_v27 = vld [vmem:[%s7153_s22 + $0xc8] sm:$0xff] }
 0x308   :  { %v5134_v32 = vpack.c.bf16 %v836_v25, %v835_v28  ;;  %v821_v35 = vadd.f32 1.0, %v5364_v18  ;;  %5373 = verf.f32 %v796_v29  ;;  %5154 = vmatprep.subr.bf16.mxu1 %v5659_v6  ;;  %v5164_v25 = vpack.c.bf16 %v4046_v24, %v4045_v23  ;;  %v4049_v29 = vld [vmem:[%s7153_s22 + $0xd0] sm:$0xff]  ;;  %v4050_v18 = vld [vmem:[%s7153_s22 + $0xd8] sm:$0xff]  ;;  %v4109_v3 = vld [vmem:[%s7152_s28 + $0x48] sm:$0xff] }
 0x309   :  { %v838_v38 = vmul.f32 %v822_v30, %v774_v20  ;;  %5375 = verf.f32 %v795_v31  ;;  %v5167_v28 = vpack.c.bf16 %v4048_v27, %v4047_v26  ;;  %v5170_v20 = vpack.c.bf16 %v4050_v18, %v4049_v29  ;;  %v4051_v30 = vld [vmem:[%s7153_s22 + $0xe0] sm:$0xff]  ;;  %v4052_v31 = vld [vmem:[%s7153_s22 + $0xe8] sm:$0xff]  ;;  %v1154_v5 = vpop.permute.xlu0 %1153 }
 0x30a   :  { %v5366_v22 = vpop.eup %5365  ;;  %v837_v39 = vmul.f32 %v821_v35, %v773_v34  ;;  %5135 = vmatpush3.bf16.msra.mxu0 %v5134_v32  ;;  %v5173_v32 = vpack.c.bf16 %v4052_v31, %v4051_v30  ;;  %v4053_v34 = vld [vmem:[%s7153_s22 + $0xf0] sm:$0xff]  ;;  %v4054_v35 = vld [vmem:[%s7153_s22 + $0xf8] sm:$0xff]  ;;  %v5203_v4 = vpack.c.bf16 %v4109_v3, %v4108_v2 }
 0x30b   :  { %v5368_v40 = vpop.eup %5367  ;;  %v824_v42 = vadd.f32 1.0, %v5366_v22  ;;  %5136 = vmatprep.subr.bf16.mxu0 %v5659_v6  ;;  %v4037_v22 = vld [vmem:[%s7154_s0 + $0x1] ss:$0 sm:$0xff] }
 0x30c   :  { %v5137_v33 = vpack.c.bf16 %v838_v38, %v837_v39  ;;  %v823_v44 = vadd.f32 1.0, %v5368_v40  ;;  %v5176_v38 = vpack.c.bf16 %v4054_v35, %v4053_v34 }
 0x30d   :  { %v840_v45 = vmul.f32 %v824_v42, %v776_v41 }
 0x30e   :  { %v5370_v46 = vpop.eup %5369  ;;  %v839_v37 = vmul.f32 %v823_v44, %v775_v43  ;;  %5138 = vmatpush3.bf16.msra.mxu0 %v5137_v33 }
 0x30f   :  { %v5372_v47 = vpop.eup %5371  ;;  %v826_v50 = vadd.f32 1.0, %v5370_v46  ;;  %5139 = vmatprep.subr.bf16.mxu0 %v5659_v6  ;;  %v4057_v46 = vld [vmem:[%s7125_s6 + $0x80] sm:$0xff] }
 0x310   :  { %v5140_v51 = vpack.c.bf16 %v840_v45, %v839_v37  ;;  %v825_v54 = vadd.f32 1.0, %v5372_v47  ;;  %v4056_v47 = vld [vmem:[%s7124_s5 + $0x1] ss:$0 sm:$0xff] }
 0x311   :  { %v842_v48 = vmul.f32 %v826_v50, %v778_v49 }
 0x312   :  { %v5374_v55 = vpop.eup %5373  ;;  %v841_v56 = vmul.f32 %v825_v54, %v777_v53  ;;  %5141 = vmatpush3.bf16.msra.mxu0 %v5140_v51  ;;  %v4058_v53 = vld [vmem:[%s7125_s6 + $0x88] sm:$0xff]  ;;  %v4059_v54 = vld [vmem:[%s7125_s6 + $0x90] sm:$0xff] }
 0x313   :  { %v5376_v57 = vpop.eup %5375  ;;  %v828_v52 = vadd.f32 1.0, %v5374_v55  ;;  %5142 = vmatprep.subr.bf16.mxu0 %v5659_v6  ;;  %v4061_v55 = vld [vmem:[%s7125_s6 + $0xa0] sm:$0xff] }
 0x314   :  { %v5143_v59 = vpack.c.bf16 %v842_v48, %v841_v56  ;;  %v827_v61 = vadd.f32 1.0, %v5376_v57  ;;  %v4060_v48 = vld [vmem:[%s7125_s6 + $0x98] sm:$0xff]  ;;  %v4062_v56 = vld [vmem:[%s7125_s6 + $0xa8] sm:$0xff]  ;;  %v4063_v57 = vld [vmem:[%s7125_s6 + $0xb0] sm:$0xff] }
 0x315   :  { %v844_v62 = vmul.f32 %v828_v52, %v780_v58  ;;  %v4064_v58 = vld [vmem:[%s7125_s6 + $0xb8] sm:$0xff]  ;;  %v4065_v52 = vld [vmem:[%s7125_s6 + $0xc0] sm:$0xff] }
 0x316   :  { %v843_v63 = vmul.f32 %v827_v61, %v779_v60  ;;  %5144 = vmatpush3.bf16.msra.mxu0 %v5143_v59  ;;  %v4066_v59 = vld [vmem:[%s7125_s6 + $0xc8] sm:$0xff]  ;;  %v4067_v60 = vld [vmem:[%s7125_s6 + $0xd0] sm:$0xff]  ;;  %v4068_v61 = vld [vmem:[%s7125_s6 + $0xd8] sm:$0xff] }
 0x317   :  { %5145 = vmatprep.subr.bf16.mxu0 %v5659_v6 }
 0x318   :  { %v5146_v0 = vpack.c.bf16 %v844_v62, %v843_v63  ;;  %v4069_v62 = vld [vmem:[%s7125_s6 + $0xe0] sm:$0xff]  ;;  %v4070_v63 = vld [vmem:[%s7125_s6 + $0xe8] sm:$0xff] }
 0x31a   :  { %5147 = vmatpush3.bf16.msra.mxu0 %v5146_v0  ;;  %v4071_v0 = vld [vmem:[%s7125_s6 + $0xf0] sm:$0xff] }
 0x31d   :  { %4684 = vmatmul.mubr.f32.vlgmr.msra.gmra.mrb[18].mxu0 %v845_v1  ;;  %v4072_v1 = vld [vmem:[%s7125_s6 + $0xf8] sm:$0xff] }
 0x31e   :  { %4734 = vmatprep.mubr.msk.f32.mxu0 %vm567_vm2, %v4057_v46 }
 0x3f0   :  { %v912_v9 = vpop.f32.mrb[18].mxu0 }
 0x3f1   :  { %v916_v10 = vadd.f32 %v912_v9, %v6185_v36  ;;  %v4685_v11 = vpop.f32.mrb[19].mxu0  ;;  %v4043_v36 = vld [vmem:[%s7153_s22 + $0xa0] sm:$0xff]  ;;  %v1164_v9 = vpop.permute.xlu0 %1163 }
 0x3f2   :  { %v5161_v21 = vpack.c.bf16 %v4044_v19, %v4043_v36 }
 0x3f3   :  { %v923_v14 = vadd.f32 %v921_v12, %v916_v10  ;;  %v1159_v10 = vpop.permute.xlu1 %1158 }
 0x3f5   :  { %4695 = vmatmul.mubr.msk.f32.vlgmr.msra.gmra.mrb[2].mxu1 %vm281_vm1, %v923_v14  ;;  %v1174_v11 = vpop.permute.xlu0 %1173 }
 0x3f6   :  { %5156 = vmatpush3.bf16.msra.mxu1 %v5155_v13  ;;  %4729 = vmatprep.mubr.msk.f32.mxu1 %vm5660_vm0, %v5661_v7 }
 0x3f7   :  { %5157 = vmatprep.subr.bf16.mxu1 %v5659_v6  ;;  %v1169_v12 = vpop.permute.xlu1 %1168 }
 0x3f9   :  { %v1184_v36 = vpop.permute.xlu0 %1183 }
 0x3fa   :  { %5159 = vmatpush3.bf16.msra.mxu1 %v5158_v17 }
 0x3fb   :  { %5160 = vmatprep.subr.bf16.mxu1 %v5659_v6  ;;  %v1179_v23 = vpop.permute.xlu1 %1178 }
 0x3fd   :  { %v1194_v30 = vpop.permute.xlu0 %1193 }
 0x3fe   :  { %5162 = vmatpush3.bf16.msra.mxu1 %v5161_v21 }
 0x3ff   :  { %5163 = vmatprep.subr.bf16.mxu1 %v5659_v6 }
 0x402   :  { %5165 = vmatpush3.bf16.msra.mxu1 %v5164_v25 }
 0x403   :  { %5166 = vmatprep.subr.bf16.mxu1 %v5659_v6 }
 0x406   :  { %5168 = vmatpush3.bf16.msra.mxu1 %v5167_v28 }
 0x407   :  { %5169 = vmatprep.subr.bf16.mxu1 %v5659_v6 }
 0x40a   :  { %5171 = vmatpush3.bf16.msra.mxu1 %v5170_v20 }
 0x40b   :  { %5172 = vmatprep.subr.bf16.mxu1 %v5659_v6 }
 0x40e   :  { %5174 = vmatpush3.bf16.msra.mxu1 %v5173_v32  ;;  %v1189_v32 = vpop.permute.xlu1 %1188 }
 0x40f   :  { %5175 = vmatprep.subr.bf16.mxu1 %v5659_v6 }
 0x412   :  { %5177 = vmatpush3.bf16.msra.mxu1 %v5176_v38 }
 0x413   :  { %5202 = vmatprep.subr.bf16.mxu1 %v5659_v6 }
 0x4c8   :  { %v1006_v39 = vpop.f32.mrb[2].mxu1 }
 0x4c9   :  { %v1007_v40 = vadd.f32 %v4037_v22, %v1006_v39  ;;  %v4696_v41 = vpop.f32.mrb[3].mxu1 }
 0x4cb   :  { %v1011_v42 = vmul.f32 0.70710677, %v1007_v40  ;;  %v1010_v43 = vmul.f32 0.5, %v1007_v40 }
 0x4cd   :  { %5377 = verf.f32 %v1011_v42 }
 0x4d7   :  { %v5378_v33 = vpop.eup %5377 }
 0x4d8   :  { %v1013_v44 = vadd.f32 1.0, %v5378_v33 }
 0x4da   :  { %v1014_v45 = vmul.f32 %v1013_v44, %v1010_v43  ;;  %v1204_v43 = vpop.permute.xlu0 %1203 }
 0x4dc   :  { %4730 = vmatmul.mubr.f32.vlgmr.msra.gmra.mrb[4].mxu1 %v1014_v45 }
 0x4dd   :  { %4801 = vmatprep.mubr.msk.f32.mxu1 %vm5660_vm0, %v5661_v7  ;;  %5204 = vmatpush3.bf16.msra.mxu1 %v5203_v4 }
 0x4de   :  { %5205 = vmatprep.subr.bf16.mxu1 %v5659_v6  ;;  %v1214_v4 = vpop.permute.xlu0 %1213 }
 0x5af   :  { %v1098_v37 = vpop.f32.mrb[4].mxu1 }
 0x5b0   :  { %v1102_v49 = vadd.f32 %v1098_v37, %v923_v14  ;;  %v4731_v50 = vpop.f32.mrb[5].mxu1 }
 0x5b2   :  { %v6375_v51 = vadd.f32 %v4056_v47, %v1102_v49  ;;  %v1199_v47 = vpop.permute.xlu1 %1198 }
 0x5b4   :  { %4732 = vmatprep.subr.msk.mxu0 %vm616_vm3, %v6375_v51 }
 0x5b5   :  { %4733 = vmatpush3.msk.msra.mxu0 %vm616_vm3, %v6375_v51 }
 0x5b6   :  { %4735 = vmatmul.mubr.msk.f32.vlgmr.msra.gmra.mrb[20].mxu0 %vm567_vm2, %v4058_v53  ;;  %5178 = vmatprep.subr.bf16.mxu0 %v5659_v6 }
 0x5b7   :  { %4737 = vmatprep.mubr.msk.f32.mxu0 %vm567_vm2, %v4059_v54 }
 0x5ba   :  { %4738 = vmatmul.mubr.msk.f32.gmra.mrb[22].mxu0 %vm567_vm2, %v4060_v48 }
 0x5bb   :  { %4740 = vmatprep.mubr.msk.f32.mxu0 %vm567_vm2, %v4061_v55 }
 0x5be   :  { %4741 = vmatmul.mubr.msk.f32.gmra.mrb[24].mxu0 %vm567_vm2, %v4062_v56 }
 0x5bf   :  { %4743 = vmatprep.mubr.msk.f32.mxu0 %vm567_vm2, %v4063_v57 }
 0x5c2   :  { %4744 = vmatmul.mubr.msk.f32.gmra.mrb[26].mxu0 %vm567_vm2, %v4064_v58 }
 0x5c3   :  { %4746 = vmatprep.mubr.msk.f32.mxu0 %vm567_vm2, %v4065_v52 }
 0x5c6   :  { %4747 = vmatmul.mubr.msk.f32.gmra.mrb[28].mxu0 %vm567_vm2, %v4066_v59 }
 0x5c7   :  { %4749 = vmatprep.mubr.msk.f32.mxu0 %vm567_vm2, %v4067_v60 }
 0x5ca   :  { %4750 = vmatmul.mubr.msk.f32.gmra.mrb[30].mxu0 %vm567_vm2, %v4068_v61 }
 0x5cb   :  { %4752 = vmatprep.mubr.msk.f32.mxu0 %vm567_vm2, %v4069_v62 }
 0x5ce   :  { %4753 = vmatmul.mubr.msk.f32.gmra.mrb[32].mxu0 %vm567_vm2, %v4070_v63 }
 0x5cf   :  { %4755 = vmatprep.mubr.msk.f32.mxu0 %vm567_vm2, %v4071_v0 }
 0x5d2   :  { %4756 = vmatmul.mubr.msk.f32.gmra.mrb[34].mxu0 %vm567_vm2, %v4072_v1 }
 0x5d3   :  { %4790 = vmatprep.mubr.msk.f32.mxu0 %vm5660_vm0, %v5661_v7 }
 0x689   :  { %v4736_v13 = vpop.f32.mrb[20].mxu0 }
 0x68a   :  { %v1349_v14 = vadd.f32 %v4736_v13, %v1154_v5  ;;  %v1343_v15 = vpop.f32.mrb[21].mxu0 }
 0x68b   :  { %v1344_v16 = vadd.f32 %v1343_v15, %v1149_v8 }
 0x68c   :  { %v1439_v17 = vmul.f32 0.70710677, %v1349_v14  ;;  %v1423_v44 = vmul.f32 0.5, %v1349_v14 }
 0x68d   :  { %v1438_v19 = vmul.f32 0.70710677, %v1344_v16  ;;  %v4739_v21 = vpop.f32.mrb[22].mxu0  ;;  %v1422_v49 = vmul.f32 0.5, %v1344_v16 }
 0x68e   :  { %5379 = verf.f32 %v1439_v17  ;;  %v1359_v24 = vadd.f32 %v4739_v21, %v1164_v9  ;;  %v1353_v25 = vpop.f32.mrb[23].mxu0 }
 0x68f   :  { %5381 = verf.f32 %v1438_v19  ;;  %v1354_v26 = vadd.f32 %v1353_v25, %v1159_v10  ;;  %v1209_v10 = vpop.permute.xlu1 %1208 }
 0x690   :  { %v1441_v27 = vmul.f32 0.70710677, %v1359_v24  ;;  %v1425_v59 = vmul.f32 0.5, %v1359_v24 }
 0x691   :  { %v1440_v28 = vmul.f32 0.70710677, %v1354_v26  ;;  %v4742_v29 = vpop.f32.mrb[24].mxu0  ;;  %v1424_v61 = vmul.f32 0.5, %v1354_v26 }
 0x692   :  { %5383 = verf.f32 %v1441_v27  ;;  %v1369_v18 = vadd.f32 %v4742_v29, %v1174_v11  ;;  %v1363_v20 = vpop.f32.mrb[25].mxu0 }
 0x693   :  { %5385 = verf.f32 %v1440_v28  ;;  %v1364_v31 = vadd.f32 %v1363_v20, %v1169_v12  ;;  %v1224_v20 = vpop.permute.xlu0 %1223 }
 0x694   :  { %v1443_v34 = vmul.f32 0.70710677, %v1369_v18  ;;  %v1427_v14 = vmul.f32 0.5, %v1369_v18 }
 0x695   :  { %v1442_v35 = vmul.f32 0.70710677, %v1364_v31  ;;  %v4745_v38 = vpop.f32.mrb[26].mxu0  ;;  %v1426_v16 = vmul.f32 0.5, %v1364_v31 }
 0x696   :  { %5387 = verf.f32 %v1443_v34  ;;  %v6451_v22 = vadd.f32 %v4745_v38, %v1184_v36  ;;  %v1373_v39 = vpop.f32.mrb[27].mxu0  ;;  %v1219_v38 = vpop.permute.xlu1 %1218 }
 0x697   :  { %5389 = verf.f32 %v1442_v35  ;;  %v6453_v40 = vadd.f32 %v1373_v39, %v1179_v23 }
 0x698   :  { %v5380_v41 = vpop.eup %5379  ;;  %v1445_v42 = vmul.f32 0.70710677, %v6451_v22 }
 0x699   :  { %v5382_v33 = vpop.eup %5381  ;;  %v1471_v45 = vadd.f32 1.0, %v5380_v41  ;;  %v1444_v46 = vmul.f32 0.70710677, %v6453_v40  ;;  %v4748_v37 = vpop.f32.mrb[28].mxu0 }
 0x69a   :  { %v1470_v50 = vadd.f32 1.0, %v5382_v33  ;;  %5391 = verf.f32 %v1445_v42  ;;  %v6457_v53 = vadd.f32 %v4748_v37, %v1194_v30  ;;  %v1383_v54 = vpop.f32.mrb[29].mxu0  ;;  %v1429_v30 = vmul.f32 0.5, %v6451_v22 }
 0x69b   :  { %v1487_v48 = vmul.f32 %v1471_v45, %v1423_v44  ;;  %5393 = verf.f32 %v1444_v46  ;;  %v6459_v55 = vadd.f32 %v1383_v54, %v1189_v32  ;;  %v1428_v32 = vmul.f32 0.5, %v6453_v40 }
 0x69c   :  { %v5384_v56 = vpop.eup %5383  ;;  %v1486_v57 = vmul.f32 %v1470_v50, %v1422_v49  ;;  %v1447_v58 = vmul.f32 0.70710677, %v6457_v53  ;;  %v1431_v40 = vmul.f32 0.5, %v6457_v53 }
 0x69d   :  { %v5386_v52 = vpop.eup %5385  ;;  %v1473_v60 = vadd.f32 1.0, %v5384_v56  ;;  %v1446_v62 = vmul.f32 0.70710677, %v6459_v55  ;;  %v4751_v63 = vpop.f32.mrb[30].mxu0  ;;  %v1430_v54 = vmul.f32 0.5, %v6459_v55 }
 0x69e   :  { %v5179_v0 = vpack.c.bf16 %v1487_v48, %v1486_v57  ;;  %v1472_v1 = vadd.f32 1.0, %v5386_v52  ;;  %5395 = verf.f32 %v1447_v58  ;;  %v6463_v2 = vadd.f32 %v4751_v63, %v1204_v43  ;;  %v1393_v3 = vpop.f32.mrb[31].mxu0 }
 0x69f   :  { %v1489_v5 = vmul.f32 %v1473_v60, %v1425_v59  ;;  %5397 = verf.f32 %v1446_v62  ;;  %v6465_v8 = vadd.f32 %v1393_v3, %v1199_v47 }
 0x6a0   :  { %v5388_v9 = vpop.eup %5387  ;;  %v1488_v11 = vmul.f32 %v1472_v1, %v1424_v61  ;;  %v1449_v12 = vmul.f32 0.70710677, %v6463_v2  ;;  %5180 = vmatpush3.bf16.msra.mxu0 %v5179_v0  ;;  %v1433_v59 = vmul.f32 0.5, %v6463_v2 }
 0x6a1   :  { %v5390_v13 = vpop.eup %5389  ;;  %v1475_v15 = vadd.f32 1.0, %v5388_v9  ;;  %v1448_v17 = vmul.f32 0.70710677, %v6465_v8  ;;  %v4754_v36 = vpop.f32.mrb[32].mxu0  ;;  %5181 = vmatprep.subr.bf16.mxu0 %v5659_v6  ;;  %v1432_v61 = vmul.f32 0.5, %v6465_v8 }
 0x6a2   :  { %v5182_v19 = vpack.c.bf16 %v1489_v5, %v1488_v11  ;;  %v1474_v21 = vadd.f32 1.0, %v5390_v13  ;;  %5399 = verf.f32 %v1449_v12  ;;  %v1409_v23 = vadd.f32 %v4754_v36, %v1214_v4  ;;  %v1403_v24 = vpop.f32.mrb[33].mxu0 }
 0x6a3   :  { %v1491_v25 = vmul.f32 %v1475_v15, %v1427_v14  ;;  %5401 = verf.f32 %v1448_v17  ;;  %v1404_v26 = vadd.f32 %v1403_v24, %v1209_v10  ;;  %v4110_v24 = vld [vmem:[%s7152_s28 + $0x50] sm:$0xff] }
 0x6a4   :  { %v5392_v27 = vpop.eup %5391  ;;  %v1490_v28 = vmul.f32 %v1474_v21, %v1426_v16  ;;  %v1451_v29 = vmul.f32 0.70710677, %v1409_v23  ;;  %5183 = vmatpush3.bf16.msra.mxu0 %v5182_v19  ;;  %v1435_v3 = vmul.f32 0.5, %v1409_v23  ;;  %v4106_v23 = vld [vmem:[%s7127_s8 + $0x4] sm:$0xf] }
 0x6a5   :  { %v5394_v18 = vpop.eup %5393  ;;  %v1477_v31 = vadd.f32 1.0, %v5392_v27  ;;  %v1450_v34 = vmul.f32 0.70710677, %v1404_v26  ;;  %v4757_v35 = vpop.f32.mrb[34].mxu0  ;;  %5184 = vmatprep.subr.bf16.mxu0 %v5659_v6  ;;  %v1434_v9 = vmul.f32 0.5, %v1404_v26  ;;  %v4115_v27 = vld [vmem:[%s7153_s22 + $0x100] sm:$0xff] }
 0x6a6   :  { %v5185_v39 = vpack.c.bf16 %v1491_v25, %v1490_v28  ;;  %v1476_v41 = vadd.f32 1.0, %v5394_v18  ;;  %5403 = verf.f32 %v1451_v29  ;;  %v1419_v42 = vadd.f32 %v4757_v35, %v1224_v20  ;;  %v1413_v33 = vpop.f32.mrb[35].mxu0  ;;  %v4111_v25 = vld [vmem:[%s7152_s28 + $0x58] sm:$0xff]  ;;  %v4116_v28 = vld [vmem:[%s7153_s22 + $0x108] sm:$0xff]  ;;  %v4117_v29 = vld [vmem:[%s7153_s22 + $0x110] sm:$0xff] }
 0x6a7   :  { %v1493_v43 = vmul.f32 %v1477_v31, %v1429_v30  ;;  %5405 = verf.f32 %v1450_v34  ;;  %v1414_v44 = vadd.f32 %v1413_v33, %v1219_v38  ;;  %v5206_v26 = vpack.c.bf16 %v4111_v25, %v4110_v24  ;;  %v4118_v20 = vld [vmem:[%s7153_s22 + $0x118] sm:$0xff]  ;;  %v4119_v31 = vld [vmem:[%s7153_s22 + $0x120] sm:$0xff]  ;;  %v4121_v33 = vld [vmem:[%s7153_s22 + $0x130] sm:$0xff] }
 0x6a8   :  { %v5396_v45 = vpop.eup %5395  ;;  %v1492_v46 = vmul.f32 %v1476_v41, %v1428_v32  ;;  %v1453_v37 = vmul.f32 0.70710677, %v1419_v42  ;;  %5186 = vmatpush3.bf16.msra.mxu0 %v5185_v39  ;;  %v1437_v14 = vmul.f32 0.5, %v1419_v42  ;;  %v5209_v18 = vpack.c.bf16 %v4116_v28, %v4115_v27  ;;  %v4120_v32 = vld [vmem:[%s7153_s22 + $0x128] sm:$0xff]  ;;  %v1580_v41 = vpop.permute.xlu1 %1579  ;;  %v4184_v24 = vld [vmem:[%s7152_s28 + $0x60] sm:$0xff] }
 0x6a9   :  { %v5398_v22 = vpop.eup %5397  ;;  %v1479_v47 = vadd.f32 1.0, %v5396_v45  ;;  %v1452_v49 = vmul.f32 0.70710677, %v1414_v44  ;;  %5187 = vmatprep.subr.bf16.mxu0 %v5659_v6  ;;  %v1436_v16 = vmul.f32 0.5, %v1414_v44  ;;  %5207 = vmatpush3.bf16.msra.mxu1 %v5206_v26  ;;  %v5212_v30 = vpack.c.bf16 %v4118_v20, %v4117_v29  ;;  %v4124_v45 = vld [vmem:[%s7153_s22 + $0x148] sm:$0xff]  ;;  %v1808_v28 = vpop.permute.xlu0 %1807 }
 0x6aa   :  { %v5188_v50 = vpack.c.bf16 %v1493_v43, %v1492_v46  ;;  %v1478_v48 = vadd.f32 1.0, %v5398_v22  ;;  %5407 = verf.f32 %v1453_v37  ;;  %v5215_v34 = vpack.c.bf16 %v4120_v32, %v4119_v31  ;;  %v4122_v43 = vld [vmem:[%s7153_s22 + $0x138] sm:$0xff]  ;;  %v4125_v37 = vld [vmem:[%s7153_s22 + $0x150] sm:$0xff]  ;;  %v4185_v25 = vld [vmem:[%s7152_s28 + $0x68] sm:$0xff] }
 0x6ab   :  { %v1495_v56 = vmul.f32 %v1479_v47, %v1431_v40  ;;  %5409 = verf.f32 %v1452_v49  ;;  %v5218_v44 = vpack.c.bf16 %v4122_v43, %v4121_v33  ;;  %v4126_v22 = vld [vmem:[%s7153_s22 + $0x158] sm:$0xff]  ;;  %v4127_v47 = vld [vmem:[%s7153_s22 + $0x160] sm:$0xff]  ;;  %v4128_v49 = vld [vmem:[%s7153_s22 + $0x168] sm:$0xff]  ;;  %v5257_v26 = vpack.c.bf16 %v4185_v25, %v4184_v24 }
 0x6ac   :  { %v5400_v57 = vpop.eup %5399  ;;  %v1494_v58 = vmul.f32 %v1478_v48, %v1430_v54  ;;  %5189 = vmatpush3.bf16.msra.mxu0 %v5188_v50  ;;  %v5224_v40 = vpack.c.bf16 %v4126_v22, %v4125_v37  ;;  %v5227_v50 = vpack.c.bf16 %v4128_v49, %v4127_v47  ;;  %v4129_v54 = vld [vmem:[%s7153_s22 + $0x170] sm:$0xff]  ;;  %v4130_v48 = vld [vmem:[%s7153_s22 + $0x178] sm:$0xff]  ;;  %v1813_v27 = vpop.permute.xlu1 %1812 }
 0x6ad   :  { %v5402_v52 = vpop.eup %5401  ;;  %v1481_v60 = vadd.f32 1.0, %v5400_v57  ;;  %5190 = vmatprep.subr.bf16.mxu0 %v5659_v6  ;;  %v4113_v57 = vld [vmem:[%s7154_s0 + $0x2] ss:$0 sm:$0xff] }
 0x6ae   :  { %v5191_v53 = vpack.c.bf16 %v1495_v56, %v1494_v58  ;;  %v1480_v62 = vadd.f32 1.0, %v5402_v52  ;;  %v5230_v56 = vpack.c.bf16 %v4130_v48, %v4129_v54 }
 0x6af   :  { %v1497_v63 = vmul.f32 %v1481_v60, %v1433_v59 }
 0x6b0   :  { %v5404_v0 = vpop.eup %5403  ;;  %v1496_v55 = vmul.f32 %v1480_v62, %v1432_v61  ;;  %5192 = vmatpush3.bf16.msra.mxu0 %v5191_v53  ;;  %v1823_v29 = vpop.permute.xlu1 %1822 }
 0x6b1   :  { %v5406_v1 = vpop.eup %5405  ;;  %v1483_v4 = vadd.f32 1.0, %v5404_v0  ;;  %5193 = vmatprep.subr.bf16.mxu0 %v5659_v6  ;;  %v4133_v0 = vld [vmem:[%s7125_s6 + $0x100] sm:$0xff] }
 0x6b2   :  { %v5194_v5 = vpack.c.bf16 %v1497_v63, %v1496_v55  ;;  %v1482_v10 = vadd.f32 1.0, %v5406_v1  ;;  %v4132_v1 = vld [vmem:[%s7124_s5 + $0x2] ss:$0 sm:$0xff] }
 0x6b3   :  { %v1499_v2 = vmul.f32 %v1483_v4, %v1435_v3 }
 0x6b4   :  { %v5408_v11 = vpop.eup %5407  ;;  %v1498_v12 = vmul.f32 %v1482_v10, %v1434_v9  ;;  %5195 = vmatpush3.bf16.msra.mxu0 %v5194_v5  ;;  %v4134_v9 = vld [vmem:[%s7125_s6 + $0x108] sm:$0xff]  ;;  %v4135_v10 = vld [vmem:[%s7125_s6 + $0x110] sm:$0xff]  ;;  %v1833_v20 = vpop.permute.xlu1 %1832 }
 0x6b5   :  { %v5410_v13 = vpop.eup %5409  ;;  %v1485_v8 = vadd.f32 1.0, %v5408_v11  ;;  %5196 = vmatprep.subr.bf16.mxu0 %v5659_v6  ;;  %v4137_v11 = vld [vmem:[%s7125_s6 + $0x120] sm:$0xff] }
 0x6b6   :  { %v5197_v15 = vpack.c.bf16 %v1499_v2, %v1498_v12  ;;  %v1484_v17 = vadd.f32 1.0, %v5410_v13  ;;  %v4136_v2 = vld [vmem:[%s7125_s6 + $0x118] sm:$0xff]  ;;  %v4138_v12 = vld [vmem:[%s7125_s6 + $0x128] sm:$0xff]  ;;  %v4139_v13 = vld [vmem:[%s7125_s6 + $0x130] sm:$0xff] }
 0x6b7   :  { %v1501_v36 = vmul.f32 %v1485_v8, %v1437_v14  ;;  %v4140_v14 = vld [vmem:[%s7125_s6 + $0x138] sm:$0xff]  ;;  %v4141_v8 = vld [vmem:[%s7125_s6 + $0x140] sm:$0xff] }
 0x6b8   :  { %v1500_v19 = vmul.f32 %v1484_v17, %v1436_v16  ;;  %5198 = vmatpush3.bf16.msra.mxu0 %v5197_v15  ;;  %v4142_v15 = vld [vmem:[%s7125_s6 + $0x148] sm:$0xff]  ;;  %v4143_v16 = vld [vmem:[%s7125_s6 + $0x150] sm:$0xff]  ;;  %v4144_v17 = vld [vmem:[%s7125_s6 + $0x158] sm:$0xff] }
 0x6b9   :  { %5199 = vmatprep.subr.bf16.mxu0 %v5659_v6 }
 0x6ba   :  { %v5200_v21 = vpack.c.bf16 %v1501_v36, %v1500_v19  ;;  %v4145_v36 = vld [vmem:[%s7125_s6 + $0x160] sm:$0xff]  ;;  %v4146_v19 = vld [vmem:[%s7125_s6 + $0x168] sm:$0xff] }
 0x6bc   :  { %5201 = vmatpush3.bf16.msra.mxu0 %v5200_v21  ;;  %v4147_v21 = vld [vmem:[%s7125_s6 + $0x170] sm:$0xff] }
 0x6bd   :  { %5208 = vmatprep.subr.bf16.mxu0 %v5659_v6 }
 0x6bf   :  { %4791 = vmatmul.mubr.f32.vlgmr.msra.gmra.mrb[36].mxu0 %v4106_v23  ;;  %v4148_v23 = vld [vmem:[%s7125_s6 + $0x178] sm:$0xff] }
 0x6c0   :  { %4836 = vmatprep.mubr.msk.f32.mxu0 %vm5660_vm0, %v5661_v7  ;;  %5210 = vmatpush3.bf16.msra.mxu0 %v5209_v18  ;;  %v1818_v18 = vpop.permute.xlu0 %1817 }
 0x6c1   :  { %5211 = vmatprep.subr.bf16.mxu0 %v5659_v6 }
 0x6c4   :  { %5213 = vmatpush3.bf16.msra.mxu0 %v5212_v30  ;;  %v1828_v30 = vpop.permute.xlu0 %1827 }
 0x6c5   :  { %5214 = vmatprep.subr.bf16.mxu0 %v5659_v6 }
 0x6c8   :  { %5216 = vmatpush3.bf16.msra.mxu0 %v5215_v34  ;;  %v1838_v33 = vpop.permute.xlu0 %1837 }
 0x6c9   :  { %5217 = vmatprep.subr.bf16.mxu0 %v5659_v6 }
 0x6cc   :  { %5219 = vmatpush3.bf16.msra.mxu0 %v5218_v44 }
 0x6cd   :  { %5220 = vmatprep.subr.bf16.mxu0 %v5659_v6 }
 0x792   :  { %v1570_v35 = vpop.f32.mrb[36].mxu0 }
 0x793   :  { %v1574_v38 = vadd.f32 %v1570_v35, %v6375_v51  ;;  %v4792_v39 = vpop.f32.mrb[37].mxu0  ;;  %v4123_v51 = vld [vmem:[%s7153_s22 + $0x140] sm:$0xff] }
 0x794   :  { %v5221_v46 = vpack.c.bf16 %v4124_v45, %v4123_v51  ;;  %v1843_v39 = vpop.permute.xlu1 %1842 }
 0x795   :  { %v1582_v42 = vadd.f32 %v1580_v41, %v1574_v38 }
 0x796   :  { %5222 = vmatpush3.bf16.msra.mxu0 %v5221_v46 }
 0x797   :  { %4802 = vmatmul.mubr.msk.f32.vlgmr.msra.gmra.mrb[6].mxu1 %vm281_vm1, %v1582_v42  ;;  %5223 = vmatprep.subr.bf16.mxu0 %v5659_v6 }
 0x798   :  { %4841 = vmatprep.mubr.msk.f32.mxu1 %vm567_vm2, %v4133_v0  ;;  %v1853_v47 = vpop.permute.xlu1 %1852 }
 0x79a   :  { %5225 = vmatpush3.bf16.msra.mxu0 %v5224_v40 }
 0x79b   :  { %5226 = vmatprep.subr.bf16.mxu0 %v5659_v6 }
 0x79e   :  { %5228 = vmatpush3.bf16.msra.mxu0 %v5227_v50  ;;  %v1848_v50 = vpop.permute.xlu0 %1847 }
 0x79f   :  { %5229 = vmatprep.subr.bf16.mxu0 %v5659_v6 }
 0x7a2   :  { %5231 = vmatpush3.bf16.msra.mxu0 %v5230_v56 }
 0x7a3   :  { %5256 = vmatprep.subr.bf16.mxu0 %v5659_v6 }
 0x86a   :  { %v1665_v58 = vpop.f32.mrb[6].mxu1 }
 0x86b   :  { %v1666_v52 = vadd.f32 %v4113_v57, %v1665_v58  ;;  %v4803_v59 = vpop.f32.mrb[7].mxu1 }
 0x86d   :  { %v1670_v60 = vmul.f32 0.70710677, %v1666_v52  ;;  %v1669_v61 = vmul.f32 0.5, %v1666_v52 }
 0x86f   :  { %5411 = verf.f32 %v1670_v60 }
 0x879   :  { %v5412_v53 = vpop.eup %5411 }
 0x87a   :  { %v1672_v62 = vadd.f32 1.0, %v5412_v53 }
 0x87c   :  { %v1673_v63 = vmul.f32 %v1672_v62, %v1669_v61  ;;  %v1863_v61 = vpop.permute.xlu1 %1862 }
 0x87e   :  { %4837 = vmatmul.mubr.f32.vlgmr.msra.gmra.mrb[38].mxu0 %v1673_v63 }
 0x87f   :  { %4908 = vmatprep.mubr.msk.f32.mxu0 %vm5660_vm0, %v5661_v7  ;;  %5258 = vmatpush3.bf16.msra.mxu0 %v5257_v26 }
 0x880   :  { %5259 = vmatprep.subr.bf16.mxu0 %v5659_v6  ;;  %v1873_v26 = vpop.permute.xlu1 %1872 }
 0x951   :  { %v1757_v55 = vpop.f32.mrb[38].mxu0 }
 0x952   :  { %v1761_v3 = vadd.f32 %v1757_v55, %v1582_v42  ;;  %v4838_v4 = vpop.f32.mrb[39].mxu0 }
 0x954   :  { %v6564_v5 = vadd.f32 %v4132_v1, %v1761_v3  ;;  %v1858_v1 = vpop.permute.xlu0 %1857 }
 0x956   :  { %4839 = vmatprep.subr.msk.mxu1 %vm616_vm3, %v6564_v5 }
 0x957   :  { %4840 = vmatpush3.msk.msra.mxu1 %vm616_vm3, %v6564_v5 }
 0x958   :  { %4842 = vmatmul.mubr.msk.f32.vlgmr.msra.gmra.mrb[8].mxu1 %vm567_vm2, %v4134_v9  ;;  %5232 = vmatprep.subr.bf16.mxu1 %v5659_v6 }
 0x959   :  { %4844 = vmatprep.mubr.msk.f32.mxu1 %vm567_vm2, %v4135_v10 }
 0x95c   :  { %4845 = vmatmul.mubr.msk.f32.gmra.mrb[10].mxu1 %vm567_vm2, %v4136_v2 }
 0x95d   :  { %4847 = vmatprep.mubr.msk.f32.mxu1 %vm567_vm2, %v4137_v11 }
 0x960   :  { %4848 = vmatmul.mubr.msk.f32.gmra.mrb[12].mxu1 %vm567_vm2, %v4138_v12 }
 0x961   :  { %4850 = vmatprep.mubr.msk.f32.mxu1 %vm567_vm2, %v4139_v13 }
 0x964   :  { %4851 = vmatmul.mubr.msk.f32.gmra.mrb[14].mxu1 %vm567_vm2, %v4140_v14 }
 0x965   :  { %4853 = vmatprep.mubr.msk.f32.mxu1 %vm567_vm2, %v4141_v8 }
 0x968   :  { %4854 = vmatmul.mubr.msk.f32.gmra.mrb[16].mxu1 %vm567_vm2, %v4142_v15 }
 0x969   :  { %4856 = vmatprep.mubr.msk.f32.mxu1 %vm567_vm2, %v4143_v16 }
 0x96c   :  { %4857 = vmatmul.mubr.msk.f32.gmra.mrb[18].mxu1 %vm567_vm2, %v4144_v17 }
 0x96d   :  { %4859 = vmatprep.mubr.msk.f32.mxu1 %vm567_vm2, %v4145_v36 }
 0x970   :  { %4860 = vmatmul.mubr.msk.f32.gmra.mrb[20].mxu1 %vm567_vm2, %v4146_v19 }
 0x971   :  { %4862 = vmatprep.mubr.msk.f32.mxu1 %vm567_vm2, %v4147_v21 }
 0x974   :  { %4863 = vmatmul.mubr.msk.f32.gmra.mrb[22].mxu1 %vm567_vm2, %v4148_v23 }
 0x975   :  { %4897 = vmatprep.mubr.msk.f32.mxu1 %vm5660_vm0, %v5661_v7 }
 0xa2b   :  { %v4843_v31 = vpop.f32.mrb[8].mxu1 }
 0xa2c   :  { %v2008_v32 = vadd.f32 %v4843_v31, %v1813_v27  ;;  %v2002_v34 = vpop.f32.mrb[9].mxu1 }
 0xa2d   :  { %v2003_v35 = vadd.f32 %v2002_v34, %v1808_v28 }
 0xa2e   :  { %v2098_v38 = vmul.f32 0.70710677, %v2008_v32  ;;  %v2082_v62 = vmul.f32 0.5, %v2008_v32 }
 0xa2f   :  { %v2097_v41 = vmul.f32 0.70710677, %v2003_v35  ;;  %v4846_v42 = vpop.f32.mrb[10].mxu1  ;;  %v2081_v3 = vmul.f32 0.5, %v2003_v35 }
 0xa30   :  { %5413 = verf.f32 %v2098_v38  ;;  %v2018_v43 = vadd.f32 %v4846_v42, %v1823_v29  ;;  %v2012_v44 = vpop.f32.mrb[11].mxu1 }
 0xa31   :  { %5415 = verf.f32 %v2097_v41  ;;  %v2013_v51 = vadd.f32 %v2012_v44, %v1818_v18  ;;  %v1868_v18 = vpop.permute.xlu0 %1867 }
 0xa32   :  { %v2100_v45 = vmul.f32 0.70710677, %v2018_v43  ;;  %v2084_v15 = vmul.f32 0.5, %v2018_v43 }
 0xa33   :  { %v2099_v46 = vmul.f32 0.70710677, %v2013_v51  ;;  %v4849_v37 = vpop.f32.mrb[12].mxu1  ;;  %v2083_v17 = vmul.f32 0.5, %v2013_v51 }
 0xa34   :  { %5417 = verf.f32 %v2100_v45  ;;  %v2028_v22 = vadd.f32 %v4849_v37, %v1833_v20  ;;  %v2022_v40 = vpop.f32.mrb[13].mxu1 }
 0xa35   :  { %5419 = verf.f32 %v2099_v46  ;;  %v2023_v49 = vadd.f32 %v2022_v40, %v1828_v30  ;;  %v1883_v40 = vpop.permute.xlu1 %1882 }
 0xa36   :  { %v2102_v54 = vmul.f32 0.70710677, %v2028_v22  ;;  %v2086_v32 = vmul.f32 0.5, %v2028_v22 }
 0xa37   :  { %v2101_v48 = vmul.f32 0.70710677, %v2023_v49  ;;  %v4852_v56 = vpop.f32.mrb[14].mxu1  ;;  %v2085_v35 = vmul.f32 0.5, %v2023_v49 }
 0xa38   :  { %5421 = verf.f32 %v2102_v54  ;;  %v6640_v57 = vadd.f32 %v4852_v56, %v1843_v39  ;;  %v2032_v58 = vpop.f32.mrb[15].mxu1  ;;  %v1878_v56 = vpop.permute.xlu0 %1877 }
 0xa39   :  { %5423 = verf.f32 %v2101_v48  ;;  %v6642_v52 = vadd.f32 %v2032_v58, %v1838_v33 }
 0xa3a   :  { %v5414_v59 = vpop.eup %5413  ;;  %v2104_v60 = vmul.f32 0.70710677, %v6640_v57 }
 0xa3b   :  { %v5416_v53 = vpop.eup %5415  ;;  %v2130_v63 = vadd.f32 1.0, %v5414_v59  ;;  %v2103_v0 = vmul.f32 0.70710677, %v6642_v52  ;;  %v4855_v55 = vpop.f32.mrb[16].mxu1 }
 0xa3c   :  { %v2129_v4 = vadd.f32 1.0, %v5416_v53  ;;  %5425 = verf.f32 %v2104_v60  ;;  %v6646_v9 = vadd.f32 %v4855_v55, %v1853_v47  ;;  %v2042_v10 = vpop.f32.mrb[17].mxu1  ;;  %v2088_v47 = vmul.f32 0.5, %v6640_v57 }
 0xa3d   :  { %v2146_v2 = vmul.f32 %v2130_v63, %v2082_v62  ;;  %5427 = verf.f32 %v2103_v0  ;;  %v6648_v11 = vadd.f32 %v2042_v10, %v1848_v50  ;;  %v2087_v50 = vmul.f32 0.5, %v6642_v52 }
 0xa3e   :  { %v5418_v12 = vpop.eup %5417  ;;  %v2145_v13 = vmul.f32 %v2129_v4, %v2081_v3  ;;  %v2106_v14 = vmul.f32 0.70710677, %v6646_v9  ;;  %v2090_v52 = vmul.f32 0.5, %v6646_v9 }
 0xa3f   :  { %v5420_v8 = vpop.eup %5419  ;;  %v2132_v16 = vadd.f32 1.0, %v5418_v12  ;;  %v2105_v36 = vmul.f32 0.70710677, %v6648_v11  ;;  %v4858_v19 = vpop.f32.mrb[18].mxu1  ;;  %v2089_v10 = vmul.f32 0.5, %v6648_v11 }
 0xa40   :  { %v5233_v21 = vpack.c.bf16 %v2146_v2, %v2145_v13  ;;  %v2131_v23 = vadd.f32 1.0, %v5420_v8  ;;  %5429 = verf.f32 %v2106_v14  ;;  %v6652_v24 = vadd.f32 %v4858_v19, %v1863_v61  ;;  %v2052_v25 = vpop.f32.mrb[19].mxu1 }
 0xa41   :  { %v2148_v27 = vmul.f32 %v2132_v16, %v2084_v15  ;;  %5431 = verf.f32 %v2105_v36  ;;  %v6654_v28 = vadd.f32 %v2052_v25, %v1858_v1 }
 0xa42   :  { %v5422_v29 = vpop.eup %5421  ;;  %v2147_v20 = vmul.f32 %v2131_v23, %v2083_v17  ;;  %v2108_v30 = vmul.f32 0.70710677, %v6652_v24  ;;  %5234 = vmatpush3.bf16.msra.mxu1 %v5233_v21  ;;  %v2092_v15 = vmul.f32 0.5, %v6652_v24 }
 0xa43   :  { %v5424_v31 = vpop.eup %5423  ;;  %v2134_v34 = vadd.f32 1.0, %v5422_v29  ;;  %v2107_v38 = vmul.f32 0.70710677, %v6654_v28  ;;  %v4861_v39 = vpop.f32.mrb[20].mxu1  ;;  %5235 = vmatprep.subr.bf16.mxu1 %v5659_v6  ;;  %v2091_v17 = vmul.f32 0.5, %v6654_v28 }
 0xa44   :  { %v5236_v41 = vpack.c.bf16 %v2148_v27, %v2147_v20  ;;  %v2133_v42 = vadd.f32 1.0, %v5424_v31  ;;  %5433 = verf.f32 %v2108_v30  ;;  %v2068_v33 = vadd.f32 %v4861_v39, %v1873_v26  ;;  %v2062_v43 = vpop.f32.mrb[21].mxu1 }
 0xa45   :  { %v2150_v44 = vmul.f32 %v2134_v34, %v2086_v32  ;;  %5435 = verf.f32 %v2107_v38  ;;  %v2063_v51 = vadd.f32 %v2062_v43, %v1868_v18  ;;  %v4186_v43 = vld [vmem:[%s7152_s28 + $0x70] sm:$0xff] }
 0xa46   :  { %v5426_v45 = vpop.eup %5425  ;;  %v2149_v46 = vmul.f32 %v2133_v42, %v2085_v35  ;;  %v2110_v37 = vmul.f32 0.70710677, %v2068_v33  ;;  %5237 = vmatpush3.bf16.msra.mxu1 %v5236_v41  ;;  %v2094_v25 = vmul.f32 0.5, %v2068_v33  ;;  %v4182_v33 = vld [vmem:[%s7127_s8 + $0x8] sm:$0xf] }
 0xa47   :  { %v5428_v22 = vpop.eup %5427  ;;  %v2136_v49 = vadd.f32 1.0, %v5426_v45  ;;  %v2109_v54 = vmul.f32 0.70710677, %v2063_v51  ;;  %v4864_v48 = vpop.f32.mrb[22].mxu1  ;;  %5238 = vmatprep.subr.bf16.mxu1 %v5659_v6  ;;  %v2093_v29 = vmul.f32 0.5, %v2063_v51  ;;  %v4191_v45 = vld [vmem:[%s7153_s22 + $0x180] sm:$0xff] }
 0xa48   :  { %v5239_v58 = vpack.c.bf16 %v2150_v44, %v2149_v46  ;;  %v2135_v59 = vadd.f32 1.0, %v5428_v22  ;;  %5437 = verf.f32 %v2110_v37  ;;  %v2078_v60 = vadd.f32 %v4864_v48, %v1883_v40  ;;  %v2072_v53 = vpop.f32.mrb[23].mxu1  ;;  %v4187_v44 = vld [vmem:[%s7152_s28 + $0x78] sm:$0xff]  ;;  %v4192_v46 = vld [vmem:[%s7153_s22 + $0x188] sm:$0xff]  ;;  %v4193_v37 = vld [vmem:[%s7153_s22 + $0x190] sm:$0xff] }
 0xa49   :  { %v2152_v61 = vmul.f32 %v2136_v49, %v2088_v47  ;;  %5439 = verf.f32 %v2109_v54  ;;  %v2073_v62 = vadd.f32 %v2072_v53, %v1878_v56  ;;  %v5260_v51 = vpack.c.bf16 %v4187_v44, %v4186_v43  ;;  %v4194_v40 = vld [vmem:[%s7153_s22 + $0x198] sm:$0xff]  ;;  %v4195_v49 = vld [vmem:[%s7153_s22 + $0x1a0] sm:$0xff]  ;;  %v4197_v53 = vld [vmem:[%s7153_s22 + $0x1b0] sm:$0xff]  ;;  %v2467_v44 = vpop.permute.xlu1 %2466 }
 0xa4a   :  { %v5430_v63 = vpop.eup %5429  ;;  %v2151_v0 = vmul.f32 %v2135_v59, %v2087_v50  ;;  %v2112_v55 = vmul.f32 0.70710677, %v2078_v60  ;;  %5240 = vmatpush3.bf16.msra.mxu1 %v5239_v58  ;;  %v2096_v32 = vmul.f32 0.5, %v2078_v60  ;;  %v5263_v22 = vpack.c.bf16 %v4192_v46, %v4191_v45  ;;  %v4196_v50 = vld [vmem:[%s7153_s22 + $0x1a8] sm:$0xff]  ;;  %v2239_v59 = vpop.permute.xlu0 %2238 }
 0xa4b   :  { %v5432_v57 = vpop.eup %5431  ;;  %v2138_v1 = vadd.f32 1.0, %v5430_v63  ;;  %v2111_v3 = vmul.f32 0.70710677, %v2073_v62  ;;  %5241 = vmatprep.subr.bf16.mxu1 %v5659_v6  ;;  %v2095_v35 = vmul.f32 0.5, %v2073_v62  ;;  %5261 = vmatpush3.bf16.msra.mxu0 %v5260_v51  ;;  %v5266_v47 = vpack.c.bf16 %v4194_v40, %v4193_v37  ;;  %v4200_v63 = vld [vmem:[%s7153_s22 + $0x1c8] sm:$0xff] }
 0xa4c   :  { %v5242_v4 = vpack.c.bf16 %v2152_v61, %v2151_v0  ;;  %v2137_v2 = vadd.f32 1.0, %v5432_v57  ;;  %5441 = verf.f32 %v2112_v55  ;;  %v5269_v54 = vpack.c.bf16 %v4196_v50, %v4195_v49  ;;  %v4198_v61 = vld [vmem:[%s7153_s22 + $0x1b8] sm:$0xff]  ;;  %v4201_v55 = vld [vmem:[%s7153_s22 + $0x1d0] sm:$0xff] }
 0xa4d   :  { %v2154_v12 = vmul.f32 %v2138_v1, %v2090_v52  ;;  %5443 = verf.f32 %v2111_v3  ;;  %v5272_v62 = vpack.c.bf16 %v4198_v61, %v4197_v53  ;;  %v4202_v57 = vld [vmem:[%s7153_s22 + $0x1d8] sm:$0xff]  ;;  %v4203_v1 = vld [vmem:[%s7153_s22 + $0x1e0] sm:$0xff]  ;;  %v4204_v3 = vld [vmem:[%s7153_s22 + $0x1e8] sm:$0xff]  ;;  %v2477_v45 = vpop.permute.xlu1 %2476 }
 0xa4e   :  { %v5434_v13 = vpop.eup %5433  ;;  %v2153_v14 = vmul.f32 %v2137_v2, %v2089_v10  ;;  %5243 = vmatpush3.bf16.msra.mxu1 %v5242_v4  ;;  %v5278_v52 = vpack.c.bf16 %v4202_v57, %v4201_v55  ;;  %v5281_v4 = vpack.c.bf16 %v4204_v3, %v4203_v1  ;;  %v4205_v10 = vld [vmem:[%s7153_s22 + $0x1f0] sm:$0xff]  ;;  %v4206_v2 = vld [vmem:[%s7153_s22 + $0x1f8] sm:$0xff]  ;;  %v2472_v43 = vpop.permute.xlu0 %2471 }
 0xa4f   :  { %v5436_v8 = vpop.eup %5435  ;;  %v2140_v16 = vadd.f32 1.0, %v5434_v13  ;;  %5244 = vmatprep.subr.bf16.mxu1 %v5659_v6  ;;  %v4189_v13 = vld [vmem:[%s7154_s0 + $0x3] ss:$0 sm:$0xff] }
 0xa50   :  { %v5245_v9 = vpack.c.bf16 %v2154_v12, %v2153_v14  ;;  %v2139_v36 = vadd.f32 1.0, %v5436_v8  ;;  %v5284_v12 = vpack.c.bf16 %v4206_v2, %v4205_v10 }
 0xa51   :  { %v2156_v19 = vmul.f32 %v2140_v16, %v2092_v15  ;;  %v2487_v37 = vpop.permute.xlu1 %2486 }
 0xa52   :  { %v5438_v21 = vpop.eup %5437  ;;  %v2155_v11 = vmul.f32 %v2139_v36, %v2091_v17  ;;  %5246 = vmatpush3.bf16.msra.mxu1 %v5245_v9  ;;  %v2482_v51 = vpop.permute.xlu0 %2481 }
 0xa53   :  { %v5440_v23 = vpop.eup %5439  ;;  %v2142_v26 = vadd.f32 1.0, %v5438_v21  ;;  %5247 = vmatprep.subr.bf16.mxu1 %v5659_v6  ;;  %v4209_v21 = vld [vmem:[%s7125_s6 + $0x180] sm:$0xff] }
 0xa54   :  { %v5248_v27 = vpack.c.bf16 %v2156_v19, %v2155_v11  ;;  %v2141_v18 = vadd.f32 1.0, %v5440_v23  ;;  %v4208_v23 = vld [vmem:[%s7124_s5 + $0x3] ss:$0 sm:$0xff]  ;;  %s5604_s5 = scalar_lea.vmem %s3910_s21, 32 }
 0xa55   :  { %v2158_v24 = vmul.f32 %v2142_v26, %v2094_v25  ;;  %p5606_p7 = scmp.lt.s32.totalorder %s5604_s5, %s5600_s1 }
 0xa56   :  { %v5442_v20 = vpop.eup %5441  ;;  %v2157_v30 = vmul.f32 %v2141_v18, %v2093_v29  ;;  %5249 = vmatpush3.bf16.msra.mxu1 %v5248_v27  ;;  %v4210_v29 = vld [vmem:[%s7125_s6 + $0x188] sm:$0xff]  ;;  %v4211_v18 = vld [vmem:[%s7125_s6 + $0x190] sm:$0xff]  ;;  %v2492_v46 = vpop.permute.xlu0 %2491 }
 0xa57   :  { %v5444_v31 = vpop.eup %5443  ;;  %v2144_v28 = vadd.f32 1.0, %v5442_v20  ;;  %5250 = vmatprep.subr.bf16.mxu1 %v5659_v6  ;;  %v4213_v20 = vld [vmem:[%s7125_s6 + $0x1a0] sm:$0xff]  ;;  %p5607_p8 = por %p5606_p7, %p5605_p6 }
 0xa58   :  { %v5251_v34 = vpack.c.bf16 %v2158_v24, %v2157_v30  ;;  %v2143_v38 = vadd.f32 1.0, %v5444_v31  ;;  %v4212_v24 = vld [vmem:[%s7125_s6 + $0x198] sm:$0xff]  ;;  %v4214_v30 = vld [vmem:[%s7125_s6 + $0x1a8] sm:$0xff]  ;;  %v4215_v31 = vld [vmem:[%s7125_s6 + $0x1b0] sm:$0xff] }
 0xa59   :  { %v2160_v39 = vmul.f32 %v2144_v28, %v2096_v32  ;;  %v4216_v32 = vld [vmem:[%s7125_s6 + $0x1b8] sm:$0xff]  ;;  %v4217_v28 = vld [vmem:[%s7125_s6 + $0x1c0] sm:$0xff]  ;;  %p5608_p9 = pnand %p5607_p8, %p5601_p5 }
 0xa5a   :  { %v2159_v41 = vmul.f32 %v2143_v38, %v2095_v35  ;;  %5252 = vmatpush3.bf16.msra.mxu1 %v5251_v34  ;;  %v4218_v34 = vld [vmem:[%s7125_s6 + $0x1c8] sm:$0xff]  ;;  %v4219_v35 = vld [vmem:[%s7125_s6 + $0x1d0] sm:$0xff]  ;;  %v4220_v38 = vld [vmem:[%s7125_s6 + $0x1d8] sm:$0xff] }
 0xa5b   :  { %5253 = vmatprep.subr.bf16.mxu1 %v5659_v6 }
 0xa5c   :  { %v5254_v42 = vpack.c.bf16 %v2160_v39, %v2159_v41  ;;  %v4221_v39 = vld [vmem:[%s7125_s6 + $0x1e0] sm:$0xff]  ;;  %v4222_v41 = vld [vmem:[%s7125_s6 + $0x1e8] sm:$0xff] }
 0xa5e   :  { %5255 = vmatpush3.bf16.msra.mxu1 %v5254_v42  ;;  %v4223_v42 = vld [vmem:[%s7125_s6 + $0x1f0] sm:$0xff] }
 0xa5f   :  { %5262 = vmatprep.subr.bf16.mxu1 %v5659_v6 }
 0xa61   :  { %4898 = vmatmul.mubr.f32.vlgmr.msra.gmra.mrb[24].mxu1 %v4182_v33  ;;  %v4224_v33 = vld [vmem:[%s7125_s6 + $0x1f8] sm:$0xff] }
 0xa62   :  { %4943 = vmatprep.mubr.msk.f32.mxu1 %vm5660_vm0, %v5661_v7  ;;  %5264 = vmatpush3.bf16.msra.mxu1 %v5263_v22 }
 0xa63   :  { %5265 = vmatprep.subr.bf16.mxu1 %v5659_v6 }
 0xa66   :  { %5267 = vmatpush3.bf16.msra.mxu1 %v5266_v47 }
 0xa67   :  { %5268 = vmatprep.subr.bf16.mxu1 %v5659_v6 }
 0xa6a   :  { %5270 = vmatpush3.bf16.msra.mxu1 %v5269_v54  ;;  %v2502_v54 = vpop.permute.xlu0 %2501 }
 0xa6b   :  { %5271 = vmatprep.subr.bf16.mxu1 %v5659_v6 }
 0xa6e   :  { %5273 = vmatpush3.bf16.msra.mxu1 %v5272_v62  ;;  %v2512_v55 = vpop.permute.xlu0 %2511 }
 0xa6f   :  { %5274 = vmatprep.subr.bf16.mxu1 %v5659_v6 }
 0xb34   :  { %v2229_v48 = vpop.f32.mrb[24].mxu1 }
 0xb35   :  { %v2233_v56 = vadd.f32 %v2229_v48, %v6564_v5  ;;  %v4899_v58 = vpop.f32.mrb[25].mxu1  ;;  %v4199_v5 = vld [vmem:[%s7153_s22 + $0x1c0] sm:$0xff]  ;;  %s7155_s22 = sld [smem:[#allocation28_spill]] }
 0xb36   :  { %v5275_v0 = vpack.c.bf16 %v4200_v63, %v4199_v5  ;;  %v2497_v58 = vpop.permute.xlu1 %2496 }
 0xb37   :  { %v2241_v60 = vadd.f32 %v2239_v59, %v2233_v56 }
 0xb38   :  { %5276 = vmatpush3.bf16.msra.mxu1 %v5275_v0 }
 0xb39   :  { %4909 = vmatmul.mubr.msk.f32.vlgmr.msra.gmra.mrb[40].mxu0 %vm281_vm1, %v2241_v60  ;;  %5277 = vmatprep.subr.bf16.mxu1 %v5659_v6 }
 0xb3a   :  { %4948 = vmatprep.mubr.msk.f32.mxu0 %vm567_vm2, %v4209_v21 }
 0xb3c   :  { %5279 = vmatpush3.bf16.msra.mxu1 %v5278_v52  ;;  %v2507_v52 = vpop.permute.xlu1 %2506 }
 0xb3d   :  { %5280 = vmatprep.subr.bf16.mxu1 %v5659_v6 }
 0xb40   :  { %5282 = vmatpush3.bf16.msra.mxu1 %v5281_v4 }
 0xb41   :  { %5283 = vmatprep.subr.bf16.mxu1 %v5659_v6 }
 0xb44   :  { %5285 = vmatpush3.bf16.msra.mxu1 %v5284_v12 }
 0xc0c   :  { %v2324_v14 = vpop.f32.mrb[40].mxu0 }
 0xc0d   :  { %v2325_v8 = vadd.f32 %v4189_v13, %v2324_v14  ;;  %v4910_v15 = vpop.f32.mrb[41].mxu0 }
 0xc0e   :  { %v2522_v15 = vpop.permute.xlu0 %2521 }
 0xc0f   :  { %v2329_v16 = vmul.f32 0.70710677, %v2325_v8  ;;  %v2328_v17 = vmul.f32 0.5, %v2325_v8 }
 0xc11   :  { %5445 = verf.f32 %v2329_v16 }
 0xc1b   :  { %v5446_v9 = vpop.eup %5445 }
 0xc1c   :  { %v2331_v36 = vadd.f32 1.0, %v5446_v9 }
 0xc1e   :  { %v2332_v19 = vmul.f32 %v2331_v36, %v2328_v17 }
 0xc20   :  { %4944 = vmatmul.mubr.f32.vlgmr.msra.gmra.mrb[26].mxu1 %v2332_v19  ;;  %v2517_v19 = vpop.permute.xlu1 %2516 }
 0xcf3   :  { %v2416_v11 = vpop.f32.mrb[26].mxu1 }
 0xcf4   :  { %v2420_v25 = vadd.f32 %v2416_v11, %v2241_v60  ;;  %v4945_v26 = vpop.f32.mrb[27].mxu1 }
 0xcf6   :  { %v6750_v27 = vadd.f32 %v4208_v23, %v2420_v25 }
 0xcf8   :  { %4946 = vmatprep.subr.msk.mxu0 %vm616_vm3, %v6750_v27 }
 0xcf9   :  { %4947 = vmatpush3.msk.msra.mxu0 %vm616_vm3, %v6750_v27 }
 0xcfa   :  { %4949 = vmatmul.mubr.msk.f32.vlgmr.msra.gmra.mrb[42].mxu0 %vm567_vm2, %v4210_v29  ;;  %5286 = vmatprep.subr.bf16.mxu0 %v5659_v6 }
 0xcfb   :  { %4951 = vmatprep.mubr.msk.f32.mxu0 %vm567_vm2, %v4211_v18 }
 0xcfe   :  { %4952 = vmatmul.mubr.msk.f32.gmra.mrb[44].mxu0 %vm567_vm2, %v4212_v24 }
 0xcff   :  { %4954 = vmatprep.mubr.msk.f32.mxu0 %vm567_vm2, %v4213_v20 }
 0xd02   :  { %4955 = vmatmul.mubr.msk.f32.gmra.mrb[46].mxu0 %vm567_vm2, %v4214_v30 }
 0xd03   :  { %4957 = vmatprep.mubr.msk.f32.mxu0 %vm567_vm2, %v4215_v31 }
 0xd06   :  { %4958 = vmatmul.mubr.msk.f32.gmra.mrb[48].mxu0 %vm567_vm2, %v4216_v32 }
 0xd07   :  { %4960 = vmatprep.mubr.msk.f32.mxu0 %vm567_vm2, %v4217_v28 }
 0xd0a   :  { %4961 = vmatmul.mubr.msk.f32.gmra.mrb[50].mxu0 %vm567_vm2, %v4218_v34 }
 0xd0b   :  { %4963 = vmatprep.mubr.msk.f32.mxu0 %vm567_vm2, %v4219_v35 }
 0xd0e   :  { %4964 = vmatmul.mubr.msk.f32.gmra.mrb[52].mxu0 %vm567_vm2, %v4220_v38 }
 0xd0f   :  { %4966 = vmatprep.mubr.msk.f32.mxu0 %vm567_vm2, %v4221_v39 }
 0xd12   :  { %4967 = vmatmul.mubr.msk.f32.gmra.mrb[54].mxu0 %vm567_vm2, %v4222_v41 }
 0xd13   :  { %4969 = vmatprep.mubr.msk.f32.mxu0 %vm567_vm2, %v4223_v42 }
 0xd16   :  { %4970 = vmatmul.mubr.msk.f32.gmra.mrb[56].mxu0 %vm567_vm2, %v4224_v33  ;;  %v2532_v33 = vpop.permute.xlu0 %2531 }
 0xd17   :  { %5004 = vmatprep.mubr.msk.f32.mxu0 %vm5660_vm0, %v5661_v7 }
 0xdcd   :  { %v4950_v22 = vpop.f32.mrb[42].mxu0 }
 0xdce   :  { %v2667_v40 = vadd.f32 %v4950_v22, %v2472_v43  ;;  %v2661_v47 = vpop.f32.mrb[43].mxu0 }
 0xdcf   :  { %v2662_v49 = vadd.f32 %v2661_v47, %v2467_v44 }
 0xdd0   :  { %v2757_v50 = vmul.f32 0.70710677, %v2667_v40  ;;  %v2741_v16 = vmul.f32 0.5, %v2667_v40 }
 0xdd1   :  { %v2756_v48 = vmul.f32 0.70710677, %v2662_v49  ;;  %v4953_v56 = vpop.f32.mrb[44].mxu0  ;;  %v2740_v21 = vmul.f32 0.5, %v2662_v49 }
 0xdd2   :  { %5447 = verf.f32 %v2757_v50  ;;  %v2677_v59 = vadd.f32 %v4953_v56, %v2482_v51  ;;  %v2671_v60 = vpop.f32.mrb[45].mxu0 }
 0xdd3   :  { %5449 = verf.f32 %v2756_v48  ;;  %v2672_v53 = vadd.f32 %v2671_v60, %v2477_v45  ;;  %v2527_v45 = vpop.permute.xlu1 %2526 }
 0xdd4   :  { %v2759_v61 = vmul.f32 0.70710677, %v2677_v59  ;;  %v2743_v31 = vmul.f32 0.5, %v2677_v59 }
 0xdd5   :  { %v2758_v62 = vmul.f32 0.70710677, %v2672_v53  ;;  %v4956_v5 = vpop.f32.mrb[46].mxu0  ;;  %v2742_v28 = vmul.f32 0.5, %v2672_v53 }
 0xdd6   :  { %5451 = verf.f32 %v2759_v61  ;;  %v2687_v63 = vadd.f32 %v4956_v5, %v2492_v46  ;;  %v2681_v0 = vpop.f32.mrb[47].mxu0 }
 0xdd7   :  { %5453 = verf.f32 %v2758_v62  ;;  %v2682_v57 = vadd.f32 %v2681_v0, %v2487_v37  ;;  %v2542_v0 = vpop.permute.xlu0 %2541 }
 0xdd8   :  { %v2761_v1 = vmul.f32 0.70710677, %v2687_v63  ;;  %v2745_v40 = vmul.f32 0.5, %v2687_v63 }
 0xdd9   :  { %v2760_v3 = vmul.f32 0.70710677, %v2682_v57  ;;  %v4959_v4 = vpop.f32.mrb[48].mxu0  ;;  %v2744_v49 = vmul.f32 0.5, %v2682_v57 }
 0xdda   :  { %5455 = verf.f32 %v2761_v1  ;;  %v6819_v10 = vadd.f32 %v4959_v4, %v2502_v54  ;;  %v2691_v2 = vpop.f32.mrb[49].mxu0  ;;  %v2537_v4 = vpop.permute.xlu1 %2536 }
 0xddb   :  { %5457 = verf.f32 %v2760_v3  ;;  %v6821_v12 = vadd.f32 %v2691_v2, %v2497_v58 }
 0xddc   :  { %v5448_v13 = vpop.eup %5447  ;;  %v2763_v14 = vmul.f32 0.70710677, %v6819_v10 }
 0xddd   :  { %v5450_v8 = vpop.eup %5449  ;;  %v2789_v9 = vadd.f32 1.0, %v5448_v13  ;;  %v2762_v17 = vmul.f32 0.70710677, %v6821_v12  ;;  %v4962_v36 = vpop.f32.mrb[50].mxu0 }
 0xdde   :  { %v2788_v11 = vadd.f32 1.0, %v5450_v8  ;;  %5459 = verf.f32 %v2763_v14  ;;  %v6825_v23 = vadd.f32 %v4962_v36, %v2512_v55  ;;  %v2701_v25 = vpop.f32.mrb[51].mxu0  ;;  %v2747_v55 = vmul.f32 0.5, %v6819_v10 }
 0xddf   :  { %v2805_v26 = vmul.f32 %v2789_v9, %v2741_v16  ;;  %5461 = verf.f32 %v2762_v17  ;;  %v6827_v29 = vadd.f32 %v2701_v25, %v2507_v52  ;;  %v2746_v52 = vmul.f32 0.5, %v6821_v12 }
 0xde0   :  { %v5452_v18 = vpop.eup %5451  ;;  %v2804_v24 = vmul.f32 %v2788_v11, %v2740_v21  ;;  %v2765_v20 = vmul.f32 0.70710677, %v6825_v23  ;;  %v2749_v12 = vmul.f32 0.5, %v6825_v23 }
 0xde1   :  { %v5454_v30 = vpop.eup %5453  ;;  %v2791_v32 = vadd.f32 1.0, %v5452_v18  ;;  %v2764_v34 = vmul.f32 0.70710677, %v6827_v29  ;;  %v4965_v35 = vpop.f32.mrb[52].mxu0  ;;  %v2748_v25 = vmul.f32 0.5, %v6827_v29 }
 0xde2   :  { %v5287_v38 = vpack.c.bf16 %v2805_v26, %v2804_v24  ;;  %v2790_v39 = vadd.f32 1.0, %v5454_v30  ;;  %5463 = verf.f32 %v2765_v20  ;;  %v6831_v41 = vadd.f32 %v4965_v35, %v2522_v15  ;;  %v2711_v42 = vpop.f32.mrb[53].mxu0 }
 0xde3   :  { %v2807_v43 = vmul.f32 %v2791_v32, %v2743_v31  ;;  %5465 = verf.f32 %v2764_v34  ;;  %v6833_v44 = vadd.f32 %v2711_v42, %v2517_v19 }
 0xde4   :  { %v5456_v51 = vpop.eup %5455  ;;  %v2806_v46 = vmul.f32 %v2790_v39, %v2742_v28  ;;  %v2767_v37 = vmul.f32 0.70710677, %v6831_v41  ;;  %5288 = vmatpush3.bf16.msra.mxu0 %v5287_v38  ;;  %v2751_v31 = vmul.f32 0.5, %v6831_v41 }
 0xde5   :  { %v5458_v22 = vpop.eup %5457  ;;  %v2793_v47 = vadd.f32 1.0, %v5456_v51  ;;  %v2766_v50 = vmul.f32 0.70710677, %v6833_v44  ;;  %v4968_v54 = vpop.f32.mrb[54].mxu0  ;;  %5289 = vmatprep.subr.bf16.mxu0 %v5659_v6  ;;  %v2750_v28 = vmul.f32 0.5, %v6833_v44 }
 0xde6   :  { %v5290_v48 = vpack.c.bf16 %v2807_v43, %v2806_v46  ;;  %v2792_v56 = vadd.f32 1.0, %v5458_v22  ;;  %5467 = verf.f32 %v2767_v37  ;;  %v2727_v58 = vadd.f32 %v4968_v54, %v2532_v33  ;;  %v2721_v59 = vpop.f32.mrb[55].mxu0 }
 0xde7   :  { %v2809_v60 = vmul.f32 %v2793_v47, %v2745_v40  ;;  %5469 = verf.f32 %v2766_v50  ;;  %v2722_v53 = vadd.f32 %v2721_v59, %v2527_v45  ;;  %v2901_v59 = vld [vmem:[%s7129_s10] sm:$0xff] }
 0xde8   :  { %v5460_v61 = vpop.eup %5459  ;;  %v2808_v62 = vmul.f32 %v2792_v56, %v2744_v49  ;;  %v2769_v5 = vmul.f32 0.70710677, %v2727_v58  ;;  %5291 = vmatpush3.bf16.msra.mxu0 %v5290_v48  ;;  %v2753_v42 = vmul.f32 0.5, %v2727_v58  ;;  %v4258_v58 = vld [vmem:[%s7127_s8 + $0xc] sm:$0xf]  ;;  %5009 = vmatprep.mubr.msk.f32.mxu1 %vm567_vm2, %v2901_v59 }
 0xde9   :  { %v5462_v63 = vpop.eup %5461  ;;  %v2795_v57 = vadd.f32 1.0, %v5460_v61  ;;  %v2768_v1 = vmul.f32 0.70710677, %v2722_v53  ;;  %v4971_v3 = vpop.f32.mrb[56].mxu0  ;;  %5292 = vmatprep.subr.bf16.mxu0 %v5659_v6  ;;  %v2752_v51 = vmul.f32 0.5, %v2722_v53 }
 0xdea   :  { %v5293_v2 = vpack.c.bf16 %v2809_v60, %v2808_v62  ;;  %v2794_v13 = vadd.f32 1.0, %v5462_v63  ;;  %5471 = verf.f32 %v2769_v5  ;;  %v2737_v14 = vadd.f32 %v4971_v3, %v2542_v0  ;;  %v2731_v8 = vpop.f32.mrb[57].mxu0  ;;  %v3225_v60 = vld [vmem:[%s7131_s12] sm:$0xff]  ;;  %v2898_v5 = vpop.permute.xlu1 %2897  ;;  %v2902_v0 = vld [vmem:[%s7129_s10 + $0x8] sm:$0xff] }
 0xdeb   :  { %v2811_v15 = vmul.f32 %v2795_v57, %v2747_v55  ;;  %5473 = verf.f32 %v2768_v1  ;;  %v2732_v16 = vadd.f32 %v2731_v8, %v2537_v4  ;;  %v3226_v55 = vld [vmem:[%s7131_s12 + $0x8] sm:$0xff]  ;;  %v2903_v57 = vld [vmem:[%s7129_s10 + $0x10] sm:$0xff]  ;;  %v3228_v1 = vld [vmem:[%s7131_s12 + $0x18] sm:$0xff] }
 0xdec   :  { %v5464_v9 = vpop.eup %5463  ;;  %v2810_v17 = vmul.f32 %v2794_v13, %v2746_v52  ;;  %v2771_v36 = vmul.f32 0.70710677, %v2737_v14  ;;  %5294 = vmatpush3.bf16.msra.mxu0 %v5293_v2  ;;  %v2755_v40 = vmul.f32 0.5, %v2737_v14  ;;  %v2904_v52 = vld [vmem:[%s7129_s10 + $0x18] sm:$0xff]  ;;  %v2905_v3 = vld [vmem:[%s7129_s10 + $0x20] sm:$0xff]  ;;  %v2906_v2 = vld [vmem:[%s7129_s10 + $0x28] sm:$0xff] }
 0xded   :  { %v5466_v10 = vpop.eup %5465  ;;  %v2797_v19 = vadd.f32 1.0, %v5464_v9  ;;  %v2770_v21 = vmul.f32 0.70710677, %v2732_v16  ;;  %5295 = vmatprep.subr.bf16.mxu0 %v5659_v6  ;;  %v2754_v49 = vmul.f32 0.5, %v2732_v16  ;;  %v3229_v4 = vld [vmem:[%s7131_s12 + $0x20] sm:$0xff]  ;;  %v3230_v13 = vld [vmem:[%s7131_s12 + $0x28] sm:$0xff] }
 0xdee   :  { %v5296_v11 = vpack.c.bf16 %v2811_v15, %v2810_v17  ;;  %v2796_v26 = vadd.f32 1.0, %v5466_v10  ;;  %5475 = verf.f32 %v2771_v36  ;;  %v2907_v14 = vld [vmem:[%s7129_s10 + $0x30] sm:$0xff]  ;;  %v2908_v15 = vld [vmem:[%s7129_s10 + $0x38] sm:$0xff]  ;;  %v2909_v9 = vld [vmem:[%s7129_s10 + $0x40] sm:$0xff] }
 0xdef   :  { %v2813_v18 = vmul.f32 %v2797_v19, %v2749_v12  ;;  %5477 = verf.f32 %v2770_v21  ;;  %v3231_v8 = vld [vmem:[%s7131_s12 + $0x30] sm:$0xff]  ;;  %v3232_v16 = vld [vmem:[%s7131_s12 + $0x38] sm:$0xff]  ;;  %v3233_v17 = vld [vmem:[%s7131_s12 + $0x40] sm:$0xff] }
 0xdf0   :  { %v5468_v24 = vpop.eup %5467  ;;  %v2812_v20 = vmul.f32 %v2796_v26, %v2748_v25  ;;  %5297 = vmatpush3.bf16.msra.mxu0 %v5296_v11  ;;  %v2910_v36 = vld [vmem:[%s7129_s10 + $0x48] sm:$0xff]  ;;  %v2911_v12 = vld [vmem:[%s7129_s10 + $0x50] sm:$0xff]  ;;  %v2912_v21 = vld [vmem:[%s7129_s10 + $0x58] sm:$0xff] }
 0xdf1   :  { %v5470_v30 = vpop.eup %5469  ;;  %v2799_v32 = vadd.f32 1.0, %v5468_v24  ;;  %5298 = vmatprep.subr.bf16.mxu0 %v5659_v6  ;;  %v3234_v10 = vld [vmem:[%s7131_s12 + $0x48] sm:$0xff]  ;;  %v3235_v19 = vld [vmem:[%s7131_s12 + $0x50] sm:$0xff]  ;;  %v3236_v11 = vld [vmem:[%s7131_s12 + $0x58] sm:$0xff] }
 0xdf2   :  { %v5299_v23 = vpack.c.bf16 %v2813_v18, %v2812_v20  ;;  %v2798_v34 = vadd.f32 1.0, %v5470_v30  ;;  %v2913_v25 = vld [vmem:[%s7129_s10 + $0x60] sm:$0xff]  ;;  %v2914_v18 = vld [vmem:[%s7129_s10 + $0x68] sm:$0xff]  ;;  %v2915_v20 = vld [vmem:[%s7129_s10 + $0x70] sm:$0xff] }
 0xdf3   :  { %v2815_v35 = vmul.f32 %v2799_v32, %v2751_v31  ;;  %v3237_v26 = vld [vmem:[%s7131_s12 + $0x60] sm:$0xff]  ;;  %v3238_v24 = vld [vmem:[%s7131_s12 + $0x68] sm:$0xff]  ;;  %v3239_v30 = vld [vmem:[%s7131_s12 + $0x70] sm:$0xff] }
 0xdf4   :  { %v5472_v38 = vpop.eup %5471  ;;  %v2814_v29 = vmul.f32 %v2798_v34, %v2750_v28  ;;  %5300 = vmatpush3.bf16.msra.mxu0 %v5299_v23  ;;  %v2916_v31 = vld [vmem:[%s7129_s10 + $0x78] sm:$0xff]  ;;  %v3260_v23 = vpop.permute.xlu0 %3259 }
 0xdf5   :  { %v5474_v39 = vpop.eup %5473  ;;  %v2801_v33 = vadd.f32 1.0, %v5472_v38  ;;  %5301 = vmatprep.subr.bf16.mxu0 %v5659_v6  ;;  %v3240_v32 = vld [vmem:[%s7131_s12 + $0x78] sm:$0xff]  ;;  %v3265_v28 = vpop.permute.xlu1 %3264 }
 0xdf6   :  { %v5302_v43 = vpack.c.bf16 %v2815_v35, %v2814_v29  ;;  %v2800_v45 = vadd.f32 1.0, %v5474_v39 }
 0xdf7   :  { %v2817_v41 = vmul.f32 %v2801_v33, %v2753_v42 }
 0xdf8   :  { %v5476_v46 = vpop.eup %5475  ;;  %v2816_v37 = vmul.f32 %v2800_v45, %v2752_v51  ;;  %5303 = vmatpush3.bf16.msra.mxu0 %v5302_v43  ;;  %v3270_v34 = vpop.permute.xlu0 %3269 }
 0xdf9   :  { %v5478_v22 = vpop.eup %5477  ;;  %v2803_v44 = vadd.f32 1.0, %v5476_v46  ;;  %5304 = vmatprep.subr.bf16.mxu0 %v5659_v6  ;;  %v3275_v35 = vpop.permute.xlu1 %3274 }
 0xdfa   :  { %v5305_v47 = vpack.c.bf16 %v2817_v41, %v2816_v37  ;;  %v2802_v50 = vadd.f32 1.0, %v5478_v22 }
 0xdfb   :  { %v2819_v54 = vmul.f32 %v2803_v44, %v2755_v40 }
 0xdfc   :  { %v2818_v48 = vmul.f32 %v2802_v50, %v2754_v49  ;;  %5306 = vmatpush3.bf16.msra.mxu0 %v5305_v47  ;;  %v3280_v38 = vpop.permute.xlu0 %3279 }
 0xdfd   :  { %5307 = vmatprep.subr.bf16.mxu0 %v5659_v6  ;;  %v3285_v29 = vpop.permute.xlu1 %3284 }
 0xdfe   :  { %v5308_v56 = vpack.c.bf16 %v2819_v54, %v2818_v48 }
 0xe00   :  { %5309 = vmatpush3.bf16.msra.mxu0 %v5308_v56  ;;  %v3290_v39 = vpop.permute.xlu0 %3289 }
 0xe01   :  { %v3295_v42 = vpop.permute.xlu1 %3294 }
 0xe03   :  { %5005 = vmatmul.mubr.f32.vlgmr.msra.gmra.mrb[58].mxu0 %v4258_v58 }
 0xe04   :  { %5035 = vmatprep.mubr.msk.f32.mxu0 %vm567_vm2, %v3225_v60  ;;  %v6989_v33 = vpop.permute.xlu0 %3299 }
 0xe05   :  { %v6991_v43 = vpop.permute.xlu1 %3304 }
 0xe08   :  { %v2936_v51 = vpop.permute.xlu0 %2935 }
 0xe09   :  { %v2941_v45 = vpop.permute.xlu1 %2940 }
 0xe0c   :  { %v6993_v41 = vpop.permute.xlu0 %3309 }
 0xe0d   :  { %v6995_v46 = vpop.permute.xlu1 %3314 }
 0xe10   :  { %v2946_v37 = vpop.permute.xlu0 %2945 }
 0xe11   :  { %v2951_v22 = vpop.permute.xlu1 %2950 }
 0xe14   :  { %v6997_v48 = vpop.permute.xlu0 %3319 }
 0xe15   :  { %v6999_v56 = vpop.permute.xlu1 %3324 }
 0xed6   :  { %v2888_v53 = vpop.f32.mrb[58].mxu0 }
 0xed7   :  { %v2892_v61 = vadd.f32 %v2888_v53, %v6750_v27  ;;  %v5006_v62 = vpop.f32.mrb[59].mxu0  ;;  %v3227_v27 = vld [vmem:[%s7131_s12 + $0x10] sm:$0xff] }
 0xed9   :  { %v2900_v63 = vadd.f32 %v2898_v5, %v2892_v61 }
 0xedb   :  { %5007 = vmatprep.subr.msk.mxu1 %vm616_vm3, %v2900_v63  ;;  %5033 = vmatprep.subr.msk.mxu0 %vm616_vm3, %v2900_v63 }
 0xedc   :  { %5008 = vmatpush3.msk.msra.mxu1 %vm616_vm3, %v2900_v63  ;;  %5034 = vmatpush3.msk.msra.mxu0 %vm616_vm3, %v2900_v63 }
 0xedd   :  { %5010 = vmatmul.mubr.msk.f32.vlgmr.msra.gmra.mrb[28].mxu1 %vm567_vm2, %v2902_v0  ;;  %5036 = vmatmul.mubr.msk.f32.vlgmr.msra.gmra.mrb[60].mxu0 %vm567_vm2, %v3226_v55 }
 0xede   :  { %5012 = vmatprep.mubr.msk.f32.mxu1 %vm567_vm2, %v2903_v57  ;;  %5038 = vmatprep.mubr.msk.f32.mxu0 %vm567_vm2, %v3227_v27 }
 0xedf   :  { %5310 = vmatprep.subr.bf16.mxu1 %v5659_v6 }
 0xee1   :  { %5013 = vmatmul.mubr.msk.f32.gmra.mrb[30].mxu1 %vm567_vm2, %v2904_v52  ;;  %5039 = vmatmul.mubr.msk.f32.gmra.mrb[62].mxu0 %vm567_vm2, %v3228_v1 }
 0xee2   :  { %5015 = vmatprep.mubr.msk.f32.mxu1 %vm567_vm2, %v2905_v3  ;;  %5041 = vmatprep.mubr.msk.f32.mxu0 %vm567_vm2, %v3229_v4 }
 0xee5   :  { %5016 = vmatmul.mubr.msk.f32.gmra.mrb[32].mxu1 %vm567_vm2, %v2906_v2  ;;  %5042 = vmatmul.mubr.msk.f32.gmra.mrb[64].mxu0 %vm567_vm2, %v3230_v13 }
 0xee6   :  { %5018 = vmatprep.mubr.msk.f32.mxu1 %vm567_vm2, %v2907_v14  ;;  %5044 = vmatprep.mubr.msk.f32.mxu0 %vm567_vm2, %v3231_v8 }
 0xee9   :  { %5019 = vmatmul.mubr.msk.f32.gmra.mrb[34].mxu1 %vm567_vm2, %v2908_v15  ;;  %5045 = vmatmul.mubr.msk.f32.gmra.mrb[66].mxu0 %vm567_vm2, %v3232_v16 }
 0xeea   :  { %5021 = vmatprep.mubr.msk.f32.mxu1 %vm567_vm2, %v2909_v9  ;;  %5047 = vmatprep.mubr.msk.f32.mxu0 %vm567_vm2, %v3233_v17  ;;  %v2956_v9 = vpop.permute.xlu0 %2955  ;;  %v2961_v17 = vpop.permute.xlu1 %2960 }
 0xeed   :  { %5022 = vmatmul.mubr.msk.f32.gmra.mrb[36].mxu1 %vm567_vm2, %v2910_v36  ;;  %5048 = vmatmul.mubr.msk.f32.gmra.mrb[68].mxu0 %vm567_vm2, %v3234_v10 }
 0xeee   :  { %5024 = vmatprep.mubr.msk.f32.mxu1 %vm567_vm2, %v2911_v12  ;;  %5050 = vmatprep.mubr.msk.f32.mxu0 %vm567_vm2, %v3235_v19 }
 0xef1   :  { %5025 = vmatmul.mubr.msk.f32.gmra.mrb[38].mxu1 %vm567_vm2, %v2912_v21  ;;  %5051 = vmatmul.mubr.msk.f32.gmra.mrb[70].mxu0 %vm567_vm2, %v3236_v11 }
 0xef2   :  { %5027 = vmatprep.mubr.msk.f32.mxu1 %vm567_vm2, %v2913_v25  ;;  %5053 = vmatprep.mubr.msk.f32.mxu0 %vm567_vm2, %v3237_v26 }
 0xef5   :  { %5028 = vmatmul.mubr.msk.f32.gmra.mrb[40].mxu1 %vm567_vm2, %v2914_v18  ;;  %5054 = vmatmul.mubr.msk.f32.gmra.mrb[72].mxu0 %vm567_vm2, %v3238_v24 }
 0xef6   :  { %5030 = vmatprep.mubr.msk.f32.mxu1 %vm567_vm2, %v2915_v20  ;;  %5056 = vmatprep.mubr.msk.f32.mxu0 %vm567_vm2, %v3239_v30 }
 0xef9   :  { %5031 = vmatmul.mubr.msk.f32.gmra.mrb[42].mxu1 %vm567_vm2, %v2916_v31  ;;  %5057 = vmatmul.mubr.msk.f32.gmra.mrb[74].mxu0 %vm567_vm2, %v3240_v32 }
 0xefa   :  { %5091 = vmatprep.mubr.msk.f32.mxu1 %vm5660_vm0, %v5661_v7 }
 0xfb0   :  { %v5011_v40 = vpop.f32.mrb[28].mxu1  ;;  %v5037_v44 = vpop.f32.mrb[60].mxu0 }
 0xfb1   :  { %v3457_v47 = vadd.f32 %v5037_v44, %v3265_v28  ;;  %v3130_v49 = vpop.f32.mrb[29].mxu1  ;;  %v3451_v50 = vpop.f32.mrb[61].mxu0  ;;  %v3136_v3 = vadd.f32 %v5011_v40, %v2941_v45 }
 0xfb2   :  { %v3452_v54 = vadd.f32 %v3451_v50, %v3260_v23  ;;  %v3131_v8 = vadd.f32 %v3130_v49, %v2936_v51  ;;  %v7012_v40 = vpop.permute.xlu1 %3334 }
 0xfb3   :  { %v3531_v58 = vsub.f32 0.0, %v3457_v47 }
 0xfb4   :  { %v3530_v59 = vsub.f32 0.0, %v3452_v54  ;;  %v5014_v60 = vpop.f32.mrb[30].mxu1  ;;  %v5040_v53 = vpop.f32.mrb[62].mxu0 }
 0xfb5   :  { %v3548_v61 = vmul.f32 1.442695, %v3531_v58  ;;  %v3467_v62 = vadd.f32 %v5040_v53, %v3275_v35  ;;  %v3140_v5 = vpop.f32.mrb[31].mxu1  ;;  %v3461_v63 = vpop.f32.mrb[63].mxu0  ;;  %v3146_v21 = vadd.f32 %v5014_v60, %v2951_v22 }
 0xfb6   :  { %v3546_v0 = vmul.f32 1.442695, %v3530_v59  ;;  %v3462_v55 = vadd.f32 %v3461_v63, %v3270_v34  ;;  %v3141_v24 = vadd.f32 %v3140_v5, %v2946_v37  ;;  %v7010_v22 = vpop.permute.xlu0 %3329 }
 0xfb7   :  { %5479 = vpow2.f32 %v3548_v61  ;;  %v3533_v57 = vsub.f32 0.0, %v3467_v62 }
 0xfb8   :  { %5481 = vpow2.f32 %v3546_v0  ;;  %v3532_v27 = vsub.f32 0.0, %v3462_v55  ;;  %v5017_v52 = vpop.f32.mrb[32].mxu1  ;;  %v5043_v1 = vpop.f32.mrb[64].mxu0 }
 0xfb9   :  { %v3552_v4 = vmul.f32 1.442695, %v3533_v57  ;;  %v3477_v2 = vadd.f32 %v5043_v1, %v3285_v29  ;;  %v3150_v13 = vpop.f32.mrb[33].mxu1  ;;  %v3471_v14 = vpop.f32.mrb[65].mxu0  ;;  %v3156_v37 = vadd.f32 %v5017_v52, %v2961_v17 }
 0xfba   :  { %v3550_v15 = vmul.f32 1.442695, %v3532_v27  ;;  %v3472_v16 = vadd.f32 %v3471_v14, %v3280_v38 }
 0xfbb   :  { %5483 = vpow2.f32 %v3552_v4  ;;  %v3535_v36 = vsub.f32 0.0, %v3477_v2 }
 0xfbc   :  { %5485 = vpow2.f32 %v3550_v15  ;;  %v3534_v10 = vsub.f32 0.0, %v3472_v16  ;;  %v7001_v12 = vpop.f32.mrb[34].mxu1  ;;  %v5046_v19 = vpop.f32.mrb[66].mxu0 }
 0xfbd   :  { %5487 = vtanh.f32 %v3136_v3  ;;  %v3556_v11 = vmul.f32 1.442695, %v3535_v36  ;;  %v3487_v25 = vadd.f32 %v5046_v19, %v3295_v42  ;;  %v7003_v26 = vpop.f32.mrb[35].mxu1  ;;  %v3481_v18 = vpop.f32.mrb[67].mxu0 }
 0xfbe   :  { %5489 = vtanh.f32 %v3131_v8  ;;  %v3554_v20 = vmul.f32 1.442695, %v3534_v10  ;;  %v3482_v30 = vadd.f32 %v3481_v18, %v3290_v39  ;;  %v2971_v8 = vpop.permute.xlu1 %2970 }
 0xfbf   :  { %5491 = vpow2.f32 %v3556_v11  ;;  %v3537_v31 = vsub.f32 0.0, %v3487_v25  ;;  %v3166_v17 = vadd.f32 %v7001_v12, %v2971_v8 }
 0xfc0   :  { %5493 = vpow2.f32 %v3554_v20  ;;  %v3536_v32 = vsub.f32 0.0, %v3482_v30  ;;  %v7005_v23 = vpop.f32.mrb[36].mxu1  ;;  %v5049_v28 = vpop.f32.mrb[68].mxu0 }
 0xfc1   :  { %v5480_v34 = vpop.eup %5479  ;;  %5495 = vtanh.f32 %v3146_v21  ;;  %v3560_v35 = vmul.f32 1.442695, %v3537_v31  ;;  %v3497_v38 = vadd.f32 %v5049_v28, %v6991_v43  ;;  %v7008_v29 = vpop.f32.mrb[37].mxu1 }
 0xfc2   :  { %v3491_v42 = vpop.f32.mrb[69].mxu0  ;;  %v5482_v51 = vpop.eup %5481  ;;  %v3579_v45 = vadd.f32 1.0, %v5480_v34  ;;  %5497 = vtanh.f32 %v3141_v24  ;;  %v3558_v39 = vmul.f32 1.442695, %v3536_v32 }
 0xfc3   :  { %v3578_v44 = vadd.f32 1.0, %v5482_v51  ;;  %5499 = vpow2.f32 %v3560_v35  ;;  %v3539_v47 = vsub.f32 0.0, %v3497_v38  ;;  %v3492_v49 = vadd.f32 %v3491_v42, %v6989_v33  ;;  %v2981_v35 = vpop.permute.xlu1 %2980 }
 0xfc4   :  { %5501 = vrcp.f32 %v3579_v45  ;;  %v7015_v50 = vpop.f32.mrb[38].mxu1  ;;  %v5052_v43 = vpop.f32.mrb[70].mxu0  ;;  %v3151_v33 = vadd.f32 %v3150_v13, %v2956_v9 }
 0xfc5   :  { %v5484_v54 = vpop.eup %5483  ;;  %5503 = vrcp.f32 %v3578_v44  ;;  %v3564_v58 = vmul.f32 1.442695, %v3539_v47  ;;  %v7017_v59 = vpop.f32.mrb[39].mxu1  ;;  %v3538_v62 = vsub.f32 0.0, %v3492_v49  ;;  %v3507_v5 = vadd.f32 %v5052_v43, %v6995_v46 }
 0xfc6   :  { %v3501_v60 = vpop.f32.mrb[71].mxu0  ;;  %v5486_v53 = vpop.eup %5485  ;;  %v3581_v61 = vadd.f32 1.0, %v5484_v54  ;;  %5505 = vpow2.f32 %v3558_v39 }
 0xfc7   :  { %v5488_v63 = vpop.eup %5487  ;;  %v3580_v0 = vadd.f32 1.0, %v5486_v53  ;;  %5507 = vtanh.f32 %v3156_v37  ;;  %v3502_v57 = vadd.f32 %v3501_v60, %v6993_v41  ;;  %v3541_v3 = vsub.f32 0.0, %v3507_v5  ;;  %v2966_v9 = vpop.permute.xlu0 %2965 }
 0xfc8   :  { %v5490_v55 = vpop.eup %5489  ;;  %5509 = vrcp.f32 %v3581_v61  ;;  %v7021_v27 = vpop.f32.mrb[40].mxu1  ;;  %v3562_v15 = vmul.f32 1.442695, %v3538_v62  ;;  %v3161_v31 = vadd.f32 %v7003_v26, %v2966_v9  ;;  %v3176_v37 = vadd.f32 %v7005_v23, %v2981_v35 }
 0xfc9   :  { %v5055_v52 = vpop.f32.mrb[72].mxu0  ;;  %v5492_v1 = vpop.eup %5491  ;;  %5511 = vrcp.f32 %v3580_v0  ;;  %v3540_v10 = vsub.f32 0.0, %v3502_v57  ;;  %v3568_v25 = vmul.f32 1.442695, %v3541_v3 }
 0xfca   :  { %v7023_v4 = vpop.f32.mrb[41].mxu1  ;;  %v3511_v2 = vpop.f32.mrb[73].mxu0  ;;  %v3583_v46 = vadd.f32 1.0, %v5492_v1  ;;  %5513 = vpow2.f32 %v3564_v58  ;;  %v3517_v13 = vadd.f32 %v5055_v52, %v6999_v56 }
 0xfcb   :  { %v5494_v14 = vpop.eup %5493  ;;  %5515 = vtanh.f32 %v3151_v33  ;;  %v3512_v18 = vadd.f32 %v3511_v2, %v6997_v48  ;;  %v3566_v38 = vmul.f32 1.442695, %v3540_v10  ;;  %v2976_v60 = vpop.permute.xlu0 %2975 }
 0xfcc   :  { %v5496_v16 = vpop.eup %5495  ;;  %v3582_v41 = vadd.f32 1.0, %v5494_v14  ;;  %5517 = vrcp.f32 %v3583_v46  ;;  %v7027_v19 = vpop.f32.mrb[42].mxu1  ;;  %v3543_v12 = vsub.f32 0.0, %v3517_v13 }
 0xfcd   :  { %v5498_v36 = vpop.eup %5497  ;;  %v5058_v21 = vpop.f32.mrb[74].mxu0  ;;  %v3542_v39 = vsub.f32 0.0, %v3512_v18 }
 0xfce   :  { %v5500_v11 = vpop.eup %5499  ;;  %5519 = vrcp.f32 %v3582_v41  ;;  %v7030_v24 = vpop.f32.mrb[43].mxu1  ;;  %v3527_v42 = vadd.f32 %v5058_v21, %v7012_v40  ;;  %v3572_v26 = vmul.f32 1.442695, %v3543_v12 }
 0xfcf   :  { %v3521_v56 = vpop.f32.mrb[75].mxu0  ;;  %v5502_v20 = vpop.eup %5501  ;;  %v3585_v30 = vadd.f32 1.0, %v5500_v11  ;;  %5521 = vpow2.f32 %v3562_v15  ;;  %v3570_v62 = vmul.f32 1.442695, %v3542_v39 }
 0xfd0   :  { %v5504_v32 = vpop.eup %5503  ;;  %5523 = vtanh.f32 %v3166_v17  ;;  %v3628_v28 = vmul.f32 %v5502_v20, %v5488_v63  ;;  %v3522_v43 = vadd.f32 %v3521_v56, %v7010_v22  ;;  %v3545_v40 = vsub.f32 0.0, %v3527_v42  ;;  %v2991_v22 = vpop.permute.xlu1 %2990 }
 0xfd1   :  { %v5506_v34 = vpop.eup %5505  ;;  %5525 = vrcp.f32 %v3585_v30  ;;  %v3627_v51 = vmul.f32 %v5504_v32, %v5490_v55  ;;  %v3171_v63 = vadd.f32 %v7008_v29, %v2976_v60  ;;  %v3186_v8 = vadd.f32 %v7015_v50, %v2991_v22  ;;  %v2986_v29 = vpop.permute.xlu0 %2985 }
 0xfd2   :  { %v5508_v48 = vpop.eup %5507  ;;  %v3584_v45 = vadd.f32 1.0, %v5506_v34  ;;  %5527 = vpow2.f32 %v3568_v25  ;;  %v3544_v55 = vsub.f32 0.0, %v3522_v43  ;;  %v3576_v1 = vmul.f32 1.442695, %v3545_v40 }
 0xfd3   :  { %v5510_v44 = vpop.eup %5509  ;;  %5529 = vtanh.f32 %v3161_v31  ;;  %v5311_v47 = vpack.c.bf16 %v3628_v28, %v3627_v51 }
 0xfd4   :  { %v5512_v49 = vpop.eup %5511  ;;  %5531 = vrcp.f32 %v3584_v45  ;;  %v3630_v54 = vmul.f32 %v5510_v44, %v5496_v16  ;;  %v3574_v16 = vmul.f32 1.442695, %v3544_v55  ;;  %v3001_v21 = vpop.permute.xlu1 %3000 }
 0xfd5   :  { %v5514_v58 = vpop.eup %5513  ;;  %5533 = vpow2.f32 %v3566_v38  ;;  %5312 = vmatpush3.bf16.msra.mxu1 %v5311_v47  ;;  %v3629_v53 = vmul.f32 %v5512_v49, %v5498_v36  ;;  %v3181_v36 = vadd.f32 %v7017_v59, %v2986_v29  ;;  %v3196_v11 = vadd.f32 %v7021_v27, %v3001_v21  ;;  %v2996_v30 = vpop.permute.xlu0 %2995 }
 0xfd6   :  { %v5516_v61 = vpop.eup %5515  ;;  %5535 = vtanh.f32 %v3176_v37  ;;  %v3587_v23 = vadd.f32 1.0, %v5514_v58  ;;  %5313 = vmatprep.subr.bf16.mxu1 %v5659_v6  ;;  %v3191_v32 = vadd.f32 %v7023_v4, %v2996_v30 }
 0xfd7   :  { %v5518_v5 = vpop.eup %5517  ;;  %5537 = vpow2.f32 %v3572_v26  ;;  %v5314_v0 = vpack.c.bf16 %v3630_v54, %v3629_v53 }
 0xfd8   :  { %v5520_v33 = vpop.eup %5519  ;;  %5539 = vrcp.f32 %v3587_v23  ;;  %v3632_v57 = vmul.f32 %v5518_v5, %v5508_v48  ;;  %v3011_v35 = vpop.permute.xlu1 %3010 }
 0xfd9   :  { %v5522_v52 = vpop.eup %5521  ;;  %5315 = vmatpush3.bf16.msra.mxu1 %v5314_v0  ;;  %v3631_v3 = vmul.f32 %v5520_v33, %v5516_v61  ;;  %5541 = vpow2.f32 %v3570_v62  ;;  %v3206_v42 = vadd.f32 %v7027_v19, %v3011_v35  ;;  %v3006_v45 = vpop.permute.xlu0 %3005 }
 0xfda   :  { %v5524_v2 = vpop.eup %5523  ;;  %v3586_v14 = vadd.f32 1.0, %v5522_v52  ;;  %5316 = vmatprep.subr.bf16.mxu1 %v5659_v6  ;;  %5543 = vtanh.f32 %v3171_v63  ;;  %v3201_v44 = vadd.f32 %v7030_v24, %v3006_v45 }
 0xfdb   :  { %v5526_v46 = vpop.eup %5525  ;;  %v5317_v15 = vpack.c.bf16 %v3632_v57, %v3631_v3  ;;  %v3626_v3 = vld [vmem:[%s7155_s22] sm:$0x1] }
 0xfdc   :  { %v5528_v13 = vpop.eup %5527  ;;  %5545 = vrcp.f32 %v3586_v14  ;;  %v3634_v9 = vmul.f32 %v5526_v46, %v5524_v2  ;;  %v3649_v2 = vlaneseq }
 0xfdd   :  { %v5530_v41 = vpop.eup %5529  ;;  %v3589_v17 = vadd.f32 1.0, %v5528_v13  ;;  %5547 = vpow2.f32 %v3576_v1  ;;  %5318 = vmatpush3.bf16.msra.mxu1 %v5317_v15  ;;  %v3647_v46 = vpop.permute.xlu0 %3646 }
 0xfde   :  { %v5532_v10 = vpop.eup %5531  ;;  %5549 = vtanh.f32 %v3186_v8  ;;  %5319 = vmatprep.subr.bf16.mxu1 %v5659_v6  ;;  %v3650_v14 = vshrl.u32 %v3649_v2, 7  ;;  %v7055_v29 = vand.u32 127, %v3649_v2 }
 0xfdf   :  { %v5534_v50 = vpop.eup %5533  ;;  %5551 = vrcp.f32 %v3589_v17  ;;  %v3633_v25 = vmul.f32 %v5532_v10, %v5530_v41 }
 0xfe0   :  { %v5536_v18 = vpop.eup %5535  ;;  %v3588_v56 = vadd.f32 1.0, %v5534_v50  ;;  %5553 = vpow2.f32 %v3574_v16  ;;  %v7053_v8 = vsub.s32 0, %v3650_v14  ;;  %v3726_v15 = vadd.s32 16, %v3650_v14 }
 0xfe1   :  { %v5538_v20 = vpop.eup %5537  ;;  %5555 = vtanh.f32 %v3181_v36  ;;  %v5320_v31 = vpack.c.bf16 %v3634_v9, %v3633_v25  ;;  %vm3730_vm5 = vcmp.eq.s32.totalorder %v3650_v14, %v7055_v29  ;;  %v3727_v10 = vadd.s32 24, %v3650_v14 }
 0xfe2   :  { %v5540_v59 = vpop.eup %5539  ;;  %5557 = vrcp.f32 %v3588_v56  ;;  %v3591_v12 = vadd.f32 1.0, %v5538_v20  ;;  %v3652_v13 = vrot.slane %v3647_v46, %v7053_v8  ;;  %vm3732_vm6 = vcmp.eq.s32.totalorder %v3726_v15, %v7055_v29 }
 0xfe3   :  { %5559 = vtanh.f32 %v3196_v11  ;;  %5321 = vmatpush3.bf16.msra.mxu1 %v5320_v31  ;;  %v3636_v28 = vmul.f32 %v5540_v59, %v5536_v18  ;;  %v5542_v34 = vpop.eup %5541  ;;  %vm3733_vm8 = vcmp.eq.s32.totalorder %v3727_v10, %v7055_v29  ;;  %vm3762_vm9 = vcmp.lt.s32.totalorder %v7055_v29, %v3650_v14 }
 0xfe4   :  { %5561 = vrcp.f32 %v3591_v12  ;;  %5322 = vmatprep.subr.bf16.mxu1 %v5659_v6  ;;  %v5544_v27 = vpop.eup %5543  ;;  %v3590_v38 = vadd.f32 1.0, %v5542_v34  ;;  %vm3764_vm12 = vcmp.lt.s32.totalorder %v7055_v29, %v3726_v15 }
 0xfe5   :  { %5563 = vtanh.f32 %v3191_v32 }
 0xfe6   :  { %v5546_v51 = vpop.eup %5545  ;;  %5565 = vrcp.f32 %v3590_v38 }
 0xfe7   :  { %v5548_v48 = vpop.eup %5547  ;;  %v3635_v37 = vmul.f32 %v5546_v51, %v5544_v27  ;;  %5567 = vtanh.f32 %v3206_v42 }
 0xfe8   :  { %v5550_v39 = vpop.eup %5549  ;;  %v3593_v4 = vadd.f32 1.0, %v5548_v48 }
 0xfe9   :  { %v5552_v26 = vpop.eup %5551  ;;  %v5323_v47 = vpack.c.bf16 %v3636_v28, %v3635_v37 }
 0xfea   :  { %v5554_v49 = vpop.eup %5553  ;;  %5569 = vrcp.f32 %v3593_v4  ;;  %v3638_v43 = vmul.f32 %v5552_v26, %v5550_v39 }
 0xfeb   :  { %v5556_v54 = vpop.eup %5555  ;;  %v3592_v58 = vadd.f32 1.0, %v5554_v49  ;;  %5324 = vmatpush3.bf16.msra.mxu1 %v5323_v47  ;;  %5571 = vtanh.f32 %v3201_v44 }
 0xfec   :  { %v5558_v19 = vpop.eup %5557  ;;  %5325 = vmatprep.subr.bf16.mxu1 %v5659_v6 }
 0xfed   :  { %v5560_v60 = vpop.eup %5559  ;;  %5573 = vrcp.f32 %v3592_v58  ;;  %v3637_v40 = vmul.f32 %v5558_v19, %v5556_v54 }
 0xfee   :  { %v5562_v53 = vpop.eup %5561 }
 0xfef   :  { %v5326_v61 = vpack.c.bf16 %v3638_v43, %v3637_v40  ;;  %v3640_v23 = vmul.f32 %v5562_v53, %v5560_v60  ;;  %v5564_v24 = vpop.eup %5563 }
 0xff0   :  { %v5566_v62 = vpop.eup %5565 }
 0xff1   :  { %5327 = vmatpush3.bf16.msra.mxu1 %v5326_v61  ;;  %v3639_v5 = vmul.f32 %v5566_v62, %v5564_v24  ;;  %v5568_v63 = vpop.eup %5567 }
 0xff2   :  { %5328 = vmatprep.subr.bf16.mxu1 %v5659_v6 }
 0xff3   :  { %v5329_v33 = vpack.c.bf16 %v3640_v23, %v3639_v5 }
 0xff4   :  { %v5570_v0 = vpop.eup %5569 }
 0xff5   :  { %v3642_v22 = vmul.f32 %v5570_v0, %v5568_v63  ;;  %v5572_v55 = vpop.eup %5571  ;;  %5330 = vmatpush3.bf16.msra.mxu1 %v5329_v33 }
 0xff6   :  { %5331 = vmatprep.subr.bf16.mxu1 %v5659_v6  ;;  %v3725_v6 = vadd.s32 8, %v3650_v14 }
 0xff7   :  { %v5574_v57 = vpop.eup %5573 }
 0xff8   :  { %v3641_v52 = vmul.f32 %v5574_v57, %v5572_v55  ;;  %vm3731_vm7 = vcmp.eq.s32.totalorder %v3725_v6, %v7055_v29  ;;  %vm3763_vm2 = vcmp.lt.s32.totalorder %v7055_v29, %v3725_v6 }
 0xffa   :  { %v5332_v1 = vpack.c.bf16 %v3642_v22, %v3641_v52 }
 0xffc   :  { %5333 = vmatpush3.bf16.msra.mxu1 %v5332_v1 }
 0xfff   :  { %5092 = vmatmul.mubr.f32.vlgmr.msra.gmra.mrb[44].mxu1 %v3626_v3 }
0x10d2   :  { %v3719_v16 = vpop.f32.mrb[44].mxu1 }
0x10d3   :  { %v7058_v9 = vadd.f32 %v3719_v16, %v3652_v13  ;;  %v5093_v41 = vpop.f32.mrb[45].mxu1 }
0x10d5   :  { %v3737_v17 = vrot.slane %v7058_v9, %v7053_v8  ;;  %v3832_v36 = vsel %vm3831_vm4, %v7058_v9, 0.0 }
0x10d6   :  { %3833 = vadd.xlane.f32.xlu1 %v3832_v36 }
0x10d7   :  { %v3738_v21 = vsel %vm3730_vm5, %v3737_v17, 0.0  ;;  %v3740_v50 = vsel %vm3732_vm6, %v3737_v17, 0.0  ;;  %v3739_v18 = vsel %vm3731_vm7, %v3737_v17, 0.0  ;;  %v3741_v20 = vsel %vm3733_vm8, %v3737_v17, 0.0 }
0x10d8   :  { %v3742_v11 = vsel %vm281_vm1, %v3738_v21, 0.0  ;;  %v3748_v25 = vsel %vm281_vm1, %v3740_v50, 0.0  ;;  %v3745_v56 = vsel %vm281_vm1, %v3739_v18, 0.0  ;;  %v3751_v30 = vsel %vm281_vm1, %v3741_v20, 0.0 }
0x10d9   :  { %3743 = vadd.xlane.f32.xlu0 %v3742_v11 }
0x10da   :  { %3749 = vadd.xlane.f32.xlu1 %v3748_v25 }
0x10dd   :  { %3746 = vadd.xlane.f32.xlu0 %v3745_v56 }
0x10e1   :  { %3752 = vadd.xlane.f32.xlu0 %v3751_v30 }
0x1163   :  { %v3834_v31 = vpop.xlane.xlu1 %3833 }
0x1164   :  { %v3835_v59 = vmul.f32 0.03125, %v3834_v31 }
0x1166   :  { %v3836_v12 = vsub.f32 %v7058_v9, %v3835_v59  ;;  %v3744_v32 = vpop.xlane.xlu0 %3743 }
0x1167   :  { %v3750_v28 = vpop.xlane.xlu1 %3749  ;;  %vm3754_vm10 = vcmp.lt.f32.partialorder %v3737_v17, %v3744_v32  ;;  %vm3758_vm11 = vcmp.eq.f32.partialorder %v3737_v17, %v3744_v32 }
0x1168   :  { %v3837_v34 = vmul.f32 %v3836_v12, %v3836_v12  ;;  %vm3766_vm13 = vmand %vm3758_vm11, %vm3762_vm9  ;;  %vm3756_vm14 = vcmp.lt.f32.partialorder %v3737_v17, %v3750_v28  ;;  %vm3760_vm15 = vcmp.eq.f32.partialorder %v3737_v17, %v3750_v28 }
0x1169   :  { %vm3770_vm0 = vmor %vm3754_vm10, %vm3766_vm13  ;;  %vm3765_vm10 = vcmp.lt.s32.totalorder %v7055_v29, %v3727_v10 }
0x116a   :  { %v3747_v35 = vpop.xlane.xlu0 %3746  ;;  %v3838_v27 = vsel %vm3831_vm4, %v3837_v34, 0.0  ;;  %v4294_v38 = vsel %vm3770_vm0, 1.0, %v5661_v7  ;;  %vm3768_vm3 = vmand %vm3760_vm15, %vm3764_vm12 }
0x116b   :  { %3839 = vadd.xlane.f32.xlu1 %v3838_v27  ;;  %v3782_v42 = vsel %vm281_vm1, %v4294_v38, 0.0  ;;  %vm3772_vm5 = vmor %vm3756_vm14, %vm3768_vm3  ;;  %vm3755_vm6 = vcmp.lt.f32.partialorder %v3737_v17, %v3747_v35  ;;  %vm3759_vm7 = vcmp.eq.f32.partialorder %v3737_v17, %v3747_v35  ;;  %v5587_v27 = vld [vmem:[#allocation2] sm:$0xf] }
0x116c   :  { %3783 = vadd.xlane.f32.xlu0 %v3782_v42  ;;  %v4296_v51 = vsel %vm3772_vm5, 1.0, %v5661_v7  ;;  %vm3767_vm8 = vmand %vm3759_vm7, %vm3763_vm2 }
0x116d   :  { %vm3771_vm9 = vmor %vm3755_vm6, %vm3767_vm8  ;;  %v3788_v37 = vsel %vm281_vm1, %v4296_v51, 0.0 }
0x116e   :  { %v3753_v48 = vpop.xlane.xlu0 %3752  ;;  %v4295_v45 = vsel %vm3771_vm9, 1.0, %v5661_v7 }
0x116f   :  { %v3785_v39 = vsel %vm281_vm1, %v4295_v45, 0.0  ;;  %vm3757_vm11 = vcmp.lt.f32.partialorder %v3737_v17, %v3753_v48  ;;  %vm3761_vm12 = vcmp.eq.f32.partialorder %v3737_v17, %v3753_v48 }
0x1170   :  { %3789 = vadd.xlane.f32.xlu0 %v3788_v37  ;;  %3786 = vadd.xlane.f32.xlu1 %v3785_v39  ;;  %vm3769_vm13 = vmand %vm3761_vm12, %vm3765_vm10  ;;  %vm3874_vm10 = vcmask 257024  }
0x1171   :  { %vm3773_vm14 = vmor %vm3757_vm11, %vm3769_vm13 }
0x1172   :  { %v4297_v4 = vsel %vm3773_vm14, 1.0, %v5661_v7 }
0x1173   :  { %v3791_v44 = vsel %vm281_vm1, %v4297_v4, 0.0 }
0x1174   :  { %3792 = vadd.xlane.f32.xlu1 %v3791_v44 }
0x11f8   :  { %v3840_v26 = vpop.xlane.xlu1 %3839 }
0x11f9   :  { %v3841_v47 = vmul.f32 0.032258064, %v3840_v26  ;;  %v3784_v49 = vpop.xlane.xlu0 %3783 }
0x11fa   :  { %vm3794_vm15 = vcmp.eq.f32.partialorder %v3784_v49, 23.0  ;;  %vm3811_vm0 = vcmp.eq.f32.partialorder %v3784_v49, 24.0 }
0x11fb   :  { %5575 = vrsqrt.f32 %v3841_v47  ;;  %v3798_v58 = vsel %vm3794_vm15, %v3744_v32, 0.0  ;;  %v3815_v19 = vsel %vm3811_vm0, %v3744_v32, 0.0  ;;  %vm3845_vm8 = vcmp.eq.f32.partialorder %v3841_v47, inf }
0x11fc   :  { %v3848_v3 = vand.u32 2147483648, %v3841_v47  ;;  %vm3847_vm9 = vcmp.eq.f32.partialorder %v3841_v47, 0.0 }
0x11fd   :  { %v3787_v43 = vpop.xlane.xlu1 %3786  ;;  %v3790_v54 = vpop.xlane.xlu0 %3789 }
0x11fe   :  { %vm3795_vm2 = vcmp.eq.f32.partialorder %v3787_v43, 23.0  ;;  %vm3812_vm3 = vcmp.eq.f32.partialorder %v3787_v43, 24.0  ;;  %vm3796_vm5 = vcmp.eq.f32.partialorder %v3790_v54, 23.0  ;;  %vm3813_vm6 = vcmp.eq.f32.partialorder %v3790_v54, 24.0 }
0x11ff   :  { %v3799_v60 = vsel %vm3795_vm2, %v3747_v35, 0.0  ;;  %v3816_v40 = vsel %vm3812_vm3, %v3747_v35, 0.0  ;;  %v3800_v61 = vsel %vm3796_vm5, %v3750_v28, 0.0  ;;  %v3817_v23 = vsel %vm3813_vm6, %v3750_v28, 0.0  ;;  %v4298_v35 = vld [vmem:[%s7134_s16] ss:$0 sm:$0xff] }
0x1200   :  { %v3802_v7 = vadd.f32 %v3799_v60, %v3798_v58  ;;  %v3819_v53 = vadd.f32 %v3816_v40, %v3815_v19 }
0x1201   :  { %v3793_v24 = vpop.xlane.xlu1 %3792 }
0x1202   :  { %v3803_v62 = vadd.f32 %v3802_v7, %v3800_v61  ;;  %v3820_v5 = vadd.f32 %v3819_v53, %v3817_v23  ;;  %vm3797_vm1 = vcmp.eq.f32.partialorder %v3793_v24, 23.0  ;;  %vm3814_vm7 = vcmp.eq.f32.partialorder %v3793_v24, 24.0 }
0x1203   :  { %v3801_v63 = vsel %vm3797_vm1, %v3753_v48, 0.0  ;;  %v3818_v0 = vsel %vm3814_vm7, %v3753_v48, 0.0 }
0x1204   :  { %v3804_v33 = vadd.f32 %v3803_v62, %v3801_v63  ;;  %v3821_v22 = vadd.f32 %v3820_v5, %v3818_v0 }
0x1205   :  { %v5576_v55 = vpop.eup %5575 }
0x1206   :  { %v3844_v57 = vmul.f32 %v5576_v55, %v3841_v47  ;;  %v3805_v52 = vrot.slane %v3804_v33, 4  ;;  %v3822_v1 = vrot.slane %v3821_v22, 4 }
0x1208   :  { %v3846_v2 = vsel %vm3845_vm8, %v3841_v47, %v3844_v57  ;;  %v3806_v14 = vadd.f32 %v3805_v52, %v3804_v33  ;;  %v3823_v46 = vadd.f32 %v3822_v1, %v3821_v22 }
0x1209   :  { %v3849_v29 = vsel %vm3847_vm9, %v3848_v3, %v3846_v2 }
0x120a   :  { %v3807_v15 = vrot.slane %v3806_v14, 2  ;;  %v3824_v13 = vrot.slane %v3823_v46, 2  ;;  %v3850_v16 = vadd.f32 1e-06, %v3849_v29 }
0x120c   :  { %v3808_v6 = vadd.f32 %v3807_v15, %v3806_v14  ;;  %v3825_v41 = vadd.f32 %v3824_v13, %v3823_v46  ;;  %5577 = vrcp.f32 %v3850_v16 }
0x120e   :  { %v3809_v17 = vrot.slane %v3808_v6, 1  ;;  %v3826_v36 = vrot.slane %v3825_v41, 1 }
0x1210   :  { %v3810_v10 = vadd.f32 %v3809_v17, %v3808_v6  ;;  %v3827_v21 = vadd.f32 %v3826_v36, %v3825_v41 }
0x1212   :  { %v3828_v50 = vsub.f32 %v3827_v21, %v3810_v10 }
0x1214   :  { %v3829_v11 = vmul.f32 0.25, %v3828_v50 }
0x1216   :  { %v3830_v25 = vadd.f32 %v3829_v11, %v3810_v10  ;;  %v5578_v56 = vpop.eup %5577 }
0x1218   :  { %v3842_v18 = vsub.f32 %v7058_v9, %v3830_v25 }
0x121a   :  { %v3852_v20 = vmul.f32 %v5578_v56, %v3842_v18 }
0x121c   :  { %v3853_v30 = vmul.f32 3.0, %v3852_v20 }
0x121e   :  { %v3854_v31 = vsub.f32 0.0, %v3853_v30 }
0x1220   :  { %v3855_v59 = vmul.f32 1.442695, %v3854_v31 }
0x1222   :  { %5579 = vpow2.f32 %v3855_v59 }
0x122c   :  { %v5580_v12 = vpop.eup %5579 }
0x122d   :  { %v3857_v32 = vadd.f32 1.0, %v5580_v12 }
0x122f   :  { %5581 = vrcp.f32 %v3857_v32 }
0x1239   :  { %v5582_v28 = vpop.eup %5581 }
0x123a   :  { %v3864_v34 = vrot.slane %v5582_v28, %v7053_v8  ;;  %3860 = vst.msk [vmem:[#allocation8] sm:$0x1] %vm3831_vm4, %v5582_v28 }
0x123c   :  { %v3865_v9 = vmul.f32 %v5587_v27, %v3864_v34 }
0x123e   :  { %v3873_v38 = vmul.f32 %v4298_v35, %v3865_v9 }
0x1240   :  { %v3875_v42 = vsel %vm3874_vm10, %v3873_v38, 0.0 }
0x1241   :  { %3876 = vadd.xlane.f32.xlu0 %v3875_v42 }
0x1242   :  { %5611 = shalt.err (!%p5608_p9)
}
0x1243   :  { %s5612_s16 = scalar_lea.hbm %s7135_s18, 16 }
0x1244   :  { %p5613_p10 = scmp.ne.s32.totalorder %s7135_s18, %s5612_s16  ;;  %p5616_p11 = scmp.lt.u32.totalorder %s5612_s16, %s7135_s18 }
0x1246   :  { %p5618_p12 = pnand %p5616_p11, %p5613_p10 }
0x1248   :  { %5621 = shalt.err (!%p5618_p12)
}
0x1249   :  { %3912 = dma.vmem_to_hbm [thread:$0]  %s3910_s21, 16, %s7135_s18, [#allocation9]   ;;  %v4299_v8 = vld [vmem:[#allocation7] ss:$0 sm:$0xff]  ;;  %vm3886_vm4 = vcmask 3072   ;;  %vm3901_vm11 = vcmask 0  }
0x124a   :  { %s5664_s18 = smov [#allocation10]  }
0x124b   :  { %s3921_s28 = sshll.u32 %s5664_s18, 4  ;;  %s3922_s28 = int_to_ptr.vmem [resolvable:$true] %s3921_s28 }
0x124c   :  { %s5626_s26 = scalar_lea.vmem %s3922_s28, 32  ;;  %p5627_p0 = scmp.lt.s32.totalorder %s3922_s28, %s3922_s28 }
0x12ce   :  { %v3877_v51 = vpop.xlane.xlu0 %3876 }
0x12cf   :  { %v3885_v48 = vadd.f32 %v4299_v8, %v3877_v51 }
0x12d1   :  { %3887 = vst.msk [vmem:[%s7136_s19] sm:$0xf] %vm3886_vm4, %v3885_v48  ;;  %v3888_v45 = vsel %vm3886_vm4, %v3885_v48, 0.0  ;;  %s5622_s19 = scalar_lea.vmem %s3922_s28, 16 }
0x12d2   :  { %v3889_v37 = vrot.slane %v3888_v45, 4  ;;  %p5623_p13 = scmp.ne.s32.totalorder %s3922_s28, %s5622_s19  ;;  %p5628_p1 = scmp.lt.s32.totalorder %s5626_s26, %s5622_s19 }
0x12d4   :  { %v3890_v39 = vadd.f32 %v3889_v37, %v3888_v45  ;;  %p5629_p2 = por %p5628_p1, %p5627_p0 }
0x12d6   :  { %v3891_v4 = vrot.slane %v3890_v39, 2  ;;  %p5630_p3 = pnand %p5629_p2, %p5623_p13 }
0x12d8   :  { %v3892_v44 = vadd.f32 %v3891_v4, %v3890_v39 }
0x12da   :  { %v3893_v26 = vrot.slane %v3892_v44, 1 }
0x12dc   :  { %v3894_v47 = vadd.f32 %v3893_v26, %v3892_v44 }
0x12de   :  { %v3895_v49 = vsub.f32 0.0, %v3894_v47 }
0x12e0   :  { %v3896_v43 = vmul.f32 1.442695, %v3895_v49 }
0x12e2   :  { %5583 = vpow2.f32 %v3896_v43 }
0x12ec   :  { %v5584_v54 = vpop.eup %5583 }
0x12ed   :  { %v3898_v58 = vadd.f32 1.0, %v5584_v54 }
0x12ef   :  { %5585 = vrcp.f32 %v3898_v58 }
0x12f9   :  { %v5586_v19 = vpop.eup %5585 }
0x12fa   :  { %3902 = vst.msk [vmem:[#allocation10] sm:$0x1] %vm3901_vm11, %v5586_v19 }
0x12fb   :  { %5633 = shalt.err (!%p5630_p3)
}
0x12fc   :  { %s5634_s15 = scalar_lea.hbm %s7137_s20, 16 }
0x12fd   :  { %p5635_p4 = scmp.ne.s32.totalorder %s7137_s20, %s5634_s15  ;;  %p5638_p5 = scmp.lt.u32.totalorder %s5634_s15, %s7137_s20 }
0x12ff   :  { %p5640_p6 = pnand %p5638_p5, %p5635_p4 }
0x1301   :  { %5643 = shalt.err (!%p5640_p6)
}
0x1302   :  { %3924 = dma.vmem_to_hbm [thread:$0]  %s3922_s28, 16, %s7137_s20, [#allocation11]  }
0x1303   :  { %5654 = dma.done.wait [#allocation9], 16  }
0x1304   :  { %5655 = vsyncadd [#allocation9], 4294967280 }
0x1305   :  { %5656 = dma.done.wait [#allocation11], 16  }
0x1306   :  { %5657 = vsyncadd [#allocation11], 4294967280 }
0x1307   :  { %3933 = vsyncpa [#allocation9], 1 }
0x1308   :  { %3934 = vsyncpa [#allocation11], 1 }
0x1309   :  { %3935 = vsyncmov [#allocation3] }
0x130c   :  { %s3936_s11 = vpop.sfrf %3935 }
0x130d   :  { %p4300_p7 = scmp.ne.s32.totalorder %s3936_s11, 0 }
0x130f   :  { %3940 = shalt.err (%p4300_p7)  }
0x1310   :  { %3942 = vsyncmov [#allocation3 + $0x1] }
0x1313   :  { %s3943_s0 = vpop.sfrf %3942 }
0x1314   :  { %p4301_p8 = scmp.ne.s32.totalorder %s3943_s0, 0 }
0x1316   :  { %3947 = shalt.err (%p4301_p8)  }
0x1317   :  { %3949 = vsyncmov [#allocation3 + $0x2] }
0x131a   :  { %s3950_s30 = vpop.sfrf %3949 }
0x131b   :  { %p4302_p9 = scmp.ne.s32.totalorder %s3950_s30, 0 }
0x131d   :  { %3954 = shalt.err (%p4302_p9)  }
0x131e   :  { %3956 = vsyncmov [#allocation3 + $0x3] }
0x1321   :  { %s3957_s20 = vpop.sfrf %3956 }
0x1322   :  { %p4303_p10 = scmp.ne.s32.totalorder %s3957_s20, 0 }
0x1324   :  { %3961 = shalt.err (%p4303_p10)  }

</bundles_post_ra>
